<compile_context>
chip_gen: v6e
topology: v6e:2x2x1
jax: 0.10.0
libtpu: 0.0.40
codegen_flags: <defaults>
</compile_context>

<pallas_src>
import jax
import jax.numpy as jnp
from jax.experimental import pallas as pl
from jax.experimental.pallas import tpu as pltpu


# ---------------- Config (mirrors the PyTorch `configs`) ----------------
class Configs:
    n_embd = 16          # d_in == d_out == n_embd (Block residual requires this)
    d_in = 16
    d_out = 16
    sl = 16              # sequence length
    num_eigh = 8         # K spectral filters
    k_u = 3              # AR depth on inputs
    k_y = 2              # AR depth on outputs (m_y == 0 -> contributes nothing)
    learnable_m_y = True
    use_hankel_L = False
    scale = 4            # MLP hidden = scale * n_embd
    bias = False
    dropout = 0.0        # identity at inference


# -------- STU spectral-filter setup (plain-JAX "init" glue, matches get_top_eigh) --------
def get_hankel(sl, use_hankel_L=False):
    i = jnp.arange(1, sl + 1, dtype=jnp.float32)
    s = i[:, None] + i[None, :]
    if use_hankel_L:
        sgn = (-1.0) ** (s - 2.0) + 1.0
        denom = (s + 3.0) * (s - 1.0) * (s + 1.0)
        return sgn * (8.0 / denom)
    return 2.0 / (s ** 3 - s)


def get_top_eigh(sl, k, use_hankel_L):
    # TODO(synk): eigendecomposition has no Pallas equivalent; it is __init__-time setup, done in JAX.
    Z = get_hankel(sl, use_hankel_L)
    sigma, phi = jnp.linalg.eigh(Z)        # ascending eigenvalues
    return sigma[-k:], phi[:, -k:]         # (k,), (sl, k)


def build_stu_operators(cfg, m_u, m_phi_plus, m_phi_minus, sigma, phi):
    """Fold AR shifts + spectral causal convolutions (with sigma^0.25 scaling and the
    k_y-step shift of the spectral features) into (G, Wt) operator stacks."""
    sl, k_u, k_y = cfg.sl, cfg.k_u, cfg.k_y
    t = jnp.arange(sl)
    lag = t[:, None] - t[None, :]                              # (t, s): lag = t - s
    causal = lag >= 0

    # AR-on-inputs shift operators: (S_i @ u)[t] = u[t - i]
    S = jnp.stack([(lag == i).astype(jnp.float32) for i in range(k_u)], 0)   # (k_u, sl, sl)

    # Spectral causal-convolution operators.
    phi_lag = phi[jnp.clip(lag, 0, sl - 1)]                    # (sl, sl, K) = phi[lag, k]
    F_plus = jnp.where(causal[..., None], phi_lag, 0.0)
    alt = jnp.where(lag % 2 == 0, 1.0, -1.0)[..., None]        # (-1)^lag
    F_minus = F_plus * alt
    scale = jnp.maximum(sigma, 0.0) ** 0.25                    # (K,)
    F_plus = F_plus * scale
    F_minus = F_minus * scale
    # shift spectral features by k_y steps: U_shifted[t] = U[t - k_y]
    F_plus = jnp.pad(F_plus, ((k_y, 0), (0, 0), (0, 0)))[:sl]
    F_minus = jnp.pad(F_minus, ((k_y, 0), (0, 0), (0, 0)))[:sl]
    F_plus = jnp.transpose(F_plus, (2, 0, 1))                  # (K, sl, sl)
    F_minus = jnp.transpose(F_minus, (2, 0, 1))

    G = jnp.concatenate([S, F_plus, F_minus], axis=0)          # (C, sl, sl)
    # right-multiply channel mixers (d_in, d_out):  contrib_c = (G_c @ u) @ Wt_c
    Wt = jnp.concatenate([
        jnp.transpose(m_u, (0, 2, 1)),
        jnp.transpose(m_phi_plus, (0, 2, 1)),
        jnp.transpose(m_phi_minus, (0, 2, 1)),
    ], axis=0)                                                 # (C, d_in, d_out)
    return G, Wt


def fold_block_operators(cfg, G, Wt, w1, w3, w2, weight_dtype=jnp.bfloat16):
    """Init-time folding into two flat-layout bf16 operators:
         A   = [M | (I+M)@W1b | (I+M)@W3b]  (SD, SD + 2*SH): one GEMM -> [stu | g | v]
         W2b = block-diag expansion of w2^T  (SH, SD)
       with M[s*D+d, t*D+e] = sum_c G[c,t,s] * Wt[c,d,e]  (stu_flat = x_flat @ M)."""
    sl, D = cfg.sl, cfg.n_embd
    SD = sl * D
    M = jnp.einsum("cts,cde->sdte", G, Wt).reshape(SD, SD)             # (256, 256)
    eye_tok = jnp.eye(sl, dtype=jnp.float32)
    W1b = jnp.kron(eye_tok, w1.T)                                      # (SD, sl*H)
    W3b = jnp.kron(eye_tok, w3.T)                                      # (SD, sl*H)
    W2b = jnp.kron(eye_tok, w2.T)                                      # (sl*H, SD)
    # Fold the residual (I+M) into the up-projections only; the stu block stays M so the
    # kernel can keep x exact in f32 for the residual stream (x1 = x + stu).
    I_plus_M = jnp.eye(SD, dtype=jnp.float32) + M
    A = jnp.concatenate([M, I_plus_M @ W1b, I_plus_M @ W3b], axis=1)   # (256, 2304)
    return A.astype(weight_dtype), W2b.astype(weight_dtype)


# ---------------------------- Pallas kernel ----------------------------
def block_kernel(x_ref, a_ref, w2_ref, o_ref):
    SD = x_ref.shape[-1]          # sl * D  (256)
    SH = w2_ref.shape[0]          # sl * H  (1024)

    x = x_ref[...]                                                 # (bb, SD) f32

    # Fused up-projection: ONE bf16 MXU GEMM, f32 accumulation -> [stu | g | v].
    y = jnp.dot(x.astype(a_ref.dtype), a_ref[...],
                preferred_element_type=jnp.float32)                # (bb, SD + 2*SH)
    stu = y[:, :SD]
    g = y[:, SD:SD + SH]
    v = y[:, SD + SH:]

    x1 = x + stu                                                   # residual 1 (f32, x never rounded)
    h = (g * jax.nn.sigmoid(g)) * v                                # SwiGLU gate in f32 (v5e-safe)

    mlp = jnp.dot(h.astype(w2_ref.dtype), w2_ref[...],
                  preferred_element_type=jnp.float32)              # (bb, SD)
    o_ref[...] = (x1 + mlp).astype(o_ref.dtype)                    # residual 2


def _round_up(a, m):
    return ((a + m - 1) // m) * m


def block_forward(x, A, W2b, max_rows_per_step=1024):
    B, sl, D = x.shape
    SD = sl * D
    NA = A.shape[1]
    SH = W2b.shape[0]
    assert A.shape[0] == SD and NA == SD + 2 * SH and W2b.shape[1] == SD

    # Lane-dense flat layout at the pallas_call boundary (wrapper-side reshape is free).
    x_flat = x.reshape(B, SD)

    # Only pad up to the 8-sublane minimum; larger batches use a ragged last block (no jnp.pad of
    # the full activation tensor -> no extra HBM round trip).
    B_eff = B
    if B < 8:
        x_flat = jnp.pad(x_flat, ((0, 8 - B), (0, 0)))
        B_eff = 8

    # Batch tile: multiple of 8 sublanes; for B > 8 target an even step count so v7x's two
    # TensorCores both get work; cap rows/step so f32 intermediates fit comfortably in VMEM.
    if B_eff <= 8:
        bb = 8
    else:
        nsteps_target = max(2, _round_up(pl.cdiv(B_eff, max_rows_per_step), 2))
        bb = min(_round_up(pl.cdiv(B_eff, nsteps_target), 8),
                 _round_up(max_rows_per_step, 8))
    nsteps = pl.cdiv(B_eff, bb)

    cost = pl.CostEstimate(
        flops=int(2 * B_eff * SD * NA + 2 * B_eff * SH * SD),
        transcendentals=int(B_eff * SH),
        bytes_accessed=int(4 * 2 * B_eff * SD + 2 * (SD * NA + SH * SD)),
    )

    def call(weight_pipeline_mode):
        def wspec(shape):
            if weight_pipeline_mode is None:
                return pl.BlockSpec(shape, lambda i: (0, 0))
            return pl.BlockSpec(shape, lambda i: (0, 0), pipeline_mode=weight_pipeline_mode)

        return pl.pallas_call(
            block_kernel,
            out_shape=jax.ShapeDtypeStruct((B_eff, SD), x.dtype),
            grid=(nsteps,),
            in_specs=[
                pl.BlockSpec((bb, SD), lambda i: (i, 0)),   # x (flat, lane-dense)
                wspec((SD, NA)),                            # fused [M | (I+M)W1b | (I+M)W3b], bf16
                wspec((SH, SD)),                            # block-diag w2^T, bf16
            ],
            out_specs=pl.BlockSpec((bb, SD), lambda i: (i, 0)),
            compiler_params=pltpu.CompilerParams(
                dimension_semantics=("parallel",),          # megacore / v7x dual-TC sharding
                vmem_limit_bytes=48 * 1024 * 1024,          # headroom for 1024-row tiles, all gens
            ),
            cost_estimate=cost,
        )(x_flat, A, W2b)

    try:
        # Grid-invariant weights: single buffer (no point double-buffering constant operands).
        out_flat = call(pl.Buffered(1))
    except Exception:
        # Fallback if this jax version rejects the pipeline_mode override.
        out_flat = call(None)

    return out_flat[:B].reshape(B, sl, D)


# ------------------------ pure-JAX reference (unfolded operators, f32) ------------------------
def block_reference(x, G, Wt, w1, w3, w2):
    u = jnp.einsum("cts,bsd->bctd", G, x)
    stu = jnp.einsum("bctd,cde->bte", u, Wt)
    x1 = x + stu
    g = x1 @ w1.T
    h = (g * jax.nn.sigmoid(g)) * (x1 @ w3.T)
    return x1 + h @ w2.T


if __name__ == "__main__":
    cfg = Configs()
    B, sl, D, H = 2, cfg.sl, cfg.n_embd, cfg.scale * cfg.n_embd

    key = jax.random.PRNGKey(0)
    ks = jax.random.split(key, 8)
    init = lambda k, shp: 0.02 * jax.random.normal(k, shp, jnp.float32)

    x = jax.random.normal(ks[0], (B, sl, D), jnp.float32)
    m_u = init(ks[1], (cfg.k_u, cfg.d_out, cfg.d_in))
    m_phi_plus = init(ks[2], (cfg.num_eigh, cfg.d_out, cfg.d_in))
    m_phi_minus = init(ks[3], (cfg.num_eigh, cfg.d_out, cfg.d_in))
    # m_y is zero-initialized and compute_ar sees y == zeros -> its term is exactly zero.
    w1 = init(ks[4], (H, D))   # nn.Linear(n_embd, h_dim).weight
    w3 = init(ks[5], (H, D))   # gate proj
    w2 = init(ks[6], (D, H))   # nn.Linear(h_dim, n_embd).weight

    sigma, phi = get_top_eigh(cfg.sl, cfg.num_eigh, cfg.use_hankel_L)
    G, Wt = build_stu_operators(cfg, m_u, m_phi_plus, m_phi_minus, sigma, phi)
    A, W2b = fold_block_operators(cfg, G, Wt, w1, w3, w2)

    out = jax.block_until_ready(block_forward(x, A, W2b))
    ref = block_reference(x, G, Wt, w1, w3, w2)
    assert out.shape == (B, sl, D)
    # bf16 MXU inputs with f32 accumulation (per perf review) -> tolerance loosened 1e-3 -> 1e-2.
    assert jnp.allclose(out, ref, rtol=1e-2, atol=1e-2), "Pallas kernel mismatch vs JAX reference"
    print("KERNEL_OK")
</pallas_src>

<mosaic_0001>
module attributes {stable_mosaic.version = 11 : i64} {
  func.func @block_kernel(%arg0: i32, %arg1: memref<8x256xf32, #tpu.memory_space<vmem>>, %arg2: memref<256x2304xbf16, #tpu.memory_space<vmem>>, %arg3: memref<1024x256xbf16, #tpu.memory_space<vmem>>, %arg4: memref<8x256xf32, #tpu.memory_space<vmem>>) attributes {dimension_semantics = [#tpu.dimension_semantics<parallel>], iteration_bounds = array<i64: 1>, scalar_prefetch = 0 : i64, scratch_operands = 0 : i64, tpu.core_type = #tpu.core_type<tc>, window_params = [{transform_indices = @transform_0, window_bounds = array<i64: 8, 256>}, {pipeline_mode = #tpu.pipeline_mode<synchronous>, transform_indices = @transform_1, window_bounds = array<i64: 256, 2304>}, {pipeline_mode = #tpu.pipeline_mode<synchronous>, transform_indices = @transform_2, window_bounds = array<i64: 1024, 256>}, {transform_indices = @transform_3, window_bounds = array<i64: 8, 256>}]} {
    %c0 = arith.constant 0 : index
    %c0_0 = arith.constant 0 : index
    %0 = vector.load %arg1[%c0, %c0_0] : memref<8x256xf32, #tpu.memory_space<vmem>>, vector<8x256xf32>
    %1 = arith.truncf %0 : vector<8x256xf32> to vector<8x256xbf16>
    %c0_1 = arith.constant 0 : index
    %c0_2 = arith.constant 0 : index
    %2 = vector.load %arg2[%c0_1, %c0_2] : memref<256x2304xbf16, #tpu.memory_space<vmem>>, vector<256x2304xbf16>
    %cst = arith.constant dense<0.000000e+00> : vector<8x2304xf32>
    %3 = tpu.matmul %1, %2, %cst {dimension_numbers = #tpu.dot_dimension_numbers<[1], [0], [0], [1], [0, 0, 1, 1], [], []>} : vector<8x256xbf16>, vector<256x2304xbf16>, vector<8x2304xf32> -> vector<8x2304xf32>
    %4 = vector.extract_strided_slice %3 {offsets = [0, 0], sizes = [8, 256], strides = [1, 1]} : vector<8x2304xf32> to vector<8x256xf32>
    %5 = vector.extract_strided_slice %3 {offsets = [0, 256], sizes = [8, 1024], strides = [1, 1]} : vector<8x2304xf32> to vector<8x1024xf32>
    %6 = vector.extract_strided_slice %3 {offsets = [0, 1280], sizes = [8, 1024], strides = [1, 1]} : vector<8x2304xf32> to vector<8x1024xf32>
    %7 = arith.addf %0, %4 : vector<8x256xf32>
    %8 = arith.negf %5 : vector<8x1024xf32>
    %9 = math.exp %8 : vector<8x1024xf32>
    %cst_3 = arith.constant 1.000000e+00 : f32
    %10 = vector.broadcast %cst_3 : f32 to vector<8x1024xf32>
    %11 = arith.addf %10, %9 : vector<8x1024xf32>
    %12 = arith.divf %10, %11 : vector<8x1024xf32>
    %13 = arith.mulf %5, %12 : vector<8x1024xf32>
    %14 = arith.mulf %13, %6 : vector<8x1024xf32>
    %15 = arith.truncf %14 : vector<8x1024xf32> to vector<8x1024xbf16>
    %c0_4 = arith.constant 0 : index
    %c0_5 = arith.constant 0 : index
    %16 = vector.load %arg3[%c0_4, %c0_5] : memref<1024x256xbf16, #tpu.memory_space<vmem>>, vector<1024x256xbf16>
    %cst_6 = arith.constant dense<0.000000e+00> : vector<8x256xf32>
    %17 = tpu.matmul %15, %16, %cst_6 {dimension_numbers = #tpu.dot_dimension_numbers<[1], [0], [0], [1], [0, 0, 1, 1], [], []>} : vector<8x1024xbf16>, vector<1024x256xbf16>, vector<8x256xf32> -> vector<8x256xf32>
    %18 = arith.addf %7, %17 : vector<8x256xf32>
    %c0_7 = arith.constant 0 : index
    %c0_8 = arith.constant 0 : index
    %19 = vector.load %arg4[%c0_7, %c0_8] : memref<8x256xf32, #tpu.memory_space<vmem>>, vector<8x256xf32>
    tpu.vector_store %arg4[%c0_7, %c0_8], %18 {strides = array<i32>} : memref<8x256xf32, #tpu.memory_space<vmem>>, vector<8x256xf32>,
    return
  }
  func.func @transform_0(%arg0: i32) -> (i32, i32) {
    %c0_i32 = arith.constant 0 : i32
    %c0_i32_0 = arith.constant 0 : i32
    return %arg0, %c0_i32 : i32, i32
  }
  func.func @transform_1(%arg0: i32) -> (i32, i32) {
    %c0_i32 = arith.constant 0 : i32
    %c0_i32_0 = arith.constant 0 : i32
    %c0_i32_1 = arith.constant 0 : i32
    return %c0_i32, %c0_i32_0 : i32, i32
  }
  func.func @transform_2(%arg0: i32) -> (i32, i32) {
    %c0_i32 = arith.constant 0 : i32
    %c0_i32_0 = arith.constant 0 : i32
    %c0_i32_1 = arith.constant 0 : i32
    return %c0_i32, %c0_i32_0 : i32, i32
  }
  func.func @transform_3(%arg0: i32) -> (i32, i32) {
    %c0_i32 = arith.constant 0 : i32
    %c0_i32_0 = arith.constant 0 : i32
    return %arg0, %c0_i32 : i32, i32
  }
}

module attributes {stable_mosaic.version = 11 : i64} {
  func.func @block_kernel(%arg0: i32, %arg1: memref<8x256xf32, #tpu.memory_space<vmem>>, %arg2: memref<256x2304xbf16, #tpu.memory_space<vmem>>, %arg3: memref<1024x256xbf16, #tpu.memory_space<vmem>>, %arg4: memref<8x256xf32, #tpu.memory_space<vmem>>) attributes {dimension_semantics = [#tpu.dimension_semantics<parallel>], iteration_bounds = array<i64: 1>, scalar_prefetch = 0 : i64, scratch_operands = 0 : i64, tpu.core_type = #tpu.core_type<tc>, window_params = [{transform_indices = @transform_0, window_bounds = array<i64: 8, 256>}, {pipeline_mode = #tpu.pipeline_mode<synchronous>, transform_indices = @transform_1, window_bounds = array<i64: 256, 2304>}, {pipeline_mode = #tpu.pipeline_mode<synchronous>, transform_indices = @transform_2, window_bounds = array<i64: 1024, 256>}, {transform_indices = @transform_3, window_bounds = array<i64: 8, 256>}]} {
    %c0 = arith.constant 0 : index
    %c0_0 = arith.constant 0 : index
    %0 = vector.load %arg1[%c0, %c0_0] : memref<8x256xf32, #tpu.memory_space<vmem>>, vector<8x256xf32>
    %1 = arith.truncf %0 : vector<8x256xf32> to vector<8x256xbf16>
    %c0_1 = arith.constant 0 : index
    %c0_2 = arith.constant 0 : index
    %2 = vector.load %arg2[%c0_1, %c0_2] : memref<256x2304xbf16, #tpu.memory_space<vmem>>, vector<256x2304xbf16>
    %cst = arith.constant dense<0.000000e+00> : vector<8x2304xf32>
    %3 = tpu.matmul %1, %2, %cst {dimension_numbers = #tpu.dot_dimension_numbers<[1], [0], [0], [1], [0, 0, 1, 1], [], []>} : vector<8x256xbf16>, vector<256x2304xbf16>, vector<8x2304xf32> -> vector<8x2304xf32>
    %4 = vector.extract_strided_slice %3 {offsets = [0, 0], sizes = [8, 256], strides = [1, 1]} : vector<8x2304xf32> to vector<8x256xf32>
    %5 = vector.extract_strided_slice %3 {offsets = [0, 256], sizes = [8, 1024], strides = [1, 1]} : vector<8x2304xf32> to vector<8x1024xf32>
    %6 = vector.extract_strided_slice %3 {offsets = [0, 1280], sizes = [8, 1024], strides = [1, 1]} : vector<8x2304xf32> to vector<8x1024xf32>
    %7 = arith.addf %0, %4 : vector<8x256xf32>
    %8 = arith.negf %5 : vector<8x1024xf32>
    %9 = math.exp %8 : vector<8x1024xf32>
    %cst_3 = arith.constant 1.000000e+00 : f32
    %10 = vector.broadcast %cst_3 : f32 to vector<8x1024xf32>
    %11 = arith.addf %10, %9 : vector<8x1024xf32>
    %12 = arith.divf %10, %11 : vector<8x1024xf32>
    %13 = arith.mulf %5, %12 : vector<8x1024xf32>
    %14 = arith.mulf %13, %6 : vector<8x1024xf32>
    %15 = arith.truncf %14 : vector<8x1024xf32> to vector<8x1024xbf16>
    %c0_4 = arith.constant 0 : index
    %c0_5 = arith.constant 0 : index
    %16 = vector.load %arg3[%c0_4, %c0_5] : memref<1024x256xbf16, #tpu.memory_space<vmem>>, vector<1024x256xbf16>
    %cst_6 = arith.constant dense<0.000000e+00> : vector<8x256xf32>
    %17 = tpu.matmul %15, %16, %cst_6 {dimension_numbers = #tpu.dot_dimension_numbers<[1], [0], [0], [1], [0, 0, 1, 1], [], []>} : vector<8x1024xbf16>, vector<1024x256xbf16>, vector<8x256xf32> -> vector<8x256xf32>
    %18 = arith.addf %7, %17 : vector<8x256xf32>
    %c0_7 = arith.constant 0 : index
    %c0_8 = arith.constant 0 : index
    %19 = vector.load %arg4[%c0_7, %c0_8] : memref<8x256xf32, #tpu.memory_space<vmem>>, vector<8x256xf32>
    tpu.vector_store %arg4[%c0_7, %c0_8], %18 {strides = array<i32>} : memref<8x256xf32, #tpu.memory_space<vmem>>, vector<8x256xf32>,
    return
  }
  func.func @transform_0(%arg0: i32) -> (i32, i32) {
    %c0_i32 = arith.constant 0 : i32
    %c0_i32_0 = arith.constant 0 : i32
    return %arg0, %c0_i32 : i32, i32
  }
  func.func @transform_1(%arg0: i32) -> (i32, i32) {
    %c0_i32 = arith.constant 0 : i32
    %c0_i32_0 = arith.constant 0 : i32
    %c0_i32_1 = arith.constant 0 : i32
    return %c0_i32, %c0_i32_0 : i32, i32
  }
  func.func @transform_2(%arg0: i32) -> (i32, i32) {
    %c0_i32 = arith.constant 0 : i32
    %c0_i32_0 = arith.constant 0 : i32
    %c0_i32_1 = arith.constant 0 : i32
    return %c0_i32, %c0_i32_0 : i32, i32
  }
  func.func @transform_3(%arg0: i32) -> (i32, i32) {
    %c0_i32 = arith.constant 0 : i32
    %c0_i32_0 = arith.constant 0 : i32
    return %arg0, %c0_i32 : i32, i32
  }
}

</mosaic_0001>

<bundles_post_ra>
// kernel: tpu_custom_call.1
= control target key start
LH: loop header
LB: loop body
LE: loop exit
PB: predicated region body
PF: predicated region fallthrough
CT: control target
= control target key end

     0   :  { %8 = vsyncpa [#allocation3], 0  ;;  %s4457_s0 = inlined_call_operand.hbm [shape: f32[8,256], index: 0, kind: input, shape index: {}]   ;;  %s4458_s1 = inlined_call_operand.hbm [shape: bf16[256,2304], index: 1, kind: input, shape index: {}]   ;;  %s4459_s2 = inlined_call_operand.hbm [shape: bf16[1024,256], index: 2, kind: input, shape index: {}]   ;;  %s4460_s3 = inlined_call_operand.hbm [shape: f32[8,256], index: 3, kind: output, shape index: {}]  }
   0x1   :  { %9 = vsyncpa [#allocation6], 0 }
   0x2   :  { %10 = vsyncpa [#allocation4], 0  ;;  %s4357_s12 = smov [#allocation5]  }
   0x3   :  { %s26_s13 = sshll.u32 %s4357_s12, 4  ;;  %s27_s13 = int_to_ptr.vmem [resolvable:$true] %s26_s13 }
   0x4   :  { %s4279_s14 = scalar_lea.vmem %s27_s13, 36864  ;;  %p4284_p1 = scmp.lt.s32.totalorder %s27_s13, %s27_s13 }
   0x5   :  { %p4280_p0 = scmp.ne.s32.totalorder %s27_s13, %s4279_s14  ;;  %p4285_p2 = scmp.lt.s32.totalorder %s4279_s14, %s4279_s14 }
   0x7   :  { %p4286_p3 = por %p4285_p2, %p4284_p1 }
   0x9   :  { %p4287_p4 = pnand %p4286_p3, %p4280_p0 }
   0xb   :  { %4290 = shalt.err (!%p4287_p4)
}
   0xc   :  { %s4358_s15 = smov 1152   ;;  %s4359_s16 = smov 72  }
   0xd   :  { %32 = dma.hbm_to_vmem [thread:$0]  %s4458_s1, 36864, %s27_s13, [#allocation6], %s4358_s15, %s4358_s15, %s4359_s16  }
   0xe   :  { %s4360_s19 = smov [#allocation2]   ;;  %s4361_s21 = smov [#allocation7]  }
   0xf   :  { %s17_s20 = sshll.u32 %s4360_s19, 4  ;;  %s38_s22 = sshll.u32 %s4361_s21, 4  ;;  %s18_s20 = int_to_ptr.vmem [resolvable:$true] %s17_s20  ;;  %s39_s22 = int_to_ptr.vmem [resolvable:$true] %s38_s22 }
  0x10   :  { %s4299_s23 = scalar_lea.vmem %s18_s20, 256  ;;  %p4304_p6 = scmp.lt.s32.totalorder %s18_s20, %s18_s20 }
  0x11   :  { %p4300_p5 = scmp.ne.s32.totalorder %s18_s20, %s4299_s23  ;;  %p4305_p7 = scmp.lt.s32.totalorder %s4299_s23, %s4299_s23 }
  0x13   :  { %p4306_p8 = por %p4305_p7, %p4304_p6 }
  0x15   :  { %p4307_p9 = pnand %p4306_p8, %p4300_p5 }
  0x17   :  { %4310 = shalt.err (!%p4307_p9)
}
  0x18   :  { %20 = dma.hbm_to_vmem [thread:$0]  %s4457_s0, 256, %s18_s20, [#allocation3]  }
  0x19   :  { %s4319_s26 = scalar_lea.vmem %s39_s22, 16384  ;;  %p4324_p11 = scmp.lt.s32.totalorder %s39_s22, %s39_s22 }
  0x1a   :  { %p4320_p10 = scmp.ne.s32.totalorder %s39_s22, %s4319_s26  ;;  %p4325_p12 = scmp.lt.s32.totalorder %s4319_s26, %s4319_s26 }
  0x1c   :  { %p4326_p13 = por %p4325_p12, %p4324_p11 }
  0x1e   :  { %p4327_p0 = pnand %p4326_p13, %p4320_p10 }
  0x20   :  { %4330 = shalt.err (!%p4327_p0)
}
  0x21   :  { %s4362_s1 = smov 128   ;;  %s4363_s27 = smov 8  }
  0x22   :  { %44 = dma.hbm_to_vmem [thread:$0]  %s4459_s2, 16384, %s39_s22, [#allocation6], %s4362_s1, %s4362_s1, %s4363_s27  }
  0x23   :  { %4351 = dma.done.wait [#allocation3], 256  }
  0x24   :  { %4352 = vsyncadd [#allocation3], 4294967040 }
  0x25   :  { %4353 = dma.done.wait [#allocation6], 53248  }
  0x26   :  { %4354 = vsyncadd [#allocation6], 4294914048  ;;  %v3613_v0 = vld [vmem:[#allocation5 + $0x3f4] ss:$72 sps:$4 sm:$0xff]   ;;  %v3617_v2 = vld [vmem:[#allocation5 + $0x3f0] ss:$72 sps:$4 sm:$0xff]  }
  0x27   :  { %v3615_v1 = vld [vmem:[#allocation5 + $0x3fc] ss:$72 sps:$4 sm:$0xff]   ;;  %1786 = vmatprep.subr.bf16.mxu0 %v3613_v0  ;;  %v3618_v3 = vld [vmem:[#allocation5 + $0x3f8] ss:$72 sps:$4 sm:$0xff]   ;;  %v3621_v5 = vld [vmem:[#allocation5 + $0x36c] ss:$72 sps:$4 sm:$0xff]  }
  0x28   :  { %1827 = vmatprep.subr.bf16.mxu1 %v3615_v1  ;;  %v3619_v4 = vld [vmem:[#allocation5 + $0x364] ss:$72 sps:$4 sm:$0xff]   ;;  %1787 = vmatpush1.bf16.msra.mxu0 %v3617_v2  ;;  %v3623_v6 = vld [vmem:[#allocation5 + $0x360] ss:$72 sps:$4 sm:$0xff]   ;;  %v3625_v8 = vld [vmem:[#allocation5 + $0x2d4] ss:$72 sps:$4 sm:$0xff]  }
  0x29   :  { %1828 = vmatpush1.bf16.msra.mxu1 %v3618_v3  ;;  %1788 = vmatprep.subr.bf16.mxu0 %v3619_v4  ;;  %v3624_v7 = vld [vmem:[#allocation5 + $0x368] ss:$72 sps:$4 sm:$0xff]   ;;  %v3627_v9 = vld [vmem:[#allocation5 + $0x2dc] ss:$72 sps:$4 sm:$0xff]   ;;  %v3630_v11 = vld [vmem:[#allocation5 + $0x2d8] ss:$72 sps:$4 sm:$0xff]  }
  0x2a   :  { %1829 = vmatprep.subr.bf16.mxu1 %v3621_v5  ;;  %v3629_v10 = vld [vmem:[#allocation5 + $0x2d0] ss:$72 sps:$4 sm:$0xff]   ;;  %v3631_v12 = vld [vmem:[#allocation5 + $0x244] ss:$72 sps:$4 sm:$0xff]   ;;  %v3635_v14 = vld [vmem:[#allocation5 + $0x240] ss:$72 sps:$4 sm:$0xff]  }
  0x2b   :  { %v3633_v13 = vld [vmem:[#allocation5 + $0x24c] ss:$72 sps:$4 sm:$0xff]   ;;  %v3636_v15 = vld [vmem:[#allocation5 + $0x248] ss:$72 sps:$4 sm:$0xff]   ;;  %v3639_v17 = vld [vmem:[#allocation5 + $0x1bc] ss:$72 sps:$4 sm:$0xff]  }
  0x2c   :  { %1789 = vmatpush1.bf16.msra.mxu0 %v3623_v6  ;;  %v3637_v16 = vld [vmem:[#allocation5 + $0x1b4] ss:$72 sps:$4 sm:$0xff]   ;;  %v3641_v18 = vld [vmem:[#allocation5 + $0x1b0] ss:$72 sps:$4 sm:$0xff]   ;;  %v3643_v20 = vld [vmem:[#allocation5 + $0x124] ss:$72 sps:$4 sm:$0xff]  }
  0x2d   :  { %1830 = vmatpush1.bf16.msra.mxu1 %v3624_v7  ;;  %1790 = vmatprep.subr.bf16.mxu0 %v3625_v8  ;;  %v3642_v19 = vld [vmem:[#allocation5 + $0x1b8] ss:$72 sps:$4 sm:$0xff]   ;;  %v3645_v21 = vld [vmem:[#allocation5 + $0x12c] ss:$72 sps:$4 sm:$0xff]   ;;  %v3648_v23 = vld [vmem:[#allocation5 + $0x128] ss:$72 sps:$4 sm:$0xff]  }
  0x2e   :  { %1831 = vmatprep.subr.bf16.mxu1 %v3627_v9  ;;  %v3647_v22 = vld [vmem:[#allocation5 + $0x120] ss:$72 sps:$4 sm:$0xff]   ;;  %v3649_v24 = vld [vmem:[#allocation5 + $0x94] ss:$72 sps:$4 sm:$0xff]   ;;  %v3653_v26 = vld [vmem:[#allocation5 + $0x90] ss:$72 sps:$4 sm:$0xff]  }
  0x2f   :  { %v3651_v25 = vld [vmem:[#allocation5 + $0x9c] ss:$72 sps:$4 sm:$0xff]   ;;  %v3654_v27 = vld [vmem:[#allocation5 + $0x98] ss:$72 sps:$4 sm:$0xff]   ;;  %v3657_v29 = vld [vmem:[#allocation5 + $0xc] ss:$72 sps:$4 sm:$0xff]  }
  0x30   :  { %1791 = vmatpush1.bf16.msra.mxu0 %v3629_v10  ;;  %v3655_v28 = vld [vmem:[#allocation5 + $0x4] ss:$72 sps:$4 sm:$0xff]   ;;  %v3659_v30 = vld [vmem:[#allocation5] ss:$72 sps:$4 sm:$0xff]   ;;  %v3661_v32 = vld [vmem:[#allocation5 + $0x874] ss:$72 sps:$4 sm:$0xff]  }
  0x31   :  { %1832 = vmatpush1.bf16.msra.mxu1 %v3630_v11  ;;  %1792 = vmatprep.subr.bf16.mxu0 %v3631_v12  ;;  %v3660_v31 = vld [vmem:[#allocation5 + $0x8] ss:$72 sps:$4 sm:$0xff]   ;;  %v3663_v33 = vld [vmem:[#allocation5 + $0x87c] ss:$72 sps:$4 sm:$0xff]   ;;  %v3666_v35 = vld [vmem:[#allocation5 + $0x878] ss:$72 sps:$4 sm:$0xff]  }
  0x32   :  { %1833 = vmatprep.subr.bf16.mxu1 %v3633_v13  ;;  %v3665_v34 = vld [vmem:[#allocation5 + $0x870] ss:$72 sps:$4 sm:$0xff]   ;;  %v3667_v36 = vld [vmem:[#allocation5 + $0x7e4] ss:$72 sps:$4 sm:$0xff]   ;;  %v3671_v38 = vld [vmem:[#allocation5 + $0x7e0] ss:$72 sps:$4 sm:$0xff]  }
  0x33   :  { %v3669_v37 = vld [vmem:[#allocation5 + $0x7ec] ss:$72 sps:$4 sm:$0xff]   ;;  %v3672_v39 = vld [vmem:[#allocation5 + $0x7e8] ss:$72 sps:$4 sm:$0xff]   ;;  %v3675_v41 = vld [vmem:[#allocation5 + $0x75c] ss:$72 sps:$4 sm:$0xff]  }
  0x34   :  { %1793 = vmatpush1.bf16.msra.mxu0 %v3635_v14  ;;  %v3673_v40 = vld [vmem:[#allocation5 + $0x754] ss:$72 sps:$4 sm:$0xff]   ;;  %v3677_v42 = vld [vmem:[#allocation5 + $0x750] ss:$72 sps:$4 sm:$0xff]   ;;  %v3679_v44 = vld [vmem:[#allocation5 + $0x6c4] ss:$72 sps:$4 sm:$0xff]  }
  0x35   :  { %1834 = vmatpush1.bf16.msra.mxu1 %v3636_v15  ;;  %1794 = vmatprep.subr.bf16.mxu0 %v3637_v16  ;;  %v3678_v43 = vld [vmem:[#allocation5 + $0x758] ss:$72 sps:$4 sm:$0xff]   ;;  %v3681_v45 = vld [vmem:[#allocation5 + $0x6cc] ss:$72 sps:$4 sm:$0xff]   ;;  %v3684_v49 = vld [vmem:[#allocation5 + $0x6c8] ss:$72 sps:$4 sm:$0xff]  }
  0x36   :  { %1835 = vmatprep.subr.bf16.mxu1 %v3639_v17  ;;  %v55_v46 = vld [vmem:[#allocation2 + $0x8] sm:$0xff]  ;;  %v3683_v48 = vld [vmem:[#allocation5 + $0x6c0] ss:$72 sps:$4 sm:$0xff]   ;;  %v3691_v54 = vld [vmem:[#allocation5 + $0x5a4] ss:$72 sps:$4 sm:$0xff]   ;;  %s4364_s0 = smov [#allocation8]  }
  0x37   :  { %v4394_v47 = vpack.c.bf16 %v55_v46, %v55_v46  ;;  %v3685_v50 = vld [vmem:[#allocation5 + $0x634] ss:$72 sps:$4 sm:$0xff]   ;;  %v3689_v52 = vld [vmem:[#allocation5 + $0x630] ss:$72 sps:$4 sm:$0xff]   ;;  %v3695_v56 = vld [vmem:[#allocation5 + $0x5a0] ss:$72 sps:$4 sm:$0xff]  }
  0x38   :  { %1795 = vmatpush1.bf16.msra.mxu0 %v3641_v18  ;;  %v3687_v51 = vld [vmem:[#allocation5 + $0x63c] ss:$72 sps:$4 sm:$0xff]   ;;  %v3690_v53 = vld [vmem:[#allocation5 + $0x638] ss:$72 sps:$4 sm:$0xff]   ;;  %v3693_v55 = vld [vmem:[#allocation5 + $0x5ac] ss:$72 sps:$4 sm:$0xff]  }
  0x39   :  { %1836 = vmatpush1.bf16.msra.mxu1 %v3642_v19  ;;  %1796 = vmatprep.subr.bf16.mxu0 %v3643_v20  ;;  %v3696_v57 = vld [vmem:[#allocation5 + $0x5a8] ss:$72 sps:$4 sm:$0xff]   ;;  %v3697_v58 = vld [vmem:[#allocation5 + $0x514] ss:$72 sps:$4 sm:$0xff]   ;;  %v3702_v61 = vld [vmem:[#allocation5 + $0x518] ss:$72 sps:$4 sm:$0xff]  }
  0x3a   :  { %1837 = vmatprep.subr.bf16.mxu1 %v3645_v21  ;;  %1818 = vmatprep.mubr.bf16.mxu0 %v4394_v47  ;;  %v3699_v59 = vld [vmem:[#allocation5 + $0x51c] ss:$72 sps:$4 sm:$0xff]   ;;  %v3701_v60 = vld [vmem:[#allocation5 + $0x510] ss:$72 sps:$4 sm:$0xff]   ;;  %v3705_v63 = vld [vmem:[#allocation5 + $0x48c] ss:$72 sps:$4 sm:$0xff]  }
  0x3b   :  { %1859 = vmatprep.mubr.bf16.mxu1 %v4394_v47  ;;  %v3703_v62 = vld [vmem:[#allocation5 + $0x484] ss:$72 sps:$4 sm:$0xff]   ;;  %v3707_v0 = vld [vmem:[#allocation5 + $0x480] ss:$72 sps:$4 sm:$0xff]   ;;  %v54_v2 = vld [vmem:[#allocation2] sm:$0xff]  ;;  %s3171_s2 = sshll.u32 %s4364_s0, 4  ;;  %s3172_s2 = int_to_ptr.vmem [resolvable:$true] %s3171_s2 }
  0x3c   :  { %1797 = vmatpush1.bf16.msra.mxu0 %v3647_v22  ;;  %v3708_v1 = vld [vmem:[#allocation5 + $0x488] ss:$72 sps:$4 sm:$0xff]   ;;  %v3711_v3 = vld [vmem:[#allocation5 + $0x404] ss:$72 sps:$4 sm:$0xff]   ;;  %v4398_v5 = vpack.c.bf16 %v54_v2, %v54_v2  ;;  %v3717_v8 = vld [vmem:[#allocation5 + $0x374] ss:$72 sps:$4 sm:$0xff]   ;;  %p4336_p2 = scmp.lt.s32.totalorder %s3172_s2, %s3172_s2 }
  0x3d   :  { %1838 = vmatpush1.bf16.msra.mxu1 %v3648_v23  ;;  %1798 = vmatprep.subr.bf16.mxu0 %v3649_v24  ;;  %v3714_v4 = vld [vmem:[#allocation5 + $0x40c] ss:$72 sps:$4 sm:$0xff]   ;;  %v3709_v6 = vld [vmem:[#allocation5 + $0x400] ss:$72 sps:$4 sm:$0xff]   ;;  %v3720_v9 = vld [vmem:[#allocation5 + $0x37c] ss:$72 sps:$4 sm:$0xff]  }
  0x3e   :  { %1839 = vmatprep.subr.bf16.mxu1 %v3651_v25  ;;  %v3712_v7 = vld [vmem:[#allocation5 + $0x408] ss:$72 sps:$4 sm:$0xff]   ;;  %v3718_v11 = vld [vmem:[#allocation5 + $0x378] ss:$72 sps:$4 sm:$0xff]   ;;  %v3723_v12 = vld [vmem:[#allocation5 + $0x2e4] ss:$72 sps:$4 sm:$0xff]  }
  0x3f   :  { %v3715_v10 = vld [vmem:[#allocation5 + $0x370] ss:$72 sps:$4 sm:$0xff]   ;;  %v3726_v13 = vld [vmem:[#allocation5 + $0x2ec] ss:$72 sps:$4 sm:$0xff]   ;;  %v3721_v14 = vld [vmem:[#allocation5 + $0x2e0] ss:$72 sps:$4 sm:$0xff]  }
  0x40   :  { %1799 = vmatpush1.bf16.msra.mxu0 %v3653_v26  ;;  %v3724_v15 = vld [vmem:[#allocation5 + $0x2e8] ss:$72 sps:$4 sm:$0xff]   ;;  %v3729_v16 = vld [vmem:[#allocation5 + $0x254] ss:$72 sps:$4 sm:$0xff]   ;;  %v3730_v19 = vld [vmem:[#allocation5 + $0x258] ss:$72 sps:$4 sm:$0xff]  }
  0x41   :  { %1840 = vmatpush1.bf16.msra.mxu1 %v3654_v27  ;;  %1800 = vmatprep.subr.bf16.mxu0 %v3655_v28  ;;  %v3732_v17 = vld [vmem:[#allocation5 + $0x25c] ss:$72 sps:$4 sm:$0xff]   ;;  %v3727_v18 = vld [vmem:[#allocation5 + $0x250] ss:$72 sps:$4 sm:$0xff]   ;;  %v3738_v21 = vld [vmem:[#allocation5 + $0x1cc] ss:$72 sps:$4 sm:$0xff]  }
  0x42   :  { %1841 = vmatprep.subr.bf16.mxu1 %v3657_v29  ;;  %v3735_v20 = vld [vmem:[#allocation5 + $0x1c4] ss:$72 sps:$4 sm:$0xff]   ;;  %v3733_v22 = vld [vmem:[#allocation5 + $0x1c0] ss:$72 sps:$4 sm:$0xff]   ;;  %v3741_v24 = vld [vmem:[#allocation5 + $0x134] ss:$72 sps:$4 sm:$0xff]  }
  0x43   :  { %v3736_v23 = vld [vmem:[#allocation5 + $0x1c8] ss:$72 sps:$4 sm:$0xff]   ;;  %v3744_v25 = vld [vmem:[#allocation5 + $0x13c] ss:$72 sps:$4 sm:$0xff]   ;;  %v3742_v27 = vld [vmem:[#allocation5 + $0x138] ss:$72 sps:$4 sm:$0xff]  }
  0x44   :  { %1801 = vmatpush1.bf16.msra.mxu0 %v3659_v30  ;;  %v3739_v26 = vld [vmem:[#allocation5 + $0x130] ss:$72 sps:$4 sm:$0xff]   ;;  %v3747_v28 = vld [vmem:[#allocation5 + $0xa4] ss:$72 sps:$4 sm:$0xff]   ;;  %v3745_v30 = vld [vmem:[#allocation5 + $0xa0] ss:$72 sps:$4 sm:$0xff]  }
  0x45   :  { %1842 = vmatpush1.bf16.msra.mxu1 %v3660_v31  ;;  %1802 = vmatprep.subr.bf16.mxu0 %v3661_v32  ;;  %v3750_v29 = vld [vmem:[#allocation5 + $0xac] ss:$72 sps:$4 sm:$0xff]   ;;  %v3748_v31 = vld [vmem:[#allocation5 + $0xa8] ss:$72 sps:$4 sm:$0xff]   ;;  %v3804_v2 = vld [vmem:[#allocation5 + $0x49c] ss:$72 sps:$4 sm:$0xff]  }
  0x46   :  { %1843 = vmatprep.subr.bf16.mxu1 %v3663_v33  ;;  %v3753_v32 = vld [vmem:[#allocation5 + $0x14] ss:$72 sps:$4 sm:$0xff]   ;;  %v3769_v46 = vld [vmem:[#allocation5 + $0x760] ss:$72 sps:$4 sm:$0xff]   ;;  %s4331_s30 = scalar_lea.vmem %s3172_s2, 256 }
  0x47   :  { %v3756_v33 = vld [vmem:[#allocation5 + $0x1c] ss:$72 sps:$4 sm:$0xff]   ;;  %p4332_p1 = scmp.ne.s32.totalorder %s3172_s2, %s4331_s30  ;;  %p4337_p3 = scmp.lt.s32.totalorder %s4331_s30, %s4331_s30 }
  0x48   :  { %1803 = vmatpush2.bf16.msra.mxu0 %v3665_v34  ;;  %v3751_v34 = vld [vmem:[#allocation5 + $0x10] ss:$72 sps:$4 sm:$0xff]  }
  0x49   :  { %1844 = vmatpush2.bf16.msra.mxu1 %v3666_v35  ;;  %1804 = vmatprep.subr.bf16.mxu0 %v3667_v36  ;;  %v3754_v35 = vld [vmem:[#allocation5 + $0x18] ss:$72 sps:$4 sm:$0xff]   ;;  %v3759_v36 = vld [vmem:[#allocation5 + $0x884] ss:$72 sps:$4 sm:$0xff]   ;;  %p4338_p4 = por %p4337_p3, %p4336_p2 }
  0x4a   :  { %1845 = vmatprep.subr.bf16.mxu1 %v3669_v37  ;;  %v3762_v37 = vld [vmem:[#allocation5 + $0x88c] ss:$72 sps:$4 sm:$0xff]  }
  0x4b   :  { %p4339_p5 = pnand %p4338_p4, %p4332_p1 }
  0x4c   :  { %1805 = vmatpush2.bf16.msra.mxu0 %v3671_v38  ;;  %v3757_v38 = vld [vmem:[#allocation5 + $0x880] ss:$72 sps:$4 sm:$0xff]  }
  0x4d   :  { %1846 = vmatpush2.bf16.msra.mxu1 %v3672_v39  ;;  %1806 = vmatprep.subr.bf16.mxu0 %v3673_v40  ;;  %v3760_v39 = vld [vmem:[#allocation5 + $0x888] ss:$72 sps:$4 sm:$0xff]   ;;  %v3765_v40 = vld [vmem:[#allocation5 + $0x7f4] ss:$72 sps:$4 sm:$0xff]  }
  0x4e   :  { %1847 = vmatprep.subr.bf16.mxu1 %v3675_v41  ;;  %v3768_v41 = vld [vmem:[#allocation5 + $0x7fc] ss:$72 sps:$4 sm:$0xff]  }
  0x50   :  { %1807 = vmatpush2.bf16.msra.mxu0 %v3677_v42  ;;  %v3763_v42 = vld [vmem:[#allocation5 + $0x7f0] ss:$72 sps:$4 sm:$0xff]  }
  0x51   :  { %1848 = vmatpush2.bf16.msra.mxu1 %v3678_v43  ;;  %1808 = vmatprep.subr.bf16.mxu0 %v3679_v44  ;;  %v3766_v43 = vld [vmem:[#allocation5 + $0x7f8] ss:$72 sps:$4 sm:$0xff]   ;;  %v3771_v44 = vld [vmem:[#allocation5 + $0x764] ss:$72 sps:$4 sm:$0xff]  }
  0x52   :  { %1849 = vmatprep.subr.bf16.mxu1 %v3681_v45  ;;  %v3774_v45 = vld [vmem:[#allocation5 + $0x76c] ss:$72 sps:$4 sm:$0xff]  }
  0x54   :  { %1809 = vmatpush2.bf16.msra.mxu0 %v3683_v48  ;;  %v3772_v48 = vld [vmem:[#allocation5 + $0x768] ss:$72 sps:$4 sm:$0xff]  }
  0x55   :  { %1850 = vmatpush2.bf16.msra.mxu1 %v3684_v49  ;;  %1810 = vmatprep.subr.bf16.mxu0 %v3685_v50  ;;  %v3777_v49 = vld [vmem:[#allocation5 + $0x6d4] ss:$72 sps:$4 sm:$0xff]  }
  0x56   :  { %1851 = vmatprep.subr.bf16.mxu1 %v3687_v51  ;;  %v3780_v50 = vld [vmem:[#allocation5 + $0x6dc] ss:$72 sps:$4 sm:$0xff]   ;;  %v3775_v51 = vld [vmem:[#allocation5 + $0x6d0] ss:$72 sps:$4 sm:$0xff]  }
  0x58   :  { %1811 = vmatpush2.bf16.msra.mxu0 %v3689_v52  ;;  %v3778_v52 = vld [vmem:[#allocation5 + $0x6d8] ss:$72 sps:$4 sm:$0xff]  }
  0x59   :  { %1852 = vmatpush2.bf16.msra.mxu1 %v3690_v53  ;;  %1812 = vmatprep.subr.bf16.mxu0 %v3691_v54  ;;  %v3783_v53 = vld [vmem:[#allocation5 + $0x644] ss:$72 sps:$4 sm:$0xff]  }
  0x5a   :  { %1853 = vmatprep.subr.bf16.mxu1 %v3693_v55  ;;  %v3786_v54 = vld [vmem:[#allocation5 + $0x64c] ss:$72 sps:$4 sm:$0xff]   ;;  %v3781_v55 = vld [vmem:[#allocation5 + $0x640] ss:$72 sps:$4 sm:$0xff]  }
  0x5c   :  { %1813 = vmatpush2.bf16.msra.mxu0 %v3695_v56  ;;  %v3784_v56 = vld [vmem:[#allocation5 + $0x648] ss:$72 sps:$4 sm:$0xff]  }
  0x5d   :  { %1854 = vmatpush2.bf16.msra.mxu1 %v3696_v57  ;;  %1814 = vmatprep.subr.bf16.mxu0 %v3697_v58  ;;  %v3789_v57 = vld [vmem:[#allocation5 + $0x5b4] ss:$72 sps:$4 sm:$0xff]  }
  0x5e   :  { %1855 = vmatprep.subr.bf16.mxu1 %v3699_v59  ;;  %v3792_v58 = vld [vmem:[#allocation5 + $0x5bc] ss:$72 sps:$4 sm:$0xff]   ;;  %v3787_v59 = vld [vmem:[#allocation5 + $0x5b0] ss:$72 sps:$4 sm:$0xff]  }
  0x60   :  { %1815 = vmatpush2.bf16.msra.mxu0 %v3701_v60  ;;  %v3790_v60 = vld [vmem:[#allocation5 + $0x5b8] ss:$72 sps:$4 sm:$0xff]  }
  0x61   :  { %1856 = vmatpush2.bf16.msra.mxu1 %v3702_v61  ;;  %1816 = vmatprep.subr.bf16.mxu0 %v3703_v62  ;;  %v3795_v61 = vld [vmem:[#allocation5 + $0x524] ss:$72 sps:$4 sm:$0xff]  }
  0x62   :  { %1857 = vmatprep.subr.bf16.mxu1 %v3705_v63  ;;  %v3798_v62 = vld [vmem:[#allocation5 + $0x52c] ss:$72 sps:$4 sm:$0xff]   ;;  %v3793_v63 = vld [vmem:[#allocation5 + $0x520] ss:$72 sps:$4 sm:$0xff]  }
  0x64   :  { %1817 = vmatpush2.bf16.msra.mxu0 %v3707_v0  ;;  %v3796_v0 = vld [vmem:[#allocation5 + $0x528] ss:$72 sps:$4 sm:$0xff]  }
  0x65   :  { %1858 = vmatpush2.bf16.msra.mxu1 %v3708_v1  ;;  %1868 = vmatprep.subr.bf16.mxu0 %v3711_v3  ;;  %v3801_v1 = vld [vmem:[#allocation5 + $0x494] ss:$72 sps:$4 sm:$0xff]   ;;  %v3799_v3 = vld [vmem:[#allocation5 + $0x490] ss:$72 sps:$4 sm:$0xff]  }
  0x66   :  { %1909 = vmatprep.subr.bf16.mxu1 %v3714_v4  ;;  %v3802_v4 = vld [vmem:[#allocation5 + $0x498] ss:$72 sps:$4 sm:$0xff]  }
  0x67   :  { %1819 = vmatmul.mubr.bf16.vlgmr.msra.gmra.mxu0 %v4398_v5 }
  0x68   :  { %1860 = vmatmul.mubr.bf16.vlgmr.msra.gmra.mxu1 %v4398_v5  ;;  %1869 = vmatpush1.bf16.msra.mxu0 %v3709_v6  ;;  %v3807_v6 = vld [vmem:[#allocation5 + $0x414] ss:$72 sps:$4 sm:$0xff]  }
  0x69   :  { %1910 = vmatpush1.bf16.msra.mxu1 %v3712_v7  ;;  %1870 = vmatprep.subr.bf16.mxu0 %v3717_v8  ;;  %v3810_v7 = vld [vmem:[#allocation5 + $0x41c] ss:$72 sps:$4 sm:$0xff]   ;;  %v3805_v8 = vld [vmem:[#allocation5 + $0x410] ss:$72 sps:$4 sm:$0xff]  }
  0x6a   :  { %1911 = vmatprep.subr.bf16.mxu1 %v3720_v9  ;;  %1900 = vmatprep.mubr.bf16.mxu0 %v4394_v47  ;;  %v3808_v9 = vld [vmem:[#allocation5 + $0x418] ss:$72 sps:$4 sm:$0xff]  }
  0x6b   :  { %1941 = vmatprep.mubr.bf16.mxu1 %v4394_v47 }
  0x6c   :  { %1871 = vmatpush1.bf16.msra.mxu0 %v3715_v10  ;;  %v3813_v10 = vld [vmem:[#allocation5 + $0x384] ss:$72 sps:$4 sm:$0xff]  }
  0x6d   :  { %1912 = vmatpush1.bf16.msra.mxu1 %v3718_v11  ;;  %1872 = vmatprep.subr.bf16.mxu0 %v3723_v12  ;;  %v3816_v11 = vld [vmem:[#allocation5 + $0x38c] ss:$72 sps:$4 sm:$0xff]   ;;  %v3811_v12 = vld [vmem:[#allocation5 + $0x380] ss:$72 sps:$4 sm:$0xff]  }
  0x6e   :  { %1913 = vmatprep.subr.bf16.mxu1 %v3726_v13  ;;  %v3814_v13 = vld [vmem:[#allocation5 + $0x388] ss:$72 sps:$4 sm:$0xff]  }
  0x70   :  { %1873 = vmatpush1.bf16.msra.mxu0 %v3721_v14  ;;  %v3819_v14 = vld [vmem:[#allocation5 + $0x2f4] ss:$72 sps:$4 sm:$0xff]  }
  0x71   :  { %1914 = vmatpush1.bf16.msra.mxu1 %v3724_v15  ;;  %1874 = vmatprep.subr.bf16.mxu0 %v3729_v16  ;;  %v3822_v15 = vld [vmem:[#allocation5 + $0x2fc] ss:$72 sps:$4 sm:$0xff]   ;;  %v3817_v16 = vld [vmem:[#allocation5 + $0x2f0] ss:$72 sps:$4 sm:$0xff]  }
  0x72   :  { %1915 = vmatprep.subr.bf16.mxu1 %v3732_v17  ;;  %v3820_v17 = vld [vmem:[#allocation5 + $0x2f8] ss:$72 sps:$4 sm:$0xff]  }
  0x74   :  { %1875 = vmatpush1.bf16.msra.mxu0 %v3727_v18  ;;  %v3825_v18 = vld [vmem:[#allocation5 + $0x264] ss:$72 sps:$4 sm:$0xff]  }
  0x75   :  { %1916 = vmatpush1.bf16.msra.mxu1 %v3730_v19  ;;  %1876 = vmatprep.subr.bf16.mxu0 %v3735_v20  ;;  %v3828_v19 = vld [vmem:[#allocation5 + $0x26c] ss:$72 sps:$4 sm:$0xff]   ;;  %v3823_v20 = vld [vmem:[#allocation5 + $0x260] ss:$72 sps:$4 sm:$0xff]  }
  0x76   :  { %1917 = vmatprep.subr.bf16.mxu1 %v3738_v21  ;;  %v3826_v21 = vld [vmem:[#allocation5 + $0x268] ss:$72 sps:$4 sm:$0xff]  }
  0x78   :  { %1877 = vmatpush1.bf16.msra.mxu0 %v3733_v22  ;;  %v3831_v22 = vld [vmem:[#allocation5 + $0x1d4] ss:$72 sps:$4 sm:$0xff]  }
  0x79   :  { %1918 = vmatpush1.bf16.msra.mxu1 %v3736_v23  ;;  %1878 = vmatprep.subr.bf16.mxu0 %v3741_v24  ;;  %v3834_v23 = vld [vmem:[#allocation5 + $0x1dc] ss:$72 sps:$4 sm:$0xff]   ;;  %v3829_v24 = vld [vmem:[#allocation5 + $0x1d0] ss:$72 sps:$4 sm:$0xff]  }
  0x7a   :  { %1919 = vmatprep.subr.bf16.mxu1 %v3744_v25  ;;  %v3832_v25 = vld [vmem:[#allocation5 + $0x1d8] ss:$72 sps:$4 sm:$0xff]  }
  0x7c   :  { %1879 = vmatpush1.bf16.msra.mxu0 %v3739_v26  ;;  %v3837_v26 = vld [vmem:[#allocation5 + $0x144] ss:$72 sps:$4 sm:$0xff]  }
  0x7d   :  { %1920 = vmatpush1.bf16.msra.mxu1 %v3742_v27  ;;  %1880 = vmatprep.subr.bf16.mxu0 %v3747_v28  ;;  %v3840_v27 = vld [vmem:[#allocation5 + $0x14c] ss:$72 sps:$4 sm:$0xff]   ;;  %v3835_v28 = vld [vmem:[#allocation5 + $0x140] ss:$72 sps:$4 sm:$0xff]  }
  0x7e   :  { %1921 = vmatprep.subr.bf16.mxu1 %v3750_v29  ;;  %v3838_v29 = vld [vmem:[#allocation5 + $0x148] ss:$72 sps:$4 sm:$0xff]  }
  0x80   :  { %1881 = vmatpush1.bf16.msra.mxu0 %v3745_v30  ;;  %v3843_v30 = vld [vmem:[#allocation5 + $0xb4] ss:$72 sps:$4 sm:$0xff]  }
  0x81   :  { %1922 = vmatpush1.bf16.msra.mxu1 %v3748_v31  ;;  %1882 = vmatprep.subr.bf16.mxu0 %v3753_v32  ;;  %v3846_v31 = vld [vmem:[#allocation5 + $0xbc] ss:$72 sps:$4 sm:$0xff]   ;;  %v3841_v32 = vld [vmem:[#allocation5 + $0xb0] ss:$72 sps:$4 sm:$0xff]  }
  0x82   :  { %1923 = vmatprep.subr.bf16.mxu1 %v3756_v33  ;;  %v3844_v33 = vld [vmem:[#allocation5 + $0xb8] ss:$72 sps:$4 sm:$0xff]  }
  0x84   :  { %1883 = vmatpush1.bf16.msra.mxu0 %v3751_v34  ;;  %v3849_v34 = vld [vmem:[#allocation5 + $0x24] ss:$72 sps:$4 sm:$0xff]  }
  0x85   :  { %1924 = vmatpush1.bf16.msra.mxu1 %v3754_v35  ;;  %1884 = vmatprep.subr.bf16.mxu0 %v3759_v36  ;;  %v3852_v35 = vld [vmem:[#allocation5 + $0x2c] ss:$72 sps:$4 sm:$0xff]   ;;  %v3847_v36 = vld [vmem:[#allocation5 + $0x20] ss:$72 sps:$4 sm:$0xff]  }
  0x86   :  { %1925 = vmatprep.subr.bf16.mxu1 %v3762_v37  ;;  %v3850_v37 = vld [vmem:[#allocation5 + $0x28] ss:$72 sps:$4 sm:$0xff]  }
  0x88   :  { %1885 = vmatpush2.bf16.msra.mxu0 %v3757_v38  ;;  %v3855_v38 = vld [vmem:[#allocation5 + $0x894] ss:$72 sps:$4 sm:$0xff]  }
  0x89   :  { %1926 = vmatpush2.bf16.msra.mxu1 %v3760_v39  ;;  %1886 = vmatprep.subr.bf16.mxu0 %v3765_v40  ;;  %v3858_v39 = vld [vmem:[#allocation5 + $0x89c] ss:$72 sps:$4 sm:$0xff]   ;;  %v3853_v40 = vld [vmem:[#allocation5 + $0x890] ss:$72 sps:$4 sm:$0xff]  }
  0x8a   :  { %1927 = vmatprep.subr.bf16.mxu1 %v3768_v41  ;;  %v3856_v41 = vld [vmem:[#allocation5 + $0x898] ss:$72 sps:$4 sm:$0xff]  }
  0x8c   :  { %1887 = vmatpush2.bf16.msra.mxu0 %v3763_v42  ;;  %v3861_v42 = vld [vmem:[#allocation5 + $0x804] ss:$72 sps:$4 sm:$0xff]  }
  0x8d   :  { %1928 = vmatpush2.bf16.msra.mxu1 %v3766_v43  ;;  %1888 = vmatprep.subr.bf16.mxu0 %v3771_v44  ;;  %v3864_v43 = vld [vmem:[#allocation5 + $0x80c] ss:$72 sps:$4 sm:$0xff]   ;;  %v3859_v44 = vld [vmem:[#allocation5 + $0x800] ss:$72 sps:$4 sm:$0xff]  }
  0x8e   :  { %1929 = vmatprep.subr.bf16.mxu1 %v3774_v45  ;;  %v3862_v45 = vld [vmem:[#allocation5 + $0x808] ss:$72 sps:$4 sm:$0xff]  }
  0x90   :  { %1889 = vmatpush2.bf16.msra.mxu0 %v3769_v46  ;;  %v3867_v46 = vld [vmem:[#allocation5 + $0x774] ss:$72 sps:$4 sm:$0xff]  }
  0x91   :  { %1930 = vmatpush2.bf16.msra.mxu1 %v3772_v48  ;;  %1890 = vmatprep.subr.bf16.mxu0 %v3777_v49  ;;  %v3870_v48 = vld [vmem:[#allocation5 + $0x77c] ss:$72 sps:$4 sm:$0xff]   ;;  %v3865_v49 = vld [vmem:[#allocation5 + $0x770] ss:$72 sps:$4 sm:$0xff]  }
  0x92   :  { %1931 = vmatprep.subr.bf16.mxu1 %v3780_v50  ;;  %v3868_v50 = vld [vmem:[#allocation5 + $0x778] ss:$72 sps:$4 sm:$0xff]  }
  0x94   :  { %1891 = vmatpush2.bf16.msra.mxu0 %v3775_v51  ;;  %v3873_v51 = vld [vmem:[#allocation5 + $0x6e4] ss:$72 sps:$4 sm:$0xff]  }
  0x95   :  { %1932 = vmatpush2.bf16.msra.mxu1 %v3778_v52  ;;  %1892 = vmatprep.subr.bf16.mxu0 %v3783_v53  ;;  %v3876_v52 = vld [vmem:[#allocation5 + $0x6ec] ss:$72 sps:$4 sm:$0xff]   ;;  %v3871_v53 = vld [vmem:[#allocation5 + $0x6e0] ss:$72 sps:$4 sm:$0xff]  }
  0x96   :  { %1933 = vmatprep.subr.bf16.mxu1 %v3786_v54  ;;  %v3874_v54 = vld [vmem:[#allocation5 + $0x6e8] ss:$72 sps:$4 sm:$0xff]  }
  0x98   :  { %1893 = vmatpush2.bf16.msra.mxu0 %v3781_v55  ;;  %v3879_v55 = vld [vmem:[#allocation5 + $0x654] ss:$72 sps:$4 sm:$0xff]  }
  0x99   :  { %1934 = vmatpush2.bf16.msra.mxu1 %v3784_v56  ;;  %1894 = vmatprep.subr.bf16.mxu0 %v3789_v57  ;;  %v3882_v56 = vld [vmem:[#allocation5 + $0x65c] ss:$72 sps:$4 sm:$0xff]   ;;  %v3877_v57 = vld [vmem:[#allocation5 + $0x650] ss:$72 sps:$4 sm:$0xff]  }
  0x9a   :  { %1935 = vmatprep.subr.bf16.mxu1 %v3792_v58  ;;  %v3880_v58 = vld [vmem:[#allocation5 + $0x658] ss:$72 sps:$4 sm:$0xff]  }
  0x9c   :  { %1895 = vmatpush2.bf16.msra.mxu0 %v3787_v59  ;;  %v3885_v59 = vld [vmem:[#allocation5 + $0x5c4] ss:$72 sps:$4 sm:$0xff]  }
  0x9d   :  { %1936 = vmatpush2.bf16.msra.mxu1 %v3790_v60  ;;  %1896 = vmatprep.subr.bf16.mxu0 %v3795_v61  ;;  %v3888_v60 = vld [vmem:[#allocation5 + $0x5cc] ss:$72 sps:$4 sm:$0xff]   ;;  %v3883_v61 = vld [vmem:[#allocation5 + $0x5c0] ss:$72 sps:$4 sm:$0xff]  }
  0x9e   :  { %1937 = vmatprep.subr.bf16.mxu1 %v3798_v62  ;;  %v3886_v62 = vld [vmem:[#allocation5 + $0x5c8] ss:$72 sps:$4 sm:$0xff]  }
  0xa0   :  { %1897 = vmatpush2.bf16.msra.mxu0 %v3793_v63  ;;  %v3891_v63 = vld [vmem:[#allocation5 + $0x534] ss:$72 sps:$4 sm:$0xff]  }
  0xa1   :  { %1938 = vmatpush2.bf16.msra.mxu1 %v3796_v0  ;;  %1898 = vmatprep.subr.bf16.mxu0 %v3801_v1  ;;  %v3894_v0 = vld [vmem:[#allocation5 + $0x53c] ss:$72 sps:$4 sm:$0xff]   ;;  %v3889_v1 = vld [vmem:[#allocation5 + $0x530] ss:$72 sps:$4 sm:$0xff]  }
  0xa2   :  { %1939 = vmatprep.subr.bf16.mxu1 %v3804_v2  ;;  %v3892_v2 = vld [vmem:[#allocation5 + $0x538] ss:$72 sps:$4 sm:$0xff]  }
  0xa4   :  { %1899 = vmatpush2.bf16.msra.mxu0 %v3799_v3  ;;  %v3897_v3 = vld [vmem:[#allocation5 + $0x4a4] ss:$72 sps:$4 sm:$0xff]  }
  0xa5   :  { %1940 = vmatpush2.bf16.msra.mxu1 %v3802_v4  ;;  %1950 = vmatprep.subr.bf16.mxu0 %v3807_v6  ;;  %v3900_v4 = vld [vmem:[#allocation5 + $0x4ac] ss:$72 sps:$4 sm:$0xff]   ;;  %v3895_v6 = vld [vmem:[#allocation5 + $0x4a0] ss:$72 sps:$4 sm:$0xff]  }
  0xa6   :  { %1991 = vmatprep.subr.bf16.mxu1 %v3810_v7  ;;  %v3898_v7 = vld [vmem:[#allocation5 + $0x4a8] ss:$72 sps:$4 sm:$0xff]  }
  0xa7   :  { %1901 = vmatmul.mubr.bf16.vlgmr.msra.gmra.mxu0 %v4398_v5 }
  0xa8   :  { %1942 = vmatmul.mubr.bf16.vlgmr.msra.gmra.mxu1 %v4398_v5  ;;  %1951 = vmatpush1.bf16.msra.mxu0 %v3805_v8  ;;  %v3903_v8 = vld [vmem:[#allocation5 + $0x424] ss:$72 sps:$4 sm:$0xff]  }
  0xa9   :  { %1992 = vmatpush1.bf16.msra.mxu1 %v3808_v9  ;;  %1952 = vmatprep.subr.bf16.mxu0 %v3813_v10  ;;  %v3906_v9 = vld [vmem:[#allocation5 + $0x42c] ss:$72 sps:$4 sm:$0xff]   ;;  %v3901_v10 = vld [vmem:[#allocation5 + $0x420] ss:$72 sps:$4 sm:$0xff]  }
  0xaa   :  { %1993 = vmatprep.subr.bf16.mxu1 %v3816_v11  ;;  %1982 = vmatprep.mubr.bf16.mxu0 %v4394_v47  ;;  %v3904_v11 = vld [vmem:[#allocation5 + $0x428] ss:$72 sps:$4 sm:$0xff]  }
  0xab   :  { %2023 = vmatprep.mubr.bf16.mxu1 %v4394_v47 }
  0xac   :  { %1953 = vmatpush1.bf16.msra.mxu0 %v3811_v12  ;;  %v3909_v12 = vld [vmem:[#allocation5 + $0x394] ss:$72 sps:$4 sm:$0xff]  }
  0xad   :  { %1994 = vmatpush1.bf16.msra.mxu1 %v3814_v13  ;;  %1954 = vmatprep.subr.bf16.mxu0 %v3819_v14  ;;  %v3912_v13 = vld [vmem:[#allocation5 + $0x39c] ss:$72 sps:$4 sm:$0xff]   ;;  %v3907_v14 = vld [vmem:[#allocation5 + $0x390] ss:$72 sps:$4 sm:$0xff]  }
  0xae   :  { %1995 = vmatprep.subr.bf16.mxu1 %v3822_v15  ;;  %v3910_v15 = vld [vmem:[#allocation5 + $0x398] ss:$72 sps:$4 sm:$0xff]  }
  0xb0   :  { %1955 = vmatpush1.bf16.msra.mxu0 %v3817_v16  ;;  %v3915_v16 = vld [vmem:[#allocation5 + $0x304] ss:$72 sps:$4 sm:$0xff]  }
  0xb1   :  { %1996 = vmatpush1.bf16.msra.mxu1 %v3820_v17  ;;  %1956 = vmatprep.subr.bf16.mxu0 %v3825_v18  ;;  %v3918_v17 = vld [vmem:[#allocation5 + $0x30c] ss:$72 sps:$4 sm:$0xff]   ;;  %v3913_v18 = vld [vmem:[#allocation5 + $0x300] ss:$72 sps:$4 sm:$0xff]  }
  0xb2   :  { %1997 = vmatprep.subr.bf16.mxu1 %v3828_v19  ;;  %v3916_v19 = vld [vmem:[#allocation5 + $0x308] ss:$72 sps:$4 sm:$0xff]  }
  0xb4   :  { %1957 = vmatpush1.bf16.msra.mxu0 %v3823_v20  ;;  %v3921_v20 = vld [vmem:[#allocation5 + $0x274] ss:$72 sps:$4 sm:$0xff]  }
  0xb5   :  { %1998 = vmatpush1.bf16.msra.mxu1 %v3826_v21  ;;  %1958 = vmatprep.subr.bf16.mxu0 %v3831_v22  ;;  %v3924_v21 = vld [vmem:[#allocation5 + $0x27c] ss:$72 sps:$4 sm:$0xff]   ;;  %v3919_v22 = vld [vmem:[#allocation5 + $0x270] ss:$72 sps:$4 sm:$0xff]  }
  0xb6   :  { %1999 = vmatprep.subr.bf16.mxu1 %v3834_v23  ;;  %v3922_v23 = vld [vmem:[#allocation5 + $0x278] ss:$72 sps:$4 sm:$0xff]  }
  0xb8   :  { %1959 = vmatpush1.bf16.msra.mxu0 %v3829_v24  ;;  %v3927_v24 = vld [vmem:[#allocation5 + $0x1e4] ss:$72 sps:$4 sm:$0xff]  }
  0xb9   :  { %2000 = vmatpush1.bf16.msra.mxu1 %v3832_v25  ;;  %1960 = vmatprep.subr.bf16.mxu0 %v3837_v26  ;;  %v3930_v25 = vld [vmem:[#allocation5 + $0x1ec] ss:$72 sps:$4 sm:$0xff]   ;;  %v3925_v26 = vld [vmem:[#allocation5 + $0x1e0] ss:$72 sps:$4 sm:$0xff]  }
  0xba   :  { %2001 = vmatprep.subr.bf16.mxu1 %v3840_v27  ;;  %v3928_v27 = vld [vmem:[#allocation5 + $0x1e8] ss:$72 sps:$4 sm:$0xff]  }
  0xbc   :  { %1961 = vmatpush1.bf16.msra.mxu0 %v3835_v28  ;;  %v3933_v28 = vld [vmem:[#allocation5 + $0x154] ss:$72 sps:$4 sm:$0xff]  }
  0xbd   :  { %2002 = vmatpush1.bf16.msra.mxu1 %v3838_v29  ;;  %1962 = vmatprep.subr.bf16.mxu0 %v3843_v30  ;;  %v3936_v29 = vld [vmem:[#allocation5 + $0x15c] ss:$72 sps:$4 sm:$0xff]   ;;  %v3931_v30 = vld [vmem:[#allocation5 + $0x150] ss:$72 sps:$4 sm:$0xff]  }
  0xbe   :  { %2003 = vmatprep.subr.bf16.mxu1 %v3846_v31  ;;  %v3934_v31 = vld [vmem:[#allocation5 + $0x158] ss:$72 sps:$4 sm:$0xff]  }
  0xc0   :  { %1963 = vmatpush1.bf16.msra.mxu0 %v3841_v32  ;;  %v3939_v32 = vld [vmem:[#allocation5 + $0xc4] ss:$72 sps:$4 sm:$0xff]  }
  0xc1   :  { %2004 = vmatpush1.bf16.msra.mxu1 %v3844_v33  ;;  %1964 = vmatprep.subr.bf16.mxu0 %v3849_v34  ;;  %v3942_v33 = vld [vmem:[#allocation5 + $0xcc] ss:$72 sps:$4 sm:$0xff]   ;;  %v3937_v34 = vld [vmem:[#allocation5 + $0xc0] ss:$72 sps:$4 sm:$0xff]  }
  0xc2   :  { %2005 = vmatprep.subr.bf16.mxu1 %v3852_v35  ;;  %v3940_v35 = vld [vmem:[#allocation5 + $0xc8] ss:$72 sps:$4 sm:$0xff]  }
  0xc4   :  { %1965 = vmatpush1.bf16.msra.mxu0 %v3847_v36  ;;  %v3945_v36 = vld [vmem:[#allocation5 + $0x34] ss:$72 sps:$4 sm:$0xff]  }
  0xc5   :  { %2006 = vmatpush1.bf16.msra.mxu1 %v3850_v37  ;;  %1966 = vmatprep.subr.bf16.mxu0 %v3855_v38  ;;  %v3948_v37 = vld [vmem:[#allocation5 + $0x3c] ss:$72 sps:$4 sm:$0xff]   ;;  %v3943_v38 = vld [vmem:[#allocation5 + $0x30] ss:$72 sps:$4 sm:$0xff]  }
  0xc6   :  { %2007 = vmatprep.subr.bf16.mxu1 %v3858_v39  ;;  %v3946_v39 = vld [vmem:[#allocation5 + $0x38] ss:$72 sps:$4 sm:$0xff]  }
  0xc8   :  { %1967 = vmatpush2.bf16.msra.mxu0 %v3853_v40  ;;  %v3951_v40 = vld [vmem:[#allocation5 + $0x8a4] ss:$72 sps:$4 sm:$0xff]  }
  0xc9   :  { %2008 = vmatpush2.bf16.msra.mxu1 %v3856_v41  ;;  %1968 = vmatprep.subr.bf16.mxu0 %v3861_v42  ;;  %v3954_v41 = vld [vmem:[#allocation5 + $0x8ac] ss:$72 sps:$4 sm:$0xff]   ;;  %v3949_v42 = vld [vmem:[#allocation5 + $0x8a0] ss:$72 sps:$4 sm:$0xff]  }
  0xca   :  { %2009 = vmatprep.subr.bf16.mxu1 %v3864_v43  ;;  %v3952_v43 = vld [vmem:[#allocation5 + $0x8a8] ss:$72 sps:$4 sm:$0xff]  }
  0xcc   :  { %1969 = vmatpush2.bf16.msra.mxu0 %v3859_v44  ;;  %v3957_v44 = vld [vmem:[#allocation5 + $0x814] ss:$72 sps:$4 sm:$0xff]  }
  0xcd   :  { %2010 = vmatpush2.bf16.msra.mxu1 %v3862_v45  ;;  %1970 = vmatprep.subr.bf16.mxu0 %v3867_v46  ;;  %v3960_v45 = vld [vmem:[#allocation5 + $0x81c] ss:$72 sps:$4 sm:$0xff]   ;;  %v3955_v46 = vld [vmem:[#allocation5 + $0x810] ss:$72 sps:$4 sm:$0xff]  }
  0xce   :  { %2011 = vmatprep.subr.bf16.mxu1 %v3870_v48  ;;  %v3958_v48 = vld [vmem:[#allocation5 + $0x818] ss:$72 sps:$4 sm:$0xff]  }
  0xd0   :  { %1971 = vmatpush2.bf16.msra.mxu0 %v3865_v49  ;;  %v3963_v49 = vld [vmem:[#allocation5 + $0x784] ss:$72 sps:$4 sm:$0xff]  }
  0xd1   :  { %2012 = vmatpush2.bf16.msra.mxu1 %v3868_v50  ;;  %1972 = vmatprep.subr.bf16.mxu0 %v3873_v51  ;;  %v3966_v50 = vld [vmem:[#allocation5 + $0x78c] ss:$72 sps:$4 sm:$0xff]   ;;  %v3961_v51 = vld [vmem:[#allocation5 + $0x780] ss:$72 sps:$4 sm:$0xff]  }
  0xd2   :  { %2013 = vmatprep.subr.bf16.mxu1 %v3876_v52  ;;  %v3964_v52 = vld [vmem:[#allocation5 + $0x788] ss:$72 sps:$4 sm:$0xff]  }
  0xd4   :  { %1973 = vmatpush2.bf16.msra.mxu0 %v3871_v53  ;;  %v3969_v53 = vld [vmem:[#allocation5 + $0x6f4] ss:$72 sps:$4 sm:$0xff]  }
  0xd5   :  { %2014 = vmatpush2.bf16.msra.mxu1 %v3874_v54  ;;  %1974 = vmatprep.subr.bf16.mxu0 %v3879_v55  ;;  %v3972_v54 = vld [vmem:[#allocation5 + $0x6fc] ss:$72 sps:$4 sm:$0xff]   ;;  %v3967_v55 = vld [vmem:[#allocation5 + $0x6f0] ss:$72 sps:$4 sm:$0xff]  }
  0xd6   :  { %2015 = vmatprep.subr.bf16.mxu1 %v3882_v56  ;;  %v3970_v56 = vld [vmem:[#allocation5 + $0x6f8] ss:$72 sps:$4 sm:$0xff]  }
  0xd8   :  { %1975 = vmatpush2.bf16.msra.mxu0 %v3877_v57  ;;  %v3975_v57 = vld [vmem:[#allocation5 + $0x664] ss:$72 sps:$4 sm:$0xff]  }
  0xd9   :  { %2016 = vmatpush2.bf16.msra.mxu1 %v3880_v58  ;;  %1976 = vmatprep.subr.bf16.mxu0 %v3885_v59  ;;  %v3978_v58 = vld [vmem:[#allocation5 + $0x66c] ss:$72 sps:$4 sm:$0xff]   ;;  %v3973_v59 = vld [vmem:[#allocation5 + $0x660] ss:$72 sps:$4 sm:$0xff]  }
  0xda   :  { %2017 = vmatprep.subr.bf16.mxu1 %v3888_v60  ;;  %v3976_v60 = vld [vmem:[#allocation5 + $0x668] ss:$72 sps:$4 sm:$0xff]  }
  0xdc   :  { %1977 = vmatpush2.bf16.msra.mxu0 %v3883_v61  ;;  %v3981_v61 = vld [vmem:[#allocation5 + $0x5d4] ss:$72 sps:$4 sm:$0xff]  }
  0xdd   :  { %2018 = vmatpush2.bf16.msra.mxu1 %v3886_v62  ;;  %1978 = vmatprep.subr.bf16.mxu0 %v3891_v63  ;;  %v3984_v62 = vld [vmem:[#allocation5 + $0x5dc] ss:$72 sps:$4 sm:$0xff]   ;;  %v3979_v63 = vld [vmem:[#allocation5 + $0x5d0] ss:$72 sps:$4 sm:$0xff]  }
  0xde   :  { %2019 = vmatprep.subr.bf16.mxu1 %v3894_v0  ;;  %v3982_v0 = vld [vmem:[#allocation5 + $0x5d8] ss:$72 sps:$4 sm:$0xff]  }
  0xe0   :  { %1979 = vmatpush2.bf16.msra.mxu0 %v3889_v1  ;;  %v3987_v1 = vld [vmem:[#allocation5 + $0x544] ss:$72 sps:$4 sm:$0xff]  }
  0xe1   :  { %2020 = vmatpush2.bf16.msra.mxu1 %v3892_v2  ;;  %1980 = vmatprep.subr.bf16.mxu0 %v3897_v3  ;;  %v3990_v2 = vld [vmem:[#allocation5 + $0x54c] ss:$72 sps:$4 sm:$0xff]   ;;  %v3985_v3 = vld [vmem:[#allocation5 + $0x540] ss:$72 sps:$4 sm:$0xff]  }
  0xe2   :  { %2021 = vmatprep.subr.bf16.mxu1 %v3900_v4  ;;  %v3988_v4 = vld [vmem:[#allocation5 + $0x548] ss:$72 sps:$4 sm:$0xff]  }
  0xe4   :  { %1981 = vmatpush2.bf16.msra.mxu0 %v3895_v6  ;;  %v3993_v6 = vld [vmem:[#allocation5 + $0x4b4] ss:$72 sps:$4 sm:$0xff]  }
  0xe5   :  { %2022 = vmatpush2.bf16.msra.mxu1 %v3898_v7  ;;  %2032 = vmatprep.subr.bf16.mxu0 %v3903_v8  ;;  %v3996_v7 = vld [vmem:[#allocation5 + $0x4bc] ss:$72 sps:$4 sm:$0xff]   ;;  %v3991_v8 = vld [vmem:[#allocation5 + $0x4b0] ss:$72 sps:$4 sm:$0xff]  }
  0xe6   :  { %2073 = vmatprep.subr.bf16.mxu1 %v3906_v9  ;;  %v3994_v9 = vld [vmem:[#allocation5 + $0x4b8] ss:$72 sps:$4 sm:$0xff]  }
  0xe7   :  { %1983 = vmatmul.mubr.bf16.vlgmr.msra.gmra.mxu0 %v4398_v5 }
  0xe8   :  { %2024 = vmatmul.mubr.bf16.vlgmr.msra.gmra.mxu1 %v4398_v5  ;;  %2033 = vmatpush1.bf16.msra.mxu0 %v3901_v10  ;;  %v3999_v10 = vld [vmem:[#allocation5 + $0x434] ss:$72 sps:$4 sm:$0xff]  }
  0xe9   :  { %2074 = vmatpush1.bf16.msra.mxu1 %v3904_v11  ;;  %2034 = vmatprep.subr.bf16.mxu0 %v3909_v12  ;;  %v4047_v11 = vld [vmem:[#allocation7 + $0x74] ss:$8 sps:$4 sm:$0xff]   ;;  %v3997_v12 = vld [vmem:[#allocation5 + $0x430] ss:$72 sps:$4 sm:$0xff]  }
  0xea   :  { %2075 = vmatprep.subr.bf16.mxu1 %v3912_v13  ;;  %2064 = vmatprep.mubr.bf16.mxu0 %v4394_v47  ;;  %v4002_v13 = vld [vmem:[#allocation5 + $0x3a4] ss:$72 sps:$4 sm:$0xff]  }
  0xeb   :  { %2105 = vmatprep.mubr.bf16.mxu1 %v4394_v47 }
  0xec   :  { %2035 = vmatpush1.bf16.msra.mxu0 %v3907_v14  ;;  %v4045_v14 = vld [vmem:[#allocation7 + $0x70] ss:$8 sps:$4 sm:$0xff]  }
  0xed   :  { %2076 = vmatpush1.bf16.msra.mxu1 %v3910_v15  ;;  %2036 = vmatprep.subr.bf16.mxu0 %v3915_v16  ;;  %v4050_v15 = vld [vmem:[#allocation7 + $0x64] ss:$8 sps:$4 sm:$0xff]  }
  0xee   :  { %2077 = vmatprep.subr.bf16.mxu1 %v3918_v17 }
  0xf0   :  { %2037 = vmatpush1.bf16.msra.mxu0 %v3913_v18  ;;  %v4000_v18 = vld [vmem:[#allocation5 + $0x3a0] ss:$72 sps:$4 sm:$0xff]  }
  0xf1   :  { %2078 = vmatpush1.bf16.msra.mxu1 %v3916_v19  ;;  %2038 = vmatprep.subr.bf16.mxu0 %v3921_v20  ;;  %v4005_v20 = vld [vmem:[#allocation5 + $0x314] ss:$72 sps:$4 sm:$0xff]  }
  0xf2   :  { %2079 = vmatprep.subr.bf16.mxu1 %v3924_v21 }
  0xf4   :  { %2039 = vmatpush1.bf16.msra.mxu0 %v3919_v22  ;;  %v4048_v22 = vld [vmem:[#allocation7 + $0x60] ss:$8 sps:$4 sm:$0xff]  }
  0xf5   :  { %2080 = vmatpush1.bf16.msra.mxu1 %v3922_v23  ;;  %2040 = vmatprep.subr.bf16.mxu0 %v3927_v24  ;;  %v4053_v23 = vld [vmem:[#allocation7 + $0x54] ss:$8 sps:$4 sm:$0xff]  }
  0xf6   :  { %2081 = vmatprep.subr.bf16.mxu1 %v3930_v25 }
  0xf8   :  { %2041 = vmatpush1.bf16.msra.mxu0 %v3925_v26  ;;  %v4003_v26 = vld [vmem:[#allocation5 + $0x310] ss:$72 sps:$4 sm:$0xff]  }
  0xf9   :  { %2082 = vmatpush1.bf16.msra.mxu1 %v3928_v27  ;;  %2042 = vmatprep.subr.bf16.mxu0 %v3933_v28  ;;  %v4008_v28 = vld [vmem:[#allocation5 + $0x284] ss:$72 sps:$4 sm:$0xff]  }
  0xfa   :  { %2083 = vmatprep.subr.bf16.mxu1 %v3936_v29 }
  0xfc   :  { %2043 = vmatpush1.bf16.msra.mxu0 %v3931_v30  ;;  %v4056_v30 = vld [vmem:[#allocation7 + $0x44] ss:$8 sps:$4 sm:$0xff]  }
  0xfd   :  { %2084 = vmatpush1.bf16.msra.mxu1 %v3934_v31  ;;  %2044 = vmatprep.subr.bf16.mxu0 %v3939_v32  ;;  %v4006_v31 = vld [vmem:[#allocation5 + $0x280] ss:$72 sps:$4 sm:$0xff]   ;;  %v4011_v32 = vld [vmem:[#allocation5 + $0x1f4] ss:$72 sps:$4 sm:$0xff]  }
  0xfe   :  { %2085 = vmatprep.subr.bf16.mxu1 %v3942_v33  ;;  %v4054_v33 = vld [vmem:[#allocation7 + $0x40] ss:$8 sps:$4 sm:$0xff]  }
 0x100   :  { %2045 = vmatpush1.bf16.msra.mxu0 %v3937_v34  ;;  %v4059_v34 = vld [vmem:[#allocation7 + $0x34] ss:$8 sps:$4 sm:$0xff]  }
 0x101   :  { %2086 = vmatpush1.bf16.msra.mxu1 %v3940_v35  ;;  %2046 = vmatprep.subr.bf16.mxu0 %v3945_v36  ;;  %v4009_v35 = vld [vmem:[#allocation5 + $0x1f0] ss:$72 sps:$4 sm:$0xff]   ;;  %v4014_v36 = vld [vmem:[#allocation5 + $0x164] ss:$72 sps:$4 sm:$0xff]  }
 0x102   :  { %2087 = vmatprep.subr.bf16.mxu1 %v3948_v37  ;;  %v4057_v37 = vld [vmem:[#allocation7 + $0x30] ss:$8 sps:$4 sm:$0xff]  }
 0x104   :  { %2047 = vmatpush1.bf16.msra.mxu0 %v3943_v38  ;;  %v4062_v38 = vld [vmem:[#allocation7 + $0x24] ss:$8 sps:$4 sm:$0xff]  }
 0x105   :  { %2088 = vmatpush1.bf16.msra.mxu1 %v3946_v39  ;;  %2048 = vmatprep.subr.bf16.mxu0 %v3951_v40  ;;  %v4012_v39 = vld [vmem:[#allocation5 + $0x160] ss:$72 sps:$4 sm:$0xff]   ;;  %v4017_v40 = vld [vmem:[#allocation5 + $0xd4] ss:$72 sps:$4 sm:$0xff]  }
 0x106   :  { %2089 = vmatprep.subr.bf16.mxu1 %v3954_v41  ;;  %v4060_v41 = vld [vmem:[#allocation7 + $0x20] ss:$8 sps:$4 sm:$0xff]  }
 0x108   :  { %2049 = vmatpush2.bf16.msra.mxu0 %v3949_v42  ;;  %v4065_v42 = vld [vmem:[#allocation7 + $0x14] ss:$8 sps:$4 sm:$0xff]  }
 0x109   :  { %2090 = vmatpush2.bf16.msra.mxu1 %v3952_v43  ;;  %2050 = vmatprep.subr.bf16.mxu0 %v3957_v44  ;;  %v4015_v43 = vld [vmem:[#allocation5 + $0xd0] ss:$72 sps:$4 sm:$0xff]   ;;  %v4020_v44 = vld [vmem:[#allocation5 + $0x44] ss:$72 sps:$4 sm:$0xff]  }
 0x10a   :  { %2091 = vmatprep.subr.bf16.mxu1 %v3960_v45  ;;  %v4063_v45 = vld [vmem:[#allocation7 + $0x10] ss:$8 sps:$4 sm:$0xff]  }
 0x10c   :  { %2051 = vmatpush2.bf16.msra.mxu0 %v3955_v46  ;;  %v4068_v46 = vld [vmem:[#allocation7 + $0x4] ss:$8 sps:$4 sm:$0xff]  }
 0x10d   :  { %2092 = vmatpush2.bf16.msra.mxu1 %v3958_v48  ;;  %2052 = vmatprep.subr.bf16.mxu0 %v3963_v49  ;;  %v4018_v48 = vld [vmem:[#allocation5 + $0x40] ss:$72 sps:$4 sm:$0xff]   ;;  %v4023_v49 = vld [vmem:[#allocation5 + $0x8b4] ss:$72 sps:$4 sm:$0xff]  }
 0x10e   :  { %2093 = vmatprep.subr.bf16.mxu1 %v3966_v50  ;;  %v4066_v50 = vld [vmem:[#allocation7] ss:$8 sps:$4 sm:$0xff]  }
 0x110   :  { %2053 = vmatpush2.bf16.msra.mxu0 %v3961_v51  ;;  %v4071_v51 = vld [vmem:[#allocation7 + $0xf4] ss:$8 sps:$4 sm:$0xff]  }
 0x111   :  { %2094 = vmatpush2.bf16.msra.mxu1 %v3964_v52  ;;  %2054 = vmatprep.subr.bf16.mxu0 %v3969_v53  ;;  %v4021_v52 = vld [vmem:[#allocation5 + $0x8b0] ss:$72 sps:$4 sm:$0xff]   ;;  %v4026_v53 = vld [vmem:[#allocation5 + $0x824] ss:$72 sps:$4 sm:$0xff]  }
 0x112   :  { %2095 = vmatprep.subr.bf16.mxu1 %v3972_v54  ;;  %v4069_v54 = vld [vmem:[#allocation7 + $0xf0] ss:$8 sps:$4 sm:$0xff]  }
 0x114   :  { %2055 = vmatpush2.bf16.msra.mxu0 %v3967_v55  ;;  %v4074_v55 = vld [vmem:[#allocation7 + $0xe4] ss:$8 sps:$4 sm:$0xff]  }
 0x115   :  { %2096 = vmatpush2.bf16.msra.mxu1 %v3970_v56  ;;  %2056 = vmatprep.subr.bf16.mxu0 %v3975_v57  ;;  %v4024_v56 = vld [vmem:[#allocation5 + $0x820] ss:$72 sps:$4 sm:$0xff]   ;;  %v4029_v57 = vld [vmem:[#allocation5 + $0x794] ss:$72 sps:$4 sm:$0xff]  }
 0x116   :  { %2097 = vmatprep.subr.bf16.mxu1 %v3978_v58  ;;  %v4072_v58 = vld [vmem:[#allocation7 + $0xe0] ss:$8 sps:$4 sm:$0xff]  }
 0x118   :  { %2057 = vmatpush2.bf16.msra.mxu0 %v3973_v59  ;;  %v4077_v59 = vld [vmem:[#allocation7 + $0xd4] ss:$8 sps:$4 sm:$0xff]  }
 0x119   :  { %2098 = vmatpush2.bf16.msra.mxu1 %v3976_v60  ;;  %2058 = vmatprep.subr.bf16.mxu0 %v3981_v61  ;;  %v4027_v60 = vld [vmem:[#allocation5 + $0x790] ss:$72 sps:$4 sm:$0xff]   ;;  %v4032_v61 = vld [vmem:[#allocation5 + $0x704] ss:$72 sps:$4 sm:$0xff]  }
 0x11a   :  { %2099 = vmatprep.subr.bf16.mxu1 %v3984_v62  ;;  %v4075_v62 = vld [vmem:[#allocation7 + $0xd0] ss:$8 sps:$4 sm:$0xff]  }
 0x11c   :  { %2059 = vmatpush2.bf16.msra.mxu0 %v3979_v63  ;;  %v4080_v63 = vld [vmem:[#allocation7 + $0xc4] ss:$8 sps:$4 sm:$0xff]  }
 0x11d   :  { %2100 = vmatpush2.bf16.msra.mxu1 %v3982_v0  ;;  %2060 = vmatprep.subr.bf16.mxu0 %v3987_v1  ;;  %v4030_v0 = vld [vmem:[#allocation5 + $0x700] ss:$72 sps:$4 sm:$0xff]   ;;  %v4035_v1 = vld [vmem:[#allocation5 + $0x674] ss:$72 sps:$4 sm:$0xff]  }
 0x11e   :  { %2101 = vmatprep.subr.bf16.mxu1 %v3990_v2  ;;  %v4078_v2 = vld [vmem:[#allocation7 + $0xc0] ss:$8 sps:$4 sm:$0xff]  }
 0x120   :  { %2061 = vmatpush2.bf16.msra.mxu0 %v3985_v3  ;;  %v4083_v3 = vld [vmem:[#allocation7 + $0xb4] ss:$8 sps:$4 sm:$0xff]  }
 0x121   :  { %2102 = vmatpush2.bf16.msra.mxu1 %v3988_v4  ;;  %2062 = vmatprep.subr.bf16.mxu0 %v3993_v6  ;;  %v4033_v4 = vld [vmem:[#allocation5 + $0x670] ss:$72 sps:$4 sm:$0xff]   ;;  %v4038_v6 = vld [vmem:[#allocation5 + $0x5e4] ss:$72 sps:$4 sm:$0xff]  }
 0x122   :  { %2103 = vmatprep.subr.bf16.mxu1 %v3996_v7  ;;  %v4081_v7 = vld [vmem:[#allocation7 + $0xb0] ss:$8 sps:$4 sm:$0xff]  }
 0x124   :  { %2063 = vmatpush2.bf16.msra.mxu0 %v3991_v8  ;;  %v4086_v8 = vld [vmem:[#allocation7 + $0xa4] ss:$8 sps:$4 sm:$0xff]  }
 0x125   :  { %2104 = vmatpush2.bf16.msra.mxu1 %v3994_v9  ;;  %2114 = vmatprep.subr.bf16.mxu0 %v3999_v10  ;;  %v4036_v9 = vld [vmem:[#allocation5 + $0x5e0] ss:$72 sps:$4 sm:$0xff]   ;;  %v4041_v10 = vld [vmem:[#allocation5 + $0x554] ss:$72 sps:$4 sm:$0xff]  }
 0x126   :  { %2997 = vmatprep.subr.bf16.mxu1 %v4047_v11  ;;  %v4084_v11 = vld [vmem:[#allocation7 + $0xa0] ss:$8 sps:$4 sm:$0xff]  }
 0x127   :  { %v4412_v16 = vpop.f32.mrf.mxu0  ;;  %2065 = vmatmul.mubr.bf16.vlgmr.msra.gmra.mxu0 %v4398_v5 }
 0x128   :  { %2106 = vmatmul.mubr.bf16.vlgmr.msra.gmra.mxu1 %v4398_v5  ;;  %v4416_v17 = vpop.f32.mrf.mxu1  ;;  %2115 = vmatpush1.bf16.msra.mxu0 %v3997_v12  ;;  %v4089_v12 = vld [vmem:[#allocation7 + $0x94] ss:$8 sps:$4 sm:$0xff]  }
 0x129   :  { %2146 = vmatprep.mubr.bf16.mxu0 %v4394_v47  ;;  %v4419_v19 = vpop.f32.mrf.mxu0  ;;  %2116 = vmatprep.subr.bf16.mxu0 %v4002_v13  ;;  %v4051_v47 = vld [vmem:[#allocation7 + $0x50] ss:$8 sps:$4 sm:$0xff]  }
 0x12a   :  { %v4421_v21 = vpop.f32.mrf.mxu1  ;;  %2998 = vmatpush1.bf16.msra.mxu1 %v4045_v14  ;;  %v4039_v13 = vld [vmem:[#allocation5 + $0x550] ss:$72 sps:$4 sm:$0xff]   ;;  %v4044_v14 = vld [vmem:[#allocation5 + $0x4c4] ss:$72 sps:$4 sm:$0xff]  }
 0x12b   :  { %2999 = vmatprep.subr.bf16.mxu1 %v4050_v15  ;;  %v1824_v24 = vpop.f32.mrf.mxu0  ;;  %v4087_v15 = vld [vmem:[#allocation7 + $0x90] ss:$8 sps:$4 sm:$0xff]  }
 0x12c   :  { %v1865_v25 = vpop.f32.mrf.mxu1  ;;  %2117 = vmatpush1.bf16.msra.mxu0 %v4000_v18  ;;  %v4092_v18 = vld [vmem:[#allocation7 + $0x84] ss:$8 sps:$4 sm:$0xff]   ;;  %v4098_v24 = vld [vmem:[#allocation7 + $0x274] ss:$8 sps:$4 sm:$0xff]  }
 0x12d   :  { %v1825_v27 = vpop.f32.mrf.mxu0  ;;  %2118 = vmatprep.subr.bf16.mxu0 %v4005_v20  ;;  %v4042_v20 = vld [vmem:[#allocation5 + $0x4c0] ss:$72 sps:$4 sm:$0xff]   ;;  %v4093_v25 = vld [vmem:[#allocation7 + $0x170] ss:$8 sps:$4 sm:$0xff]  }
 0x12e   :  { %v1866_v29 = vpop.f32.mrf.mxu1  ;;  %3000 = vmatpush1.bf16.msra.mxu1 %v4048_v22  ;;  %v4090_v22 = vld [vmem:[#allocation7 + $0x80] ss:$8 sps:$4 sm:$0xff]  }
 0x12f   :  { %3001 = vmatprep.subr.bf16.mxu1 %v4053_v23  ;;  %v4095_v23 = vld [vmem:[#allocation7 + $0x174] ss:$8 sps:$4 sm:$0xff]   ;;  %v4099_v29 = vld [vmem:[#allocation7 + $0x160] ss:$8 sps:$4 sm:$0xff]  }
 0x130   :  { %2119 = vmatpush1.bf16.msra.mxu0 %v4003_v26  ;;  %v4101_v26 = vld [vmem:[#allocation7 + $0x164] ss:$8 sps:$4 sm:$0xff]  }
 0x131   :  { %2120 = vmatprep.subr.bf16.mxu0 %v4008_v28 }
 0x132   :  { %3002 = vmatpush1.bf16.msra.mxu1 %v4051_v47 }
 0x133   :  { %3003 = vmatprep.subr.bf16.mxu1 %v4056_v30 }
 0x134   :  { %2121 = vmatpush1.bf16.msra.mxu0 %v4006_v31  ;;  %v4107_v31 = vld [vmem:[#allocation7 + $0x154] ss:$8 sps:$4 sm:$0xff]  }
 0x135   :  { %2122 = vmatprep.subr.bf16.mxu0 %v4011_v32 }
 0x136   :  { %3004 = vmatpush1.bf16.msra.mxu1 %v4054_v33 }
 0x137   :  { %3005 = vmatprep.subr.bf16.mxu1 %v4059_v34  ;;  %v4105_v34 = vld [vmem:[#allocation7 + $0x150] ss:$8 sps:$4 sm:$0xff]  }
 0x138   :  { %2123 = vmatpush1.bf16.msra.mxu0 %v4009_v35 }
 0x139   :  { %2124 = vmatprep.subr.bf16.mxu0 %v4014_v36 }
 0x13a   :  { %3006 = vmatpush1.bf16.msra.mxu1 %v4057_v37  ;;  %v4113_v37 = vld [vmem:[#allocation7 + $0x144] ss:$8 sps:$4 sm:$0xff]  }
 0x13b   :  { %3007 = vmatprep.subr.bf16.mxu1 %v4062_v38  ;;  %v4119_v38 = vld [vmem:[#allocation7 + $0x134] ss:$8 sps:$4 sm:$0xff]  }
 0x13c   :  { %2125 = vmatpush1.bf16.msra.mxu0 %v4012_v39  ;;  %v4117_v39 = vld [vmem:[#allocation7 + $0x130] ss:$8 sps:$4 sm:$0xff]  }
 0x13d   :  { %2126 = vmatprep.subr.bf16.mxu0 %v4017_v40  ;;  %v4125_v40 = vld [vmem:[#allocation7 + $0x124] ss:$8 sps:$4 sm:$0xff]  }
 0x13e   :  { %3008 = vmatpush1.bf16.msra.mxu1 %v4060_v41  ;;  %v4123_v41 = vld [vmem:[#allocation7 + $0x120] ss:$8 sps:$4 sm:$0xff]  }
 0x13f   :  { %3009 = vmatprep.subr.bf16.mxu1 %v4065_v42  ;;  %v4131_v42 = vld [vmem:[#allocation7 + $0x114] ss:$8 sps:$4 sm:$0xff]  }
 0x140   :  { %2127 = vmatpush1.bf16.msra.mxu0 %v4015_v43  ;;  %v4129_v43 = vld [vmem:[#allocation7 + $0x110] ss:$8 sps:$4 sm:$0xff]  }
 0x141   :  { %2128 = vmatprep.subr.bf16.mxu0 %v4020_v44  ;;  %v4137_v44 = vld [vmem:[#allocation7 + $0x104] ss:$8 sps:$4 sm:$0xff]  }
 0x142   :  { %3010 = vmatpush1.bf16.msra.mxu1 %v4063_v45  ;;  %v3469_v45 = vmul.f32 -1.442695, %v4416_v17 }
 0x143   :  { %3011 = vmatprep.subr.bf16.mxu1 %v4068_v46  ;;  %v3470_v46 = vmul.f32 -1.442695, %v4421_v21 }
 0x144   :  { %2129 = vmatpush1.bf16.msra.mxu0 %v4018_v48  ;;  %v4135_v48 = vld [vmem:[#allocation7 + $0x100] ss:$8 sps:$4 sm:$0xff]   ;;  %4237 = vpow2.f32 %v3469_v45 }
 0x145   :  { %2130 = vmatprep.subr.bf16.mxu0 %v4023_v49  ;;  %v4143_v49 = vld [vmem:[#allocation7 + $0x1f4] ss:$8 sps:$4 sm:$0xff]   ;;  %4239 = vpow2.f32 %v3470_v46  ;;  %v4138_v45 = vld [vmem:[#allocation7 + $0x200] ss:$8 sps:$4 sm:$0xff]  }
 0x146   :  { %3012 = vmatpush1.bf16.msra.mxu1 %v4066_v50  ;;  %v4141_v50 = vld [vmem:[#allocation7 + $0x1f0] ss:$8 sps:$4 sm:$0xff]   ;;  %v4146_v46 = vld [vmem:[#allocation7 + $0x2f4] ss:$8 sps:$4 sm:$0xff]  }
 0x147   :  { %3013 = vmatprep.subr.bf16.mxu1 %v4071_v51  ;;  %v4149_v51 = vld [vmem:[#allocation7 + $0x1e4] ss:$8 sps:$4 sm:$0xff]  }
 0x148   :  { %2131 = vmatpush2.bf16.msra.mxu0 %v4021_v52  ;;  %v4147_v52 = vld [vmem:[#allocation7 + $0x1e0] ss:$8 sps:$4 sm:$0xff]  }
 0x149   :  { %2132 = vmatprep.subr.bf16.mxu0 %v4026_v53  ;;  %v4155_v53 = vld [vmem:[#allocation7 + $0x1d4] ss:$8 sps:$4 sm:$0xff]  }
 0x14a   :  { %3014 = vmatpush2.bf16.msra.mxu1 %v4069_v54  ;;  %v4153_v54 = vld [vmem:[#allocation7 + $0x1d0] ss:$8 sps:$4 sm:$0xff]  }
 0x14b   :  { %3015 = vmatprep.subr.bf16.mxu1 %v4074_v55  ;;  %v4161_v55 = vld [vmem:[#allocation7 + $0x1c4] ss:$8 sps:$4 sm:$0xff]  }
 0x14c   :  { %2133 = vmatpush2.bf16.msra.mxu0 %v4024_v56 }
 0x14d   :  { %2134 = vmatprep.subr.bf16.mxu0 %v4029_v57  ;;  %v4159_v57 = vld [vmem:[#allocation7 + $0x1c0] ss:$8 sps:$4 sm:$0xff]  }
 0x14e   :  { %3016 = vmatpush2.bf16.msra.mxu1 %v4072_v58 }
 0x14f   :  { %3017 = vmatprep.subr.bf16.mxu1 %v4077_v59  ;;  %v4167_v59 = vld [vmem:[#allocation7 + $0x1b4] ss:$8 sps:$4 sm:$0xff]  }
 0x150   :  { %2135 = vmatpush2.bf16.msra.mxu0 %v4027_v60 }
 0x151   :  { %2136 = vmatprep.subr.bf16.mxu0 %v4032_v61  ;;  %v4238_v56 = vpop.eup %4237 }
 0x152   :  { %3018 = vmatpush2.bf16.msra.mxu1 %v4075_v62  ;;  %v4240_v58 = vpop.eup %4239  ;;  %v2181_v60 = vadd.f32 1.0, %v4238_v56  ;;  %v4165_v62 = vld [vmem:[#allocation7 + $0x1b0] ss:$8 sps:$4 sm:$0xff]   ;;  %v4158_v56 = vld [vmem:[#allocation7 + $0x2d4] ss:$8 sps:$4 sm:$0xff]  }
 0x153   :  { %3019 = vmatprep.subr.bf16.mxu1 %v4080_v63  ;;  %v2182_v61 = vadd.f32 1.0, %v4240_v58  ;;  %v4173_v63 = vld [vmem:[#allocation7 + $0x1a4] ss:$8 sps:$4 sm:$0xff]  }
 0x154   :  { %2137 = vmatpush2.bf16.msra.mxu0 %v4030_v0  ;;  %4241 = vrcp.f32 %v2181_v60  ;;  %v4171_v0 = vld [vmem:[#allocation7 + $0x1a0] ss:$8 sps:$4 sm:$0xff]   ;;  %v4156_v60 = vld [vmem:[#allocation7 + $0x2d0] ss:$8 sps:$4 sm:$0xff]  }
 0x155   :  { %2138 = vmatprep.subr.bf16.mxu0 %v4035_v1  ;;  %4243 = vrcp.f32 %v2182_v61  ;;  %v4179_v1 = vld [vmem:[#allocation7 + $0x194] ss:$8 sps:$4 sm:$0xff]   ;;  %v4164_v61 = vld [vmem:[#allocation7 + $0x2c4] ss:$8 sps:$4 sm:$0xff]  }
 0x156   :  { %3020 = vmatpush2.bf16.msra.mxu1 %v4078_v2  ;;  %v4177_v2 = vld [vmem:[#allocation7 + $0x190] ss:$8 sps:$4 sm:$0xff]  }
 0x157   :  { %3021 = vmatprep.subr.bf16.mxu1 %v4083_v3  ;;  %v4185_v3 = vld [vmem:[#allocation7 + $0x184] ss:$8 sps:$4 sm:$0xff]  }
 0x158   :  { %2139 = vmatpush2.bf16.msra.mxu0 %v4033_v4  ;;  %v4183_v4 = vld [vmem:[#allocation7 + $0x180] ss:$8 sps:$4 sm:$0xff]  }
 0x159   :  { %2140 = vmatprep.subr.bf16.mxu0 %v4038_v6  ;;  %v4191_v6 = vld [vmem:[#allocation7 + $0x374] ss:$8 sps:$4 sm:$0xff]  }
 0x15a   :  { %3022 = vmatpush2.bf16.msra.mxu1 %v4081_v7 }
 0x15b   :  { %3023 = vmatprep.subr.bf16.mxu1 %v4086_v8 }
 0x15c   :  { %2141 = vmatpush2.bf16.msra.mxu0 %v4036_v9 }
 0x15d   :  { %2142 = vmatprep.subr.bf16.mxu0 %v4041_v10 }
 0x15e   :  { %3024 = vmatpush2.bf16.msra.mxu1 %v4084_v11 }
 0x15f   :  { %3025 = vmatprep.subr.bf16.mxu1 %v4089_v12 }
 0x160   :  { %2143 = vmatpush2.bf16.msra.mxu0 %v4039_v13 }
 0x161   :  { %2144 = vmatprep.subr.bf16.mxu0 %v4044_v14  ;;  %v4242_v7 = vpop.eup %4241 }
 0x162   :  { %3026 = vmatpush2.bf16.msra.mxu1 %v4087_v15  ;;  %v4244_v8 = vpop.eup %4243  ;;  %v2205_v9 = vmul.f32 %v4242_v7, %v4416_v17  ;;  %v4102_v17 = vld [vmem:[#allocation7 + $0x260] ss:$8 sps:$4 sm:$0xff]  }
 0x163   :  { %3027 = vmatprep.subr.bf16.mxu1 %v4092_v18  ;;  %v2206_v12 = vmul.f32 %v4244_v8, %v4421_v21  ;;  %v4108_v21 = vld [vmem:[#allocation7 + $0x250] ss:$8 sps:$4 sm:$0xff]  }
 0x164   :  { %2145 = vmatpush2.bf16.msra.mxu0 %v4042_v20  ;;  %v4180_v8 = vld [vmem:[#allocation7 + $0x290] ss:$8 sps:$4 sm:$0xff]  }
 0x165   :  { %3038 = vmatprep.subr.bf16.mxu0 %v4095_v23 }
 0x166   :  { %3028 = vmatpush2.bf16.msra.mxu1 %v4090_v22 }
 0x167   :  { %3079 = vmatprep.subr.bf16.mxu1 %v4098_v24  ;;  %v4423_v27 = vpop.f32.mrf.mxu0  ;;  %2147 = vmatmul.mubr.bf16.vlgmr.msra.gmra.mxu0 %v4398_v5  ;;  %v4111_v5 = vld [vmem:[#allocation7 + $0x140] ss:$8 sps:$4 sm:$0xff]   ;;  %v4096_v24 = vld [vmem:[#allocation7 + $0x270] ss:$8 sps:$4 sm:$0xff]  }
 0x168   :  { %v4426_v28 = vpop.f32.mrf.mxu1  ;;  %3039 = vmatpush1.bf16.msra.mxu0 %v4093_v25 }
 0x169   :  { %v4428_v47 = vpop.f32.mrf.mxu0  ;;  %3040 = vmatprep.subr.bf16.mxu0 %v4101_v26 }
 0x16a   :  { %v4430_v30 = vpop.f32.mrf.mxu1 }
 0x16b   :  { %v1906_v32 = vpop.f32.mrf.mxu0 }
 0x16c   :  { %v1947_v33 = vpop.f32.mrf.mxu1  ;;  %3041 = vmatpush1.bf16.msra.mxu0 %v4099_v29  ;;  %v4104_v29 = vld [vmem:[#allocation7 + $0x264] ss:$8 sps:$4 sm:$0xff]   ;;  %v4110_v32 = vld [vmem:[#allocation7 + $0x254] ss:$8 sps:$4 sm:$0xff]  }
 0x16d   :  { %v1907_v35 = vpop.f32.mrf.mxu0  ;;  %3042 = vmatprep.subr.bf16.mxu0 %v4107_v31  ;;  %v4116_v33 = vld [vmem:[#allocation7 + $0x244] ss:$8 sps:$4 sm:$0xff]  }
 0x16e   :  { %v1948_v36 = vpop.f32.mrf.mxu1  ;;  %v4122_v35 = vld [vmem:[#allocation7 + $0x234] ss:$8 sps:$4 sm:$0xff]  }
 0x16f   :  { %v4120_v36 = vld [vmem:[#allocation7 + $0x230] ss:$8 sps:$4 sm:$0xff]  }
 0x170   :  { %3043 = vmatpush1.bf16.msra.mxu0 %v4105_v34  ;;  %v4114_v34 = vld [vmem:[#allocation7 + $0x240] ss:$8 sps:$4 sm:$0xff]  }
 0x171   :  { %3044 = vmatprep.subr.bf16.mxu0 %v4113_v37  ;;  %v3471_v37 = vmul.f32 -1.442695, %v4423_v27 }
 0x173   :  { %4245 = vpow2.f32 %v3471_v37  ;;  %v4192_v37 = vld [vmem:[#allocation7 + $0x360] ss:$8 sps:$4 sm:$0xff]  }
 0x174   :  { %3045 = vmatpush1.bf16.msra.mxu0 %v4111_v5  ;;  %v4128_v5 = vld [vmem:[#allocation7 + $0x224] ss:$8 sps:$4 sm:$0xff]  }
 0x175   :  { %3046 = vmatprep.subr.bf16.mxu0 %v4119_v38  ;;  %v3473_v38 = vmul.f32 -1.442695, %v4426_v28 }
 0x177   :  { %4247 = vpow2.f32 %v3473_v38  ;;  %v4195_v38 = vld [vmem:[#allocation7 + $0x350] ss:$8 sps:$4 sm:$0xff]  }
 0x178   :  { %3047 = vmatpush1.bf16.msra.mxu0 %v4117_v39  ;;  %v3472_v39 = vmul.f32 -1.442695, %v4428_v47 }
 0x179   :  { %3048 = vmatprep.subr.bf16.mxu0 %v4125_v40  ;;  %v3474_v40 = vmul.f32 -1.442695, %v4430_v30 }
 0x17a   :  { %4249 = vpow2.f32 %v3472_v39  ;;  %v4200_v39 = vld [vmem:[#allocation7 + $0x344] ss:$8 sps:$4 sm:$0xff]  }
 0x17b   :  { %4251 = vpow2.f32 %v3474_v40  ;;  %v4198_v40 = vld [vmem:[#allocation7 + $0x340] ss:$8 sps:$4 sm:$0xff]  }
 0x17c   :  { %3049 = vmatpush1.bf16.msra.mxu0 %v4123_v41  ;;  %v4126_v41 = vld [vmem:[#allocation7 + $0x220] ss:$8 sps:$4 sm:$0xff]  }
 0x17d   :  { %3050 = vmatprep.subr.bf16.mxu0 %v4131_v42  ;;  %v4134_v42 = vld [vmem:[#allocation7 + $0x214] ss:$8 sps:$4 sm:$0xff]  }
 0x180   :  { %3051 = vmatpush1.bf16.msra.mxu0 %v4129_v43  ;;  %v4132_v43 = vld [vmem:[#allocation7 + $0x210] ss:$8 sps:$4 sm:$0xff]  }
 0x181   :  { %3052 = vmatprep.subr.bf16.mxu0 %v4137_v44  ;;  %v4140_v44 = vld [vmem:[#allocation7 + $0x204] ss:$8 sps:$4 sm:$0xff]  }
 0x184   :  { %3053 = vmatpush1.bf16.msra.mxu0 %v4135_v48  ;;  %v4144_v48 = vld [vmem:[#allocation7 + $0x2f0] ss:$8 sps:$4 sm:$0xff]  }
 0x185   :  { %3054 = vmatprep.subr.bf16.mxu0 %v4143_v49  ;;  %v4152_v49 = vld [vmem:[#allocation7 + $0x2e4] ss:$8 sps:$4 sm:$0xff]  }
 0x188   :  { %3055 = vmatpush2.bf16.msra.mxu0 %v4141_v50  ;;  %v4246_v50 = vpop.eup %4245 }
 0x189   :  { %3056 = vmatprep.subr.bf16.mxu0 %v4149_v51  ;;  %v4248_v51 = vpop.eup %4247 }
 0x18c   :  { %3057 = vmatpush2.bf16.msra.mxu0 %v4147_v52  ;;  %v4250_v52 = vpop.eup %4249 }
 0x18d   :  { %3058 = vmatprep.subr.bf16.mxu0 %v4155_v53  ;;  %v4150_v53 = vld [vmem:[#allocation7 + $0x2e0] ss:$8 sps:$4 sm:$0xff]   ;;  %v2184_v58 = vadd.f32 1.0, %v4250_v52  ;;  %v4215_v52 = vld [vmem:[#allocation7 + $0x3f4] ss:$8 sps:$4 sm:$0xff]  }
 0x190   :  { %3059 = vmatpush2.bf16.msra.mxu0 %v4153_v54  ;;  %v4252_v54 = vpop.eup %4251 }
 0x191   :  { %3060 = vmatprep.subr.bf16.mxu0 %v4161_v55  ;;  %v2183_v55 = vadd.f32 1.0, %v4246_v50  ;;  %v4212_v50 = vld [vmem:[#allocation7 + $0x304] ss:$8 sps:$4 sm:$0xff]  }
 0x193   :  { %4253 = vrcp.f32 %v2183_v55 }
 0x194   :  { %3061 = vmatpush2.bf16.msra.mxu0 %v4159_v57  ;;  %v2185_v57 = vadd.f32 1.0, %v4248_v51  ;;  %v4210_v51 = vld [vmem:[#allocation7 + $0x300] ss:$8 sps:$4 sm:$0xff]  }
 0x195   :  { %3062 = vmatprep.subr.bf16.mxu0 %v4167_v59  ;;  %v2186_v59 = vadd.f32 1.0, %v4252_v54  ;;  %v4218_v54 = vld [vmem:[#allocation7 + $0x3e4] ss:$8 sps:$4 sm:$0xff]  }
 0x196   :  { %4255 = vrcp.f32 %v2185_v57 }
 0x197   :  { %4257 = vrcp.f32 %v2184_v58  ;;  %v4221_v58 = vld [vmem:[#allocation7 + $0x3d4] ss:$8 sps:$4 sm:$0xff]  }
 0x198   :  { %3063 = vmatpush2.bf16.msra.mxu0 %v4165_v62  ;;  %4259 = vrcp.f32 %v2186_v59  ;;  %v4162_v62 = vld [vmem:[#allocation7 + $0x2c0] ss:$8 sps:$4 sm:$0xff]  }
 0x199   :  { %3064 = vmatprep.subr.bf16.mxu0 %v4173_v63  ;;  %v4170_v63 = vld [vmem:[#allocation7 + $0x2b4] ss:$8 sps:$4 sm:$0xff]  }
 0x19c   :  { %3065 = vmatpush2.bf16.msra.mxu0 %v4171_v0  ;;  %v4168_v0 = vld [vmem:[#allocation7 + $0x2b0] ss:$8 sps:$4 sm:$0xff]  }
 0x19d   :  { %3066 = vmatprep.subr.bf16.mxu0 %v4179_v1  ;;  %v4176_v1 = vld [vmem:[#allocation7 + $0x2a4] ss:$8 sps:$4 sm:$0xff]  }
 0x1a0   :  { %3067 = vmatpush2.bf16.msra.mxu0 %v4177_v2  ;;  %v4174_v2 = vld [vmem:[#allocation7 + $0x2a0] ss:$8 sps:$4 sm:$0xff]  }
 0x1a1   :  { %3068 = vmatprep.subr.bf16.mxu0 %v4185_v3  ;;  %v4182_v3 = vld [vmem:[#allocation7 + $0x294] ss:$8 sps:$4 sm:$0xff]  }
 0x1a4   :  { %3069 = vmatpush2.bf16.msra.mxu0 %v4183_v4  ;;  %v4254_v4 = vpop.eup %4253 }
 0x1a5   :  { %3120 = vmatprep.subr.bf16.mxu0 %v4191_v6  ;;  %v4256_v6 = vpop.eup %4255 }
 0x1a6   :  { %v4258_v7 = vpop.eup %4257 }
 0x1a7   :  { %v4435_v10 = vpop.f32.mrf.mxu0 }
 0x1a8   :  { %v2025_v11 = vpop.f32.mrf.mxu1 }
 0x1a9   :  { %v2213_v13 = vmul.f32 %v2205_v9, %v2025_v11  ;;  %v4438_v14 = vpop.f32.mrf.mxu0  ;;  %v4260_v9 = vpop.eup %4259  ;;  %v4188_v11 = vld [vmem:[#allocation7 + $0x284] ss:$8 sps:$4 sm:$0xff]  }
 0x1aa   :  { %v2027_v15 = vpop.f32.mrf.mxu1 }
 0x1ab   :  { %v2214_v18 = vmul.f32 %v2206_v12, %v2027_v15  ;;  %v1988_v20 = vpop.f32.mrf.mxu0  ;;  %v2221_v25 = vpack.c.bf16 %v2213_v13, %v2213_v13  ;;  %v2207_v12 = vmul.f32 %v4254_v4, %v4423_v27  ;;  %v2209_v13 = vmul.f32 %v4256_v6, %v4426_v28  ;;  %v4189_v28 = vld [vmem:[#allocation7 + $0x370] ss:$8 sps:$4 sm:$0xff]   ;;  %v4233_v4 = vld [vmem:[#allocation7 + $0x394] ss:$8 sps:$4 sm:$0xff]  }
 0x1ac   :  { %v2029_v22 = vpop.f32.mrf.mxu1  ;;  %v2208_v20 = vmul.f32 %v4258_v7, %v4428_v47  ;;  %v4231_v7 = vld [vmem:[#allocation7 + $0x390] ss:$8 sps:$4 sm:$0xff]  }
 0x1ad   :  { %v2222_v23 = vpack.c.bf16 %v2214_v18, %v2214_v18  ;;  %v1989_v26 = vpop.f32.mrf.mxu0  ;;  %v2210_v22 = vmul.f32 %v4260_v9, %v4430_v30  ;;  %v4236_v9 = vld [vmem:[#allocation7 + $0x384] ss:$8 sps:$4 sm:$0xff]  }
 0x1ae   :  { %v2030_v31 = vpop.f32.mrf.mxu1 }
 0x1af   :  { %3029 = vmatprep.mubr.bf16.mxu1 %v2222_v23  ;;  %v4186_v23 = vld [vmem:[#allocation7 + $0x280] ss:$8 sps:$4 sm:$0xff]  }
 0x1b0   :  { %3030 = vmatmul.mubr.bf16.vlgmr.msra.gmra.mxu1 %v2221_v25 }
 0x1b1   :  { %3080 = vmatpush1.bf16.msra.mxu1 %v4096_v24 }
 0x1b2   :  { %3081 = vmatprep.subr.bf16.mxu1 %v4104_v29 }
 0x1b5   :  { %3082 = vmatpush1.bf16.msra.mxu1 %v4102_v17 }
 0x1b6   :  { %3083 = vmatprep.subr.bf16.mxu1 %v4110_v32 }
 0x1b9   :  { %3084 = vmatpush1.bf16.msra.mxu1 %v4108_v21 }
 0x1ba   :  { %3085 = vmatprep.subr.bf16.mxu1 %v4116_v33 }
 0x1bd   :  { %3086 = vmatpush1.bf16.msra.mxu1 %v4114_v34 }
 0x1be   :  { %3087 = vmatprep.subr.bf16.mxu1 %v4122_v35 }
 0x1c1   :  { %3088 = vmatpush1.bf16.msra.mxu1 %v4120_v36  ;;  %v4194_v36 = vld [vmem:[#allocation7 + $0x364] ss:$8 sps:$4 sm:$0xff]  }
 0x1c2   :  { %3089 = vmatprep.subr.bf16.mxu1 %v4128_v5  ;;  %v4197_v5 = vld [vmem:[#allocation7 + $0x354] ss:$8 sps:$4 sm:$0xff]  }
 0x1c5   :  { %3090 = vmatpush1.bf16.msra.mxu1 %v4126_v41  ;;  %v4203_v41 = vld [vmem:[#allocation7 + $0x334] ss:$8 sps:$4 sm:$0xff]  }
 0x1c6   :  { %3091 = vmatprep.subr.bf16.mxu1 %v4134_v42  ;;  %v4201_v42 = vld [vmem:[#allocation7 + $0x330] ss:$8 sps:$4 sm:$0xff]  }
 0x1c9   :  { %3092 = vmatpush1.bf16.msra.mxu1 %v4132_v43  ;;  %v4206_v43 = vld [vmem:[#allocation7 + $0x324] ss:$8 sps:$4 sm:$0xff]  }
 0x1ca   :  { %3093 = vmatprep.subr.bf16.mxu1 %v4140_v44  ;;  %v3475_v44 = vmul.f32 -1.442695, %v4435_v10 }
 0x1cc   :  { %4261 = vpow2.f32 %v3475_v44 }
 0x1cd   :  { %3094 = vmatpush1.bf16.msra.mxu1 %v4138_v45  ;;  %v3476_v45 = vmul.f32 -1.442695, %v4438_v14 }
 0x1ce   :  { %3095 = vmatprep.subr.bf16.mxu1 %v4146_v46  ;;  %v4204_v46 = vld [vmem:[#allocation7 + $0x320] ss:$8 sps:$4 sm:$0xff]  }
 0x1cf   :  { %4263 = vpow2.f32 %v3476_v45 }
 0x1d1   :  { %3096 = vmatpush2.bf16.msra.mxu1 %v4144_v48  ;;  %v4209_v48 = vld [vmem:[#allocation7 + $0x314] ss:$8 sps:$4 sm:$0xff]  }
 0x1d2   :  { %3097 = vmatprep.subr.bf16.mxu1 %v4152_v49  ;;  %v4207_v49 = vld [vmem:[#allocation7 + $0x310] ss:$8 sps:$4 sm:$0xff]  }
 0x1d5   :  { %3098 = vmatpush2.bf16.msra.mxu1 %v4150_v53  ;;  %v4213_v53 = vld [vmem:[#allocation7 + $0x3f0] ss:$8 sps:$4 sm:$0xff]  }
 0x1d6   :  { %3099 = vmatprep.subr.bf16.mxu1 %v4158_v56  ;;  %v4216_v56 = vld [vmem:[#allocation7 + $0x3e0] ss:$8 sps:$4 sm:$0xff]  }
 0x1d9   :  { %3100 = vmatpush2.bf16.msra.mxu1 %v4156_v60  ;;  %v4262_v55 = vpop.eup %4261 }
 0x1da   :  { %3101 = vmatprep.subr.bf16.mxu1 %v4164_v61  ;;  %v2187_v59 = vadd.f32 1.0, %v4262_v55  ;;  %v4219_v61 = vld [vmem:[#allocation7 + $0x3d0] ss:$8 sps:$4 sm:$0xff]  }
 0x1dc   :  { %v4264_v57 = vpop.eup %4263  ;;  %4265 = vrcp.f32 %v2187_v59 }
 0x1dd   :  { %3102 = vmatpush2.bf16.msra.mxu1 %v4162_v62  ;;  %v2188_v60 = vadd.f32 1.0, %v4264_v57  ;;  %v4224_v62 = vld [vmem:[#allocation7 + $0x3c4] ss:$8 sps:$4 sm:$0xff]  }
 0x1de   :  { %3103 = vmatprep.subr.bf16.mxu1 %v4170_v63  ;;  %v4222_v63 = vld [vmem:[#allocation7 + $0x3c0] ss:$8 sps:$4 sm:$0xff]  }
 0x1df   :  { %4267 = vrcp.f32 %v2188_v60 }
 0x1e1   :  { %3104 = vmatpush2.bf16.msra.mxu1 %v4168_v0  ;;  %v4227_v0 = vld [vmem:[#allocation7 + $0x3b4] ss:$8 sps:$4 sm:$0xff]  }
 0x1e2   :  { %3105 = vmatprep.subr.bf16.mxu1 %v4176_v1  ;;  %v4225_v1 = vld [vmem:[#allocation7 + $0x3b0] ss:$8 sps:$4 sm:$0xff]  }
 0x1e5   :  { %3106 = vmatpush2.bf16.msra.mxu1 %v4174_v2  ;;  %v4230_v2 = vld [vmem:[#allocation7 + $0x3a4] ss:$8 sps:$4 sm:$0xff]  }
 0x1e6   :  { %3107 = vmatprep.subr.bf16.mxu1 %v4182_v3  ;;  %v4228_v3 = vld [vmem:[#allocation7 + $0x3a0] ss:$8 sps:$4 sm:$0xff]  }
 0x1e7   :  { %v2066_v15 = vpop.f32.mrf.mxu0 }
 0x1e8   :  { %v2107_v18 = vpop.f32.mrf.mxu1  ;;  %v2215_v24 = vmul.f32 %v2207_v12, %v2066_v15  ;;  %v4234_v15 = vld [vmem:[#allocation7 + $0x380] ss:$8 sps:$4 sm:$0xff]  }
 0x1e9   :  { %3108 = vmatpush2.bf16.msra.mxu1 %v4180_v8  ;;  %v2217_v25 = vmul.f32 %v2209_v13, %v2107_v18  ;;  %v2068_v26 = vpop.f32.mrf.mxu0  ;;  %v4266_v6 = vpop.eup %4265 }
 0x1ea   :  { %v2109_v29 = vpop.f32.mrf.mxu1  ;;  %3109 = vmatprep.subr.bf16.mxu1 %v4188_v11  ;;  %v2216_v31 = vmul.f32 %v2208_v20, %v2068_v26  ;;  %v2223_v34 = vpack.c.bf16 %v2215_v24, %v2215_v24  ;;  %v2211_v11 = vmul.f32 %v4266_v6, %v4435_v10 }
 0x1eb   :  { %v2218_v17 = vmul.f32 %v2210_v22, %v2109_v29  ;;  %v2070_v32 = vpop.f32.mrf.mxu0  ;;  %v2225_v35 = vpack.c.bf16 %v2217_v25, %v2217_v25 }
 0x1ec   :  { %v2111_v21 = vpop.f32.mrf.mxu1  ;;  %v2224_v27 = vpack.c.bf16 %v2216_v31, %v2216_v31  ;;  %v4268_v8 = vpop.eup %4267 }
 0x1ed   :  { %v2226_v33 = vpack.c.bf16 %v2218_v17, %v2218_v17  ;;  %3110 = vmatpush2.bf16.msra.mxu1 %v4186_v23  ;;  %v2071_v47 = vpop.f32.mrf.mxu0  ;;  %v2212_v13 = vmul.f32 %v4268_v8, %v4438_v14 }
 0x1ee   :  { %v2112_v30 = vpop.f32.mrf.mxu1  ;;  %3070 = vmatprep.mubr.bf16.mxu0 %v2224_v27 }
 0x1ef   :  { %3111 = vmatprep.mubr.bf16.mxu1 %v2226_v33  ;;  %3071 = vmatmul.mubr.bf16.vlgmr.msra.gmra.mxu0 %v2223_v34 }
 0x1f0   :  { %3112 = vmatmul.mubr.bf16.vlgmr.msra.gmra.mxu1 %v2225_v35  ;;  %3121 = vmatpush1.bf16.msra.mxu0 %v4189_v28 }
 0x1f1   :  { %3122 = vmatprep.subr.bf16.mxu0 %v4194_v36 }
 0x1f4   :  { %3123 = vmatpush1.bf16.msra.mxu0 %v4192_v37 }
 0x1f5   :  { %3124 = vmatprep.subr.bf16.mxu0 %v4197_v5  ;;  %v4269_v5 = vld [vmem:[#allocation2] sm:$0xff] }
 0x1f8   :  { %3125 = vmatpush1.bf16.msra.mxu0 %v4195_v38  ;;  %v2155_v38 = vadd.f32 %v4269_v5, %v4412_v16 }
 0x1f9   :  { %3126 = vmatprep.subr.bf16.mxu0 %v4200_v39 }
 0x1fc   :  { %3127 = vmatpush1.bf16.msra.mxu0 %v4198_v40 }
 0x1fd   :  { %3128 = vmatprep.subr.bf16.mxu0 %v4203_v41 }
 0x200   :  { %3129 = vmatpush1.bf16.msra.mxu0 %v4201_v42  ;;  %v4270_v42 = vld [vmem:[#allocation2 + $0x8] sm:$0xff] }
 0x201   :  { %3130 = vmatprep.subr.bf16.mxu0 %v4206_v43  ;;  %v2156_v43 = vadd.f32 %v4270_v42, %v4419_v19 }
 0x204   :  { %3131 = vmatpush1.bf16.msra.mxu0 %v4204_v46 }
 0x205   :  { %3132 = vmatprep.subr.bf16.mxu0 %v4209_v48 }
 0x208   :  { %3133 = vmatpush1.bf16.msra.mxu0 %v4207_v49 }
 0x209   :  { %3134 = vmatprep.subr.bf16.mxu0 %v4212_v50 }
 0x20c   :  { %3135 = vmatpush1.bf16.msra.mxu0 %v4210_v51 }
 0x20d   :  { %3136 = vmatprep.subr.bf16.mxu0 %v4215_v52 }
 0x210   :  { %3137 = vmatpush2.bf16.msra.mxu0 %v4213_v53 }
 0x211   :  { %3138 = vmatprep.subr.bf16.mxu0 %v4218_v54 }
 0x214   :  { %3139 = vmatpush2.bf16.msra.mxu0 %v4216_v56 }
 0x215   :  { %3140 = vmatprep.subr.bf16.mxu0 %v4221_v58 }
 0x218   :  { %3141 = vmatpush2.bf16.msra.mxu0 %v4219_v61 }
 0x219   :  { %3142 = vmatprep.subr.bf16.mxu0 %v4224_v62 }
 0x21c   :  { %3143 = vmatpush2.bf16.msra.mxu0 %v4222_v63 }
 0x21d   :  { %3144 = vmatprep.subr.bf16.mxu0 %v4227_v0 }
 0x220   :  { %3145 = vmatpush2.bf16.msra.mxu0 %v4225_v1 }
 0x221   :  { %3146 = vmatprep.subr.bf16.mxu0 %v4230_v2 }
 0x224   :  { %3147 = vmatpush2.bf16.msra.mxu0 %v4228_v3 }
 0x225   :  { %3148 = vmatprep.subr.bf16.mxu0 %v4233_v4 }
 0x227   :  { %v2148_v12 = vpop.f32.mrf.mxu0 }
 0x228   :  { %3149 = vmatpush2.bf16.msra.mxu0 %v4231_v7  ;;  %v2219_v18 = vmul.f32 %v2211_v11, %v2148_v12 }
 0x229   :  { %v2150_v20 = vpop.f32.mrf.mxu0  ;;  %3150 = vmatprep.subr.bf16.mxu0 %v4236_v9 }
 0x22a   :  { %v2220_v22 = vmul.f32 %v2212_v13, %v2150_v20  ;;  %v2227_v25 = vpack.c.bf16 %v2219_v18, %v2219_v18 }
 0x22b   :  { %v2152_v23 = vpop.f32.mrf.mxu0 }
 0x22c   :  { %v2228_v24 = vpack.c.bf16 %v2220_v22, %v2220_v22  ;;  %3151 = vmatpush2.bf16.msra.mxu0 %v4234_v15 }
 0x22d   :  { %v2153_v26 = vpop.f32.mrf.mxu0 }
 0x22e   :  { %3152 = vmatprep.mubr.bf16.mxu0 %v2228_v24 }
 0x22f   :  { %3153 = vmatmul.mubr.bf16.vlgmr.msra.gmra.mxu0 %v2227_v25 }
 0x270   :  { %v3031_v29 = vpop.f32.mrf.mxu1 }
 0x272   :  { %v3033_v31 = vpop.f32.mrf.mxu1 }
 0x274   :  { %v3035_v17 = vpop.f32.mrf.mxu1 }
 0x276   :  { %v3036_v10 = vpop.f32.mrf.mxu1 }
 0x2af   :  { %v3072_v32 = vpop.f32.mrf.mxu0 }
 0x2b0   :  { %v3113_v21 = vpop.f32.mrf.mxu1  ;;  %v3073_v47 = vadd.f32 %v3072_v32, %v3031_v29 }
 0x2b1   :  { %v3074_v14 = vpop.f32.mrf.mxu0 }
 0x2b2   :  { %v3115_v27 = vpop.f32.mrf.mxu1  ;;  %v3075_v36 = vadd.f32 %v3074_v14, %v3033_v31  ;;  %v3114_v30 = vadd.f32 %v3113_v21, %v3073_v47 }
 0x2b3   :  { %v3076_v33 = vpop.f32.mrf.mxu0 }
 0x2b4   :  { %v3117_v28 = vpop.f32.mrf.mxu1  ;;  %v3116_v39 = vadd.f32 %v3115_v27, %v3075_v36 }
 0x2b5   :  { %v3077_v34 = vpop.f32.mrf.mxu0 }
 0x2b6   :  { %v3118_v35 = vpop.f32.mrf.mxu1 }
 0x2ef   :  { %v3154_v37 = vpop.f32.mrf.mxu0 }
 0x2f0   :  { %v3155_v40 = vadd.f32 %v3154_v37, %v3114_v30 }
 0x2f1   :  { %v3156_v41 = vpop.f32.mrf.mxu0 }
 0x2f2   :  { %v3161_v44 = vadd.f32 %v3155_v40, %v2155_v38  ;;  %v3157_v45 = vadd.f32 %v3156_v41, %v3116_v39 }
 0x2f3   :  { %v3158_v46 = vpop.f32.mrf.mxu0 }
 0x2f4   :  { %3163 = vst [vmem:[#allocation8] sm:$0xff] %v3161_v44  ;;  %v3162_v48 = vadd.f32 %v3157_v45, %v2156_v43 }
 0x2f5   :  { %v3159_v49 = vpop.f32.mrf.mxu0 }
 0x2f6   :  { %3164 = vst [vmem:[#allocation8 + $0x8] sm:$0xff] %v3162_v48 }
 0x2f7   :  { %4342 = shalt.err (!%p4339_p5)
}
 0x2f8   :  { %3174 = dma.vmem_to_hbm [thread:$0]  %s3172_s2, 256, %s4460_s3, [#allocation4]  }
 0x2f9   :  { %4355 = dma.done.wait [#allocation4], 256  }
 0x2fa   :  { %4356 = vsyncadd [#allocation4], 4294967040 }
 0x2fb   :  { %3178 = vsyncpa [#allocation3], 1 }
 0x2fc   :  { %3179 = vsyncpa [#allocation6], 1 }
 0x2fd   :  { %3180 = vsyncpa [#allocation4], 1 }

// kernel: tpu_custom_call.1
= control target key start
LH: loop header
LB: loop body
LE: loop exit
PB: predicated region body
PF: predicated region fallthrough
CT: control target
= control target key end

     0   :  { %8 = vsyncpa [#allocation3], 0  ;;  %s4457_s0 = inlined_call_operand.hbm [shape: f32[8,256], index: 0, kind: input, shape index: {}]   ;;  %s4458_s1 = inlined_call_operand.hbm [shape: bf16[256,2304], index: 1, kind: input, shape index: {}]   ;;  %s4459_s2 = inlined_call_operand.hbm [shape: bf16[1024,256], index: 2, kind: input, shape index: {}]   ;;  %s4460_s3 = inlined_call_operand.hbm [shape: f32[8,256], index: 3, kind: output, shape index: {}]  }
   0x1   :  { %9 = vsyncpa [#allocation6], 0 }
   0x2   :  { %10 = vsyncpa [#allocation4], 0  ;;  %s4357_s12 = smov [#allocation5]  }
   0x3   :  { %s26_s13 = sshll.u32 %s4357_s12, 4  ;;  %s27_s13 = int_to_ptr.vmem [resolvable:$true] %s26_s13 }
   0x4   :  { %s4279_s14 = scalar_lea.vmem %s27_s13, 36864  ;;  %p4284_p1 = scmp.lt.s32.totalorder %s27_s13, %s27_s13 }
   0x5   :  { %p4280_p0 = scmp.ne.s32.totalorder %s27_s13, %s4279_s14  ;;  %p4285_p2 = scmp.lt.s32.totalorder %s4279_s14, %s4279_s14 }
   0x7   :  { %p4286_p3 = por %p4285_p2, %p4284_p1 }
   0x9   :  { %p4287_p4 = pnand %p4286_p3, %p4280_p0 }
   0xb   :  { %4290 = shalt.err (!%p4287_p4)
}
   0xc   :  { %s4358_s15 = smov 1152   ;;  %s4359_s16 = smov 72  }
   0xd   :  { %32 = dma.hbm_to_vmem [thread:$0]  %s4458_s1, 36864, %s27_s13, [#allocation6], %s4358_s15, %s4358_s15, %s4359_s16  }
   0xe   :  { %s4360_s19 = smov [#allocation2]   ;;  %s4361_s21 = smov [#allocation7]  }
   0xf   :  { %s17_s20 = sshll.u32 %s4360_s19, 4  ;;  %s38_s22 = sshll.u32 %s4361_s21, 4  ;;  %s18_s20 = int_to_ptr.vmem [resolvable:$true] %s17_s20  ;;  %s39_s22 = int_to_ptr.vmem [resolvable:$true] %s38_s22 }
  0x10   :  { %s4299_s23 = scalar_lea.vmem %s18_s20, 256  ;;  %p4304_p6 = scmp.lt.s32.totalorder %s18_s20, %s18_s20 }
  0x11   :  { %p4300_p5 = scmp.ne.s32.totalorder %s18_s20, %s4299_s23  ;;  %p4305_p7 = scmp.lt.s32.totalorder %s4299_s23, %s4299_s23 }
  0x13   :  { %p4306_p8 = por %p4305_p7, %p4304_p6 }
  0x15   :  { %p4307_p9 = pnand %p4306_p8, %p4300_p5 }
  0x17   :  { %4310 = shalt.err (!%p4307_p9)
}
  0x18   :  { %20 = dma.hbm_to_vmem [thread:$0]  %s4457_s0, 256, %s18_s20, [#allocation3]  }
  0x19   :  { %s4319_s26 = scalar_lea.vmem %s39_s22, 16384  ;;  %p4324_p11 = scmp.lt.s32.totalorder %s39_s22, %s39_s22 }
  0x1a   :  { %p4320_p10 = scmp.ne.s32.totalorder %s39_s22, %s4319_s26  ;;  %p4325_p12 = scmp.lt.s32.totalorder %s4319_s26, %s4319_s26 }
  0x1c   :  { %p4326_p13 = por %p4325_p12, %p4324_p11 }
  0x1e   :  { %p4327_p0 = pnand %p4326_p13, %p4320_p10 }
  0x20   :  { %4330 = shalt.err (!%p4327_p0)
}
  0x21   :  { %s4362_s1 = smov 128   ;;  %s4363_s27 = smov 8  }
  0x22   :  { %44 = dma.hbm_to_vmem [thread:$0]  %s4459_s2, 16384, %s39_s22, [#allocation6], %s4362_s1, %s4362_s1, %s4363_s27  }
  0x23   :  { %4351 = dma.done.wait [#allocation3], 256  }
  0x24   :  { %4352 = vsyncadd [#allocation3], 4294967040 }
  0x25   :  { %4353 = dma.done.wait [#allocation6], 53248  }
  0x26   :  { %4354 = vsyncadd [#allocation6], 4294914048  ;;  %v3613_v0 = vld [vmem:[#allocation5 + $0x3f4] ss:$72 sps:$4 sm:$0xff]   ;;  %v3617_v2 = vld [vmem:[#allocation5 + $0x3f0] ss:$72 sps:$4 sm:$0xff]  }
  0x27   :  { %v3615_v1 = vld [vmem:[#allocation5 + $0x3fc] ss:$72 sps:$4 sm:$0xff]   ;;  %1786 = vmatprep.subr.bf16.mxu0 %v3613_v0  ;;  %v3618_v3 = vld [vmem:[#allocation5 + $0x3f8] ss:$72 sps:$4 sm:$0xff]   ;;  %v3621_v5 = vld [vmem:[#allocation5 + $0x36c] ss:$72 sps:$4 sm:$0xff]  }
  0x28   :  { %1827 = vmatprep.subr.bf16.mxu1 %v3615_v1  ;;  %v3619_v4 = vld [vmem:[#allocation5 + $0x364] ss:$72 sps:$4 sm:$0xff]   ;;  %1787 = vmatpush1.bf16.msra.mxu0 %v3617_v2  ;;  %v3623_v6 = vld [vmem:[#allocation5 + $0x360] ss:$72 sps:$4 sm:$0xff]   ;;  %v3625_v8 = vld [vmem:[#allocation5 + $0x2d4] ss:$72 sps:$4 sm:$0xff]  }
  0x29   :  { %1828 = vmatpush1.bf16.msra.mxu1 %v3618_v3  ;;  %1788 = vmatprep.subr.bf16.mxu0 %v3619_v4  ;;  %v3624_v7 = vld [vmem:[#allocation5 + $0x368] ss:$72 sps:$4 sm:$0xff]   ;;  %v3627_v9 = vld [vmem:[#allocation5 + $0x2dc] ss:$72 sps:$4 sm:$0xff]   ;;  %v3630_v11 = vld [vmem:[#allocation5 + $0x2d8] ss:$72 sps:$4 sm:$0xff]  }
  0x2a   :  { %1829 = vmatprep.subr.bf16.mxu1 %v3621_v5  ;;  %v3629_v10 = vld [vmem:[#allocation5 + $0x2d0] ss:$72 sps:$4 sm:$0xff]   ;;  %v3631_v12 = vld [vmem:[#allocation5 + $0x244] ss:$72 sps:$4 sm:$0xff]   ;;  %v3635_v14 = vld [vmem:[#allocation5 + $0x240] ss:$72 sps:$4 sm:$0xff]  }
  0x2b   :  { %v3633_v13 = vld [vmem:[#allocation5 + $0x24c] ss:$72 sps:$4 sm:$0xff]   ;;  %v3636_v15 = vld [vmem:[#allocation5 + $0x248] ss:$72 sps:$4 sm:$0xff]   ;;  %v3639_v17 = vld [vmem:[#allocation5 + $0x1bc] ss:$72 sps:$4 sm:$0xff]  }
  0x2c   :  { %1789 = vmatpush1.bf16.msra.mxu0 %v3623_v6  ;;  %v3637_v16 = vld [vmem:[#allocation5 + $0x1b4] ss:$72 sps:$4 sm:$0xff]   ;;  %v3641_v18 = vld [vmem:[#allocation5 + $0x1b0] ss:$72 sps:$4 sm:$0xff]   ;;  %v3643_v20 = vld [vmem:[#allocation5 + $0x124] ss:$72 sps:$4 sm:$0xff]  }
  0x2d   :  { %1830 = vmatpush1.bf16.msra.mxu1 %v3624_v7  ;;  %1790 = vmatprep.subr.bf16.mxu0 %v3625_v8  ;;  %v3642_v19 = vld [vmem:[#allocation5 + $0x1b8] ss:$72 sps:$4 sm:$0xff]   ;;  %v3645_v21 = vld [vmem:[#allocation5 + $0x12c] ss:$72 sps:$4 sm:$0xff]   ;;  %v3648_v23 = vld [vmem:[#allocation5 + $0x128] ss:$72 sps:$4 sm:$0xff]  }
  0x2e   :  { %1831 = vmatprep.subr.bf16.mxu1 %v3627_v9  ;;  %v3647_v22 = vld [vmem:[#allocation5 + $0x120] ss:$72 sps:$4 sm:$0xff]   ;;  %v3649_v24 = vld [vmem:[#allocation5 + $0x94] ss:$72 sps:$4 sm:$0xff]   ;;  %v3653_v26 = vld [vmem:[#allocation5 + $0x90] ss:$72 sps:$4 sm:$0xff]  }
  0x2f   :  { %v3651_v25 = vld [vmem:[#allocation5 + $0x9c] ss:$72 sps:$4 sm:$0xff]   ;;  %v3654_v27 = vld [vmem:[#allocation5 + $0x98] ss:$72 sps:$4 sm:$0xff]   ;;  %v3657_v29 = vld [vmem:[#allocation5 + $0xc] ss:$72 sps:$4 sm:$0xff]  }
  0x30   :  { %1791 = vmatpush1.bf16.msra.mxu0 %v3629_v10  ;;  %v3655_v28 = vld [vmem:[#allocation5 + $0x4] ss:$72 sps:$4 sm:$0xff]   ;;  %v3659_v30 = vld [vmem:[#allocation5] ss:$72 sps:$4 sm:$0xff]   ;;  %v3661_v32 = vld [vmem:[#allocation5 + $0x874] ss:$72 sps:$4 sm:$0xff]  }
  0x31   :  { %1832 = vmatpush1.bf16.msra.mxu1 %v3630_v11  ;;  %1792 = vmatprep.subr.bf16.mxu0 %v3631_v12  ;;  %v3660_v31 = vld [vmem:[#allocation5 + $0x8] ss:$72 sps:$4 sm:$0xff]   ;;  %v3663_v33 = vld [vmem:[#allocation5 + $0x87c] ss:$72 sps:$4 sm:$0xff]   ;;  %v3666_v35 = vld [vmem:[#allocation5 + $0x878] ss:$72 sps:$4 sm:$0xff]  }
  0x32   :  { %1833 = vmatprep.subr.bf16.mxu1 %v3633_v13  ;;  %v3665_v34 = vld [vmem:[#allocation5 + $0x870] ss:$72 sps:$4 sm:$0xff]   ;;  %v3667_v36 = vld [vmem:[#allocation5 + $0x7e4] ss:$72 sps:$4 sm:$0xff]   ;;  %v3671_v38 = vld [vmem:[#allocation5 + $0x7e0] ss:$72 sps:$4 sm:$0xff]  }
  0x33   :  { %v3669_v37 = vld [vmem:[#allocation5 + $0x7ec] ss:$72 sps:$4 sm:$0xff]   ;;  %v3672_v39 = vld [vmem:[#allocation5 + $0x7e8] ss:$72 sps:$4 sm:$0xff]   ;;  %v3675_v41 = vld [vmem:[#allocation5 + $0x75c] ss:$72 sps:$4 sm:$0xff]  }
  0x34   :  { %1793 = vmatpush1.bf16.msra.mxu0 %v3635_v14  ;;  %v3673_v40 = vld [vmem:[#allocation5 + $0x754] ss:$72 sps:$4 sm:$0xff]   ;;  %v3677_v42 = vld [vmem:[#allocation5 + $0x750] ss:$72 sps:$4 sm:$0xff]   ;;  %v3679_v44 = vld [vmem:[#allocation5 + $0x6c4] ss:$72 sps:$4 sm:$0xff]  }
  0x35   :  { %1834 = vmatpush1.bf16.msra.mxu1 %v3636_v15  ;;  %1794 = vmatprep.subr.bf16.mxu0 %v3637_v16  ;;  %v3678_v43 = vld [vmem:[#allocation5 + $0x758] ss:$72 sps:$4 sm:$0xff]   ;;  %v3681_v45 = vld [vmem:[#allocation5 + $0x6cc] ss:$72 sps:$4 sm:$0xff]   ;;  %v3684_v49 = vld [vmem:[#allocation5 + $0x6c8] ss:$72 sps:$4 sm:$0xff]  }
  0x36   :  { %1835 = vmatprep.subr.bf16.mxu1 %v3639_v17  ;;  %v55_v46 = vld [vmem:[#allocation2 + $0x8] sm:$0xff]  ;;  %v3683_v48 = vld [vmem:[#allocation5 + $0x6c0] ss:$72 sps:$4 sm:$0xff]   ;;  %v3691_v54 = vld [vmem:[#allocation5 + $0x5a4] ss:$72 sps:$4 sm:$0xff]   ;;  %s4364_s0 = smov [#allocation8]  }
  0x37   :  { %v4394_v47 = vpack.c.bf16 %v55_v46, %v55_v46  ;;  %v3685_v50 = vld [vmem:[#allocation5 + $0x634] ss:$72 sps:$4 sm:$0xff]   ;;  %v3689_v52 = vld [vmem:[#allocation5 + $0x630] ss:$72 sps:$4 sm:$0xff]   ;;  %v3695_v56 = vld [vmem:[#allocation5 + $0x5a0] ss:$72 sps:$4 sm:$0xff]  }
  0x38   :  { %1795 = vmatpush1.bf16.msra.mxu0 %v3641_v18  ;;  %v3687_v51 = vld [vmem:[#allocation5 + $0x63c] ss:$72 sps:$4 sm:$0xff]   ;;  %v3690_v53 = vld [vmem:[#allocation5 + $0x638] ss:$72 sps:$4 sm:$0xff]   ;;  %v3693_v55 = vld [vmem:[#allocation5 + $0x5ac] ss:$72 sps:$4 sm:$0xff]  }
  0x39   :  { %1836 = vmatpush1.bf16.msra.mxu1 %v3642_v19  ;;  %1796 = vmatprep.subr.bf16.mxu0 %v3643_v20  ;;  %v3696_v57 = vld [vmem:[#allocation5 + $0x5a8] ss:$72 sps:$4 sm:$0xff]   ;;  %v3697_v58 = vld [vmem:[#allocation5 + $0x514] ss:$72 sps:$4 sm:$0xff]   ;;  %v3702_v61 = vld [vmem:[#allocation5 + $0x518] ss:$72 sps:$4 sm:$0xff]  }
  0x3a   :  { %1837 = vmatprep.subr.bf16.mxu1 %v3645_v21  ;;  %1818 = vmatprep.mubr.bf16.mxu0 %v4394_v47  ;;  %v3699_v59 = vld [vmem:[#allocation5 + $0x51c] ss:$72 sps:$4 sm:$0xff]   ;;  %v3701_v60 = vld [vmem:[#allocation5 + $0x510] ss:$72 sps:$4 sm:$0xff]   ;;  %v3705_v63 = vld [vmem:[#allocation5 + $0x48c] ss:$72 sps:$4 sm:$0xff]  }
  0x3b   :  { %1859 = vmatprep.mubr.bf16.mxu1 %v4394_v47  ;;  %v3703_v62 = vld [vmem:[#allocation5 + $0x484] ss:$72 sps:$4 sm:$0xff]   ;;  %v3707_v0 = vld [vmem:[#allocation5 + $0x480] ss:$72 sps:$4 sm:$0xff]   ;;  %v54_v2 = vld [vmem:[#allocation2] sm:$0xff]  ;;  %s3171_s2 = sshll.u32 %s4364_s0, 4  ;;  %s3172_s2 = int_to_ptr.vmem [resolvable:$true] %s3171_s2 }
  0x3c   :  { %1797 = vmatpush1.bf16.msra.mxu0 %v3647_v22  ;;  %v3708_v1 = vld [vmem:[#allocation5 + $0x488] ss:$72 sps:$4 sm:$0xff]   ;;  %v3711_v3 = vld [vmem:[#allocation5 + $0x404] ss:$72 sps:$4 sm:$0xff]   ;;  %v4398_v5 = vpack.c.bf16 %v54_v2, %v54_v2  ;;  %v3717_v8 = vld [vmem:[#allocation5 + $0x374] ss:$72 sps:$4 sm:$0xff]   ;;  %p4336_p2 = scmp.lt.s32.totalorder %s3172_s2, %s3172_s2 }
  0x3d   :  { %1838 = vmatpush1.bf16.msra.mxu1 %v3648_v23  ;;  %1798 = vmatprep.subr.bf16.mxu0 %v3649_v24  ;;  %v3714_v4 = vld [vmem:[#allocation5 + $0x40c] ss:$72 sps:$4 sm:$0xff]   ;;  %v3709_v6 = vld [vmem:[#allocation5 + $0x400] ss:$72 sps:$4 sm:$0xff]   ;;  %v3720_v9 = vld [vmem:[#allocation5 + $0x37c] ss:$72 sps:$4 sm:$0xff]  }
  0x3e   :  { %1839 = vmatprep.subr.bf16.mxu1 %v3651_v25  ;;  %v3712_v7 = vld [vmem:[#allocation5 + $0x408] ss:$72 sps:$4 sm:$0xff]   ;;  %v3718_v11 = vld [vmem:[#allocation5 + $0x378] ss:$72 sps:$4 sm:$0xff]   ;;  %v3723_v12 = vld [vmem:[#allocation5 + $0x2e4] ss:$72 sps:$4 sm:$0xff]  }
  0x3f   :  { %v3715_v10 = vld [vmem:[#allocation5 + $0x370] ss:$72 sps:$4 sm:$0xff]   ;;  %v3726_v13 = vld [vmem:[#allocation5 + $0x2ec] ss:$72 sps:$4 sm:$0xff]   ;;  %v3721_v14 = vld [vmem:[#allocation5 + $0x2e0] ss:$72 sps:$4 sm:$0xff]  }
  0x40   :  { %1799 = vmatpush1.bf16.msra.mxu0 %v3653_v26  ;;  %v3724_v15 = vld [vmem:[#allocation5 + $0x2e8] ss:$72 sps:$4 sm:$0xff]   ;;  %v3729_v16 = vld [vmem:[#allocation5 + $0x254] ss:$72 sps:$4 sm:$0xff]   ;;  %v3730_v19 = vld [vmem:[#allocation5 + $0x258] ss:$72 sps:$4 sm:$0xff]  }
  0x41   :  { %1840 = vmatpush1.bf16.msra.mxu1 %v3654_v27  ;;  %1800 = vmatprep.subr.bf16.mxu0 %v3655_v28  ;;  %v3732_v17 = vld [vmem:[#allocation5 + $0x25c] ss:$72 sps:$4 sm:$0xff]   ;;  %v3727_v18 = vld [vmem:[#allocation5 + $0x250] ss:$72 sps:$4 sm:$0xff]   ;;  %v3738_v21 = vld [vmem:[#allocation5 + $0x1cc] ss:$72 sps:$4 sm:$0xff]  }
  0x42   :  { %1841 = vmatprep.subr.bf16.mxu1 %v3657_v29  ;;  %v3735_v20 = vld [vmem:[#allocation5 + $0x1c4] ss:$72 sps:$4 sm:$0xff]   ;;  %v3733_v22 = vld [vmem:[#allocation5 + $0x1c0] ss:$72 sps:$4 sm:$0xff]   ;;  %v3741_v24 = vld [vmem:[#allocation5 + $0x134] ss:$72 sps:$4 sm:$0xff]  }
  0x43   :  { %v3736_v23 = vld [vmem:[#allocation5 + $0x1c8] ss:$72 sps:$4 sm:$0xff]   ;;  %v3744_v25 = vld [vmem:[#allocation5 + $0x13c] ss:$72 sps:$4 sm:$0xff]   ;;  %v3742_v27 = vld [vmem:[#allocation5 + $0x138] ss:$72 sps:$4 sm:$0xff]  }
  0x44   :  { %1801 = vmatpush1.bf16.msra.mxu0 %v3659_v30  ;;  %v3739_v26 = vld [vmem:[#allocation5 + $0x130] ss:$72 sps:$4 sm:$0xff]   ;;  %v3747_v28 = vld [vmem:[#allocation5 + $0xa4] ss:$72 sps:$4 sm:$0xff]   ;;  %v3745_v30 = vld [vmem:[#allocation5 + $0xa0] ss:$72 sps:$4 sm:$0xff]  }
  0x45   :  { %1842 = vmatpush1.bf16.msra.mxu1 %v3660_v31  ;;  %1802 = vmatprep.subr.bf16.mxu0 %v3661_v32  ;;  %v3750_v29 = vld [vmem:[#allocation5 + $0xac] ss:$72 sps:$4 sm:$0xff]   ;;  %v3748_v31 = vld [vmem:[#allocation5 + $0xa8] ss:$72 sps:$4 sm:$0xff]   ;;  %v3804_v2 = vld [vmem:[#allocation5 + $0x49c] ss:$72 sps:$4 sm:$0xff]  }
  0x46   :  { %1843 = vmatprep.subr.bf16.mxu1 %v3663_v33  ;;  %v3753_v32 = vld [vmem:[#allocation5 + $0x14] ss:$72 sps:$4 sm:$0xff]   ;;  %v3769_v46 = vld [vmem:[#allocation5 + $0x760] ss:$72 sps:$4 sm:$0xff]   ;;  %s4331_s30 = scalar_lea.vmem %s3172_s2, 256 }
  0x47   :  { %v3756_v33 = vld [vmem:[#allocation5 + $0x1c] ss:$72 sps:$4 sm:$0xff]   ;;  %p4332_p1 = scmp.ne.s32.totalorder %s3172_s2, %s4331_s30  ;;  %p4337_p3 = scmp.lt.s32.totalorder %s4331_s30, %s4331_s30 }
  0x48   :  { %1803 = vmatpush2.bf16.msra.mxu0 %v3665_v34  ;;  %v3751_v34 = vld [vmem:[#allocation5 + $0x10] ss:$72 sps:$4 sm:$0xff]  }
  0x49   :  { %1844 = vmatpush2.bf16.msra.mxu1 %v3666_v35  ;;  %1804 = vmatprep.subr.bf16.mxu0 %v3667_v36  ;;  %v3754_v35 = vld [vmem:[#allocation5 + $0x18] ss:$72 sps:$4 sm:$0xff]   ;;  %v3759_v36 = vld [vmem:[#allocation5 + $0x884] ss:$72 sps:$4 sm:$0xff]   ;;  %p4338_p4 = por %p4337_p3, %p4336_p2 }
  0x4a   :  { %1845 = vmatprep.subr.bf16.mxu1 %v3669_v37  ;;  %v3762_v37 = vld [vmem:[#allocation5 + $0x88c] ss:$72 sps:$4 sm:$0xff]  }
  0x4b   :  { %p4339_p5 = pnand %p4338_p4, %p4332_p1 }
  0x4c   :  { %1805 = vmatpush2.bf16.msra.mxu0 %v3671_v38  ;;  %v3757_v38 = vld [vmem:[#allocation5 + $0x880] ss:$72 sps:$4 sm:$0xff]  }
  0x4d   :  { %1846 = vmatpush2.bf16.msra.mxu1 %v3672_v39  ;;  %1806 = vmatprep.subr.bf16.mxu0 %v3673_v40  ;;  %v3760_v39 = vld [vmem:[#allocation5 + $0x888] ss:$72 sps:$4 sm:$0xff]   ;;  %v3765_v40 = vld [vmem:[#allocation5 + $0x7f4] ss:$72 sps:$4 sm:$0xff]  }
  0x4e   :  { %1847 = vmatprep.subr.bf16.mxu1 %v3675_v41  ;;  %v3768_v41 = vld [vmem:[#allocation5 + $0x7fc] ss:$72 sps:$4 sm:$0xff]  }
  0x50   :  { %1807 = vmatpush2.bf16.msra.mxu0 %v3677_v42  ;;  %v3763_v42 = vld [vmem:[#allocation5 + $0x7f0] ss:$72 sps:$4 sm:$0xff]  }
  0x51   :  { %1848 = vmatpush2.bf16.msra.mxu1 %v3678_v43  ;;  %1808 = vmatprep.subr.bf16.mxu0 %v3679_v44  ;;  %v3766_v43 = vld [vmem:[#allocation5 + $0x7f8] ss:$72 sps:$4 sm:$0xff]   ;;  %v3771_v44 = vld [vmem:[#allocation5 + $0x764] ss:$72 sps:$4 sm:$0xff]  }
  0x52   :  { %1849 = vmatprep.subr.bf16.mxu1 %v3681_v45  ;;  %v3774_v45 = vld [vmem:[#allocation5 + $0x76c] ss:$72 sps:$4 sm:$0xff]  }
  0x54   :  { %1809 = vmatpush2.bf16.msra.mxu0 %v3683_v48  ;;  %v3772_v48 = vld [vmem:[#allocation5 + $0x768] ss:$72 sps:$4 sm:$0xff]  }
  0x55   :  { %1850 = vmatpush2.bf16.msra.mxu1 %v3684_v49  ;;  %1810 = vmatprep.subr.bf16.mxu0 %v3685_v50  ;;  %v3777_v49 = vld [vmem:[#allocation5 + $0x6d4] ss:$72 sps:$4 sm:$0xff]  }
  0x56   :  { %1851 = vmatprep.subr.bf16.mxu1 %v3687_v51  ;;  %v3780_v50 = vld [vmem:[#allocation5 + $0x6dc] ss:$72 sps:$4 sm:$0xff]   ;;  %v3775_v51 = vld [vmem:[#allocation5 + $0x6d0] ss:$72 sps:$4 sm:$0xff]  }
  0x58   :  { %1811 = vmatpush2.bf16.msra.mxu0 %v3689_v52  ;;  %v3778_v52 = vld [vmem:[#allocation5 + $0x6d8] ss:$72 sps:$4 sm:$0xff]  }
  0x59   :  { %1852 = vmatpush2.bf16.msra.mxu1 %v3690_v53  ;;  %1812 = vmatprep.subr.bf16.mxu0 %v3691_v54  ;;  %v3783_v53 = vld [vmem:[#allocation5 + $0x644] ss:$72 sps:$4 sm:$0xff]  }
  0x5a   :  { %1853 = vmatprep.subr.bf16.mxu1 %v3693_v55  ;;  %v3786_v54 = vld [vmem:[#allocation5 + $0x64c] ss:$72 sps:$4 sm:$0xff]   ;;  %v3781_v55 = vld [vmem:[#allocation5 + $0x640] ss:$72 sps:$4 sm:$0xff]  }
  0x5c   :  { %1813 = vmatpush2.bf16.msra.mxu0 %v3695_v56  ;;  %v3784_v56 = vld [vmem:[#allocation5 + $0x648] ss:$72 sps:$4 sm:$0xff]  }
  0x5d   :  { %1854 = vmatpush2.bf16.msra.mxu1 %v3696_v57  ;;  %1814 = vmatprep.subr.bf16.mxu0 %v3697_v58  ;;  %v3789_v57 = vld [vmem:[#allocation5 + $0x5b4] ss:$72 sps:$4 sm:$0xff]  }
  0x5e   :  { %1855 = vmatprep.subr.bf16.mxu1 %v3699_v59  ;;  %v3792_v58 = vld [vmem:[#allocation5 + $0x5bc] ss:$72 sps:$4 sm:$0xff]   ;;  %v3787_v59 = vld [vmem:[#allocation5 + $0x5b0] ss:$72 sps:$4 sm:$0xff]  }
  0x60   :  { %1815 = vmatpush2.bf16.msra.mxu0 %v3701_v60  ;;  %v3790_v60 = vld [vmem:[#allocation5 + $0x5b8] ss:$72 sps:$4 sm:$0xff]  }
  0x61   :  { %1856 = vmatpush2.bf16.msra.mxu1 %v3702_v61  ;;  %1816 = vmatprep.subr.bf16.mxu0 %v3703_v62  ;;  %v3795_v61 = vld [vmem:[#allocation5 + $0x524] ss:$72 sps:$4 sm:$0xff]  }
  0x62   :  { %1857 = vmatprep.subr.bf16.mxu1 %v3705_v63  ;;  %v3798_v62 = vld [vmem:[#allocation5 + $0x52c] ss:$72 sps:$4 sm:$0xff]   ;;  %v3793_v63 = vld [vmem:[#allocation5 + $0x520] ss:$72 sps:$4 sm:$0xff]  }
  0x64   :  { %1817 = vmatpush2.bf16.msra.mxu0 %v3707_v0  ;;  %v3796_v0 = vld [vmem:[#allocation5 + $0x528] ss:$72 sps:$4 sm:$0xff]  }
  0x65   :  { %1858 = vmatpush2.bf16.msra.mxu1 %v3708_v1  ;;  %1868 = vmatprep.subr.bf16.mxu0 %v3711_v3  ;;  %v3801_v1 = vld [vmem:[#allocation5 + $0x494] ss:$72 sps:$4 sm:$0xff]   ;;  %v3799_v3 = vld [vmem:[#allocation5 + $0x490] ss:$72 sps:$4 sm:$0xff]  }
  0x66   :  { %1909 = vmatprep.subr.bf16.mxu1 %v3714_v4  ;;  %v3802_v4 = vld [vmem:[#allocation5 + $0x498] ss:$72 sps:$4 sm:$0xff]  }
  0x67   :  { %1819 = vmatmul.mubr.bf16.vlgmr.msra.gmra.mxu0 %v4398_v5 }
  0x68   :  { %1860 = vmatmul.mubr.bf16.vlgmr.msra.gmra.mxu1 %v4398_v5  ;;  %1869 = vmatpush1.bf16.msra.mxu0 %v3709_v6  ;;  %v3807_v6 = vld [vmem:[#allocation5 + $0x414] ss:$72 sps:$4 sm:$0xff]  }
  0x69   :  { %1910 = vmatpush1.bf16.msra.mxu1 %v3712_v7  ;;  %1870 = vmatprep.subr.bf16.mxu0 %v3717_v8  ;;  %v3810_v7 = vld [vmem:[#allocation5 + $0x41c] ss:$72 sps:$4 sm:$0xff]   ;;  %v3805_v8 = vld [vmem:[#allocation5 + $0x410] ss:$72 sps:$4 sm:$0xff]  }
  0x6a   :  { %1911 = vmatprep.subr.bf16.mxu1 %v3720_v9  ;;  %1900 = vmatprep.mubr.bf16.mxu0 %v4394_v47  ;;  %v3808_v9 = vld [vmem:[#allocation5 + $0x418] ss:$72 sps:$4 sm:$0xff]  }
  0x6b   :  { %1941 = vmatprep.mubr.bf16.mxu1 %v4394_v47 }
  0x6c   :  { %1871 = vmatpush1.bf16.msra.mxu0 %v3715_v10  ;;  %v3813_v10 = vld [vmem:[#allocation5 + $0x384] ss:$72 sps:$4 sm:$0xff]  }
  0x6d   :  { %1912 = vmatpush1.bf16.msra.mxu1 %v3718_v11  ;;  %1872 = vmatprep.subr.bf16.mxu0 %v3723_v12  ;;  %v3816_v11 = vld [vmem:[#allocation5 + $0x38c] ss:$72 sps:$4 sm:$0xff]   ;;  %v3811_v12 = vld [vmem:[#allocation5 + $0x380] ss:$72 sps:$4 sm:$0xff]  }
  0x6e   :  { %1913 = vmatprep.subr.bf16.mxu1 %v3726_v13  ;;  %v3814_v13 = vld [vmem:[#allocation5 + $0x388] ss:$72 sps:$4 sm:$0xff]  }
  0x70   :  { %1873 = vmatpush1.bf16.msra.mxu0 %v3721_v14  ;;  %v3819_v14 = vld [vmem:[#allocation5 + $0x2f4] ss:$72 sps:$4 sm:$0xff]  }
  0x71   :  { %1914 = vmatpush1.bf16.msra.mxu1 %v3724_v15  ;;  %1874 = vmatprep.subr.bf16.mxu0 %v3729_v16  ;;  %v3822_v15 = vld [vmem:[#allocation5 + $0x2fc] ss:$72 sps:$4 sm:$0xff]   ;;  %v3817_v16 = vld [vmem:[#allocation5 + $0x2f0] ss:$72 sps:$4 sm:$0xff]  }
  0x72   :  { %1915 = vmatprep.subr.bf16.mxu1 %v3732_v17  ;;  %v3820_v17 = vld [vmem:[#allocation5 + $0x2f8] ss:$72 sps:$4 sm:$0xff]  }
  0x74   :  { %1875 = vmatpush1.bf16.msra.mxu0 %v3727_v18  ;;  %v3825_v18 = vld [vmem:[#allocation5 + $0x264] ss:$72 sps:$4 sm:$0xff]  }
  0x75   :  { %1916 = vmatpush1.bf16.msra.mxu1 %v3730_v19  ;;  %1876 = vmatprep.subr.bf16.mxu0 %v3735_v20  ;;  %v3828_v19 = vld [vmem:[#allocation5 + $0x26c] ss:$72 sps:$4 sm:$0xff]   ;;  %v3823_v20 = vld [vmem:[#allocation5 + $0x260] ss:$72 sps:$4 sm:$0xff]  }
  0x76   :  { %1917 = vmatprep.subr.bf16.mxu1 %v3738_v21  ;;  %v3826_v21 = vld [vmem:[#allocation5 + $0x268] ss:$72 sps:$4 sm:$0xff]  }
  0x78   :  { %1877 = vmatpush1.bf16.msra.mxu0 %v3733_v22  ;;  %v3831_v22 = vld [vmem:[#allocation5 + $0x1d4] ss:$72 sps:$4 sm:$0xff]  }
  0x79   :  { %1918 = vmatpush1.bf16.msra.mxu1 %v3736_v23  ;;  %1878 = vmatprep.subr.bf16.mxu0 %v3741_v24  ;;  %v3834_v23 = vld [vmem:[#allocation5 + $0x1dc] ss:$72 sps:$4 sm:$0xff]   ;;  %v3829_v24 = vld [vmem:[#allocation5 + $0x1d0] ss:$72 sps:$4 sm:$0xff]  }
  0x7a   :  { %1919 = vmatprep.subr.bf16.mxu1 %v3744_v25  ;;  %v3832_v25 = vld [vmem:[#allocation5 + $0x1d8] ss:$72 sps:$4 sm:$0xff]  }
  0x7c   :  { %1879 = vmatpush1.bf16.msra.mxu0 %v3739_v26  ;;  %v3837_v26 = vld [vmem:[#allocation5 + $0x144] ss:$72 sps:$4 sm:$0xff]  }
  0x7d   :  { %1920 = vmatpush1.bf16.msra.mxu1 %v3742_v27  ;;  %1880 = vmatprep.subr.bf16.mxu0 %v3747_v28  ;;  %v3840_v27 = vld [vmem:[#allocation5 + $0x14c] ss:$72 sps:$4 sm:$0xff]   ;;  %v3835_v28 = vld [vmem:[#allocation5 + $0x140] ss:$72 sps:$4 sm:$0xff]  }
  0x7e   :  { %1921 = vmatprep.subr.bf16.mxu1 %v3750_v29  ;;  %v3838_v29 = vld [vmem:[#allocation5 + $0x148] ss:$72 sps:$4 sm:$0xff]  }
  0x80   :  { %1881 = vmatpush1.bf16.msra.mxu0 %v3745_v30  ;;  %v3843_v30 = vld [vmem:[#allocation5 + $0xb4] ss:$72 sps:$4 sm:$0xff]  }
  0x81   :  { %1922 = vmatpush1.bf16.msra.mxu1 %v3748_v31  ;;  %1882 = vmatprep.subr.bf16.mxu0 %v3753_v32  ;;  %v3846_v31 = vld [vmem:[#allocation5 + $0xbc] ss:$72 sps:$4 sm:$0xff]   ;;  %v3841_v32 = vld [vmem:[#allocation5 + $0xb0] ss:$72 sps:$4 sm:$0xff]  }
  0x82   :  { %1923 = vmatprep.subr.bf16.mxu1 %v3756_v33  ;;  %v3844_v33 = vld [vmem:[#allocation5 + $0xb8] ss:$72 sps:$4 sm:$0xff]  }
  0x84   :  { %1883 = vmatpush1.bf16.msra.mxu0 %v3751_v34  ;;  %v3849_v34 = vld [vmem:[#allocation5 + $0x24] ss:$72 sps:$4 sm:$0xff]  }
  0x85   :  { %1924 = vmatpush1.bf16.msra.mxu1 %v3754_v35  ;;  %1884 = vmatprep.subr.bf16.mxu0 %v3759_v36  ;;  %v3852_v35 = vld [vmem:[#allocation5 + $0x2c] ss:$72 sps:$4 sm:$0xff]   ;;  %v3847_v36 = vld [vmem:[#allocation5 + $0x20] ss:$72 sps:$4 sm:$0xff]  }
  0x86   :  { %1925 = vmatprep.subr.bf16.mxu1 %v3762_v37  ;;  %v3850_v37 = vld [vmem:[#allocation5 + $0x28] ss:$72 sps:$4 sm:$0xff]  }
  0x88   :  { %1885 = vmatpush2.bf16.msra.mxu0 %v3757_v38  ;;  %v3855_v38 = vld [vmem:[#allocation5 + $0x894] ss:$72 sps:$4 sm:$0xff]  }
  0x89   :  { %1926 = vmatpush2.bf16.msra.mxu1 %v3760_v39  ;;  %1886 = vmatprep.subr.bf16.mxu0 %v3765_v40  ;;  %v3858_v39 = vld [vmem:[#allocation5 + $0x89c] ss:$72 sps:$4 sm:$0xff]   ;;  %v3853_v40 = vld [vmem:[#allocation5 + $0x890] ss:$72 sps:$4 sm:$0xff]  }
  0x8a   :  { %1927 = vmatprep.subr.bf16.mxu1 %v3768_v41  ;;  %v3856_v41 = vld [vmem:[#allocation5 + $0x898] ss:$72 sps:$4 sm:$0xff]  }
  0x8c   :  { %1887 = vmatpush2.bf16.msra.mxu0 %v3763_v42  ;;  %v3861_v42 = vld [vmem:[#allocation5 + $0x804] ss:$72 sps:$4 sm:$0xff]  }
  0x8d   :  { %1928 = vmatpush2.bf16.msra.mxu1 %v3766_v43  ;;  %1888 = vmatprep.subr.bf16.mxu0 %v3771_v44  ;;  %v3864_v43 = vld [vmem:[#allocation5 + $0x80c] ss:$72 sps:$4 sm:$0xff]   ;;  %v3859_v44 = vld [vmem:[#allocation5 + $0x800] ss:$72 sps:$4 sm:$0xff]  }
  0x8e   :  { %1929 = vmatprep.subr.bf16.mxu1 %v3774_v45  ;;  %v3862_v45 = vld [vmem:[#allocation5 + $0x808] ss:$72 sps:$4 sm:$0xff]  }
  0x90   :  { %1889 = vmatpush2.bf16.msra.mxu0 %v3769_v46  ;;  %v3867_v46 = vld [vmem:[#allocation5 + $0x774] ss:$72 sps:$4 sm:$0xff]  }
  0x91   :  { %1930 = vmatpush2.bf16.msra.mxu1 %v3772_v48  ;;  %1890 = vmatprep.subr.bf16.mxu0 %v3777_v49  ;;  %v3870_v48 = vld [vmem:[#allocation5 + $0x77c] ss:$72 sps:$4 sm:$0xff]   ;;  %v3865_v49 = vld [vmem:[#allocation5 + $0x770] ss:$72 sps:$4 sm:$0xff]  }
  0x92   :  { %1931 = vmatprep.subr.bf16.mxu1 %v3780_v50  ;;  %v3868_v50 = vld [vmem:[#allocation5 + $0x778] ss:$72 sps:$4 sm:$0xff]  }
  0x94   :  { %1891 = vmatpush2.bf16.msra.mxu0 %v3775_v51  ;;  %v3873_v51 = vld [vmem:[#allocation5 + $0x6e4] ss:$72 sps:$4 sm:$0xff]  }
  0x95   :  { %1932 = vmatpush2.bf16.msra.mxu1 %v3778_v52  ;;  %1892 = vmatprep.subr.bf16.mxu0 %v3783_v53  ;;  %v3876_v52 = vld [vmem:[#allocation5 + $0x6ec] ss:$72 sps:$4 sm:$0xff]   ;;  %v3871_v53 = vld [vmem:[#allocation5 + $0x6e0] ss:$72 sps:$4 sm:$0xff]  }
  0x96   :  { %1933 = vmatprep.subr.bf16.mxu1 %v3786_v54  ;;  %v3874_v54 = vld [vmem:[#allocation5 + $0x6e8] ss:$72 sps:$4 sm:$0xff]  }
  0x98   :  { %1893 = vmatpush2.bf16.msra.mxu0 %v3781_v55  ;;  %v3879_v55 = vld [vmem:[#allocation5 + $0x654] ss:$72 sps:$4 sm:$0xff]  }
  0x99   :  { %1934 = vmatpush2.bf16.msra.mxu1 %v3784_v56  ;;  %1894 = vmatprep.subr.bf16.mxu0 %v3789_v57  ;;  %v3882_v56 = vld [vmem:[#allocation5 + $0x65c] ss:$72 sps:$4 sm:$0xff]   ;;  %v3877_v57 = vld [vmem:[#allocation5 + $0x650] ss:$72 sps:$4 sm:$0xff]  }
  0x9a   :  { %1935 = vmatprep.subr.bf16.mxu1 %v3792_v58  ;;  %v3880_v58 = vld [vmem:[#allocation5 + $0x658] ss:$72 sps:$4 sm:$0xff]  }
  0x9c   :  { %1895 = vmatpush2.bf16.msra.mxu0 %v3787_v59  ;;  %v3885_v59 = vld [vmem:[#allocation5 + $0x5c4] ss:$72 sps:$4 sm:$0xff]  }
  0x9d   :  { %1936 = vmatpush2.bf16.msra.mxu1 %v3790_v60  ;;  %1896 = vmatprep.subr.bf16.mxu0 %v3795_v61  ;;  %v3888_v60 = vld [vmem:[#allocation5 + $0x5cc] ss:$72 sps:$4 sm:$0xff]   ;;  %v3883_v61 = vld [vmem:[#allocation5 + $0x5c0] ss:$72 sps:$4 sm:$0xff]  }
  0x9e   :  { %1937 = vmatprep.subr.bf16.mxu1 %v3798_v62  ;;  %v3886_v62 = vld [vmem:[#allocation5 + $0x5c8] ss:$72 sps:$4 sm:$0xff]  }
  0xa0   :  { %1897 = vmatpush2.bf16.msra.mxu0 %v3793_v63  ;;  %v3891_v63 = vld [vmem:[#allocation5 + $0x534] ss:$72 sps:$4 sm:$0xff]  }
  0xa1   :  { %1938 = vmatpush2.bf16.msra.mxu1 %v3796_v0  ;;  %1898 = vmatprep.subr.bf16.mxu0 %v3801_v1  ;;  %v3894_v0 = vld [vmem:[#allocation5 + $0x53c] ss:$72 sps:$4 sm:$0xff]   ;;  %v3889_v1 = vld [vmem:[#allocation5 + $0x530] ss:$72 sps:$4 sm:$0xff]  }
  0xa2   :  { %1939 = vmatprep.subr.bf16.mxu1 %v3804_v2  ;;  %v3892_v2 = vld [vmem:[#allocation5 + $0x538] ss:$72 sps:$4 sm:$0xff]  }
  0xa4   :  { %1899 = vmatpush2.bf16.msra.mxu0 %v3799_v3  ;;  %v3897_v3 = vld [vmem:[#allocation5 + $0x4a4] ss:$72 sps:$4 sm:$0xff]  }
  0xa5   :  { %1940 = vmatpush2.bf16.msra.mxu1 %v3802_v4  ;;  %1950 = vmatprep.subr.bf16.mxu0 %v3807_v6  ;;  %v3900_v4 = vld [vmem:[#allocation5 + $0x4ac] ss:$72 sps:$4 sm:$0xff]   ;;  %v3895_v6 = vld [vmem:[#allocation5 + $0x4a0] ss:$72 sps:$4 sm:$0xff]  }
  0xa6   :  { %1991 = vmatprep.subr.bf16.mxu1 %v3810_v7  ;;  %v3898_v7 = vld [vmem:[#allocation5 + $0x4a8] ss:$72 sps:$4 sm:$0xff]  }
  0xa7   :  { %1901 = vmatmul.mubr.bf16.vlgmr.msra.gmra.mxu0 %v4398_v5 }
  0xa8   :  { %1942 = vmatmul.mubr.bf16.vlgmr.msra.gmra.mxu1 %v4398_v5  ;;  %1951 = vmatpush1.bf16.msra.mxu0 %v3805_v8  ;;  %v3903_v8 = vld [vmem:[#allocation5 + $0x424] ss:$72 sps:$4 sm:$0xff]  }
  0xa9   :  { %1992 = vmatpush1.bf16.msra.mxu1 %v3808_v9  ;;  %1952 = vmatprep.subr.bf16.mxu0 %v3813_v10  ;;  %v3906_v9 = vld [vmem:[#allocation5 + $0x42c] ss:$72 sps:$4 sm:$0xff]   ;;  %v3901_v10 = vld [vmem:[#allocation5 + $0x420] ss:$72 sps:$4 sm:$0xff]  }
  0xaa   :  { %1993 = vmatprep.subr.bf16.mxu1 %v3816_v11  ;;  %1982 = vmatprep.mubr.bf16.mxu0 %v4394_v47  ;;  %v3904_v11 = vld [vmem:[#allocation5 + $0x428] ss:$72 sps:$4 sm:$0xff]  }
  0xab   :  { %2023 = vmatprep.mubr.bf16.mxu1 %v4394_v47 }
  0xac   :  { %1953 = vmatpush1.bf16.msra.mxu0 %v3811_v12  ;;  %v3909_v12 = vld [vmem:[#allocation5 + $0x394] ss:$72 sps:$4 sm:$0xff]  }
  0xad   :  { %1994 = vmatpush1.bf16.msra.mxu1 %v3814_v13  ;;  %1954 = vmatprep.subr.bf16.mxu0 %v3819_v14  ;;  %v3912_v13 = vld [vmem:[#allocation5 + $0x39c] ss:$72 sps:$4 sm:$0xff]   ;;  %v3907_v14 = vld [vmem:[#allocation5 + $0x390] ss:$72 sps:$4 sm:$0xff]  }
  0xae   :  { %1995 = vmatprep.subr.bf16.mxu1 %v3822_v15  ;;  %v3910_v15 = vld [vmem:[#allocation5 + $0x398] ss:$72 sps:$4 sm:$0xff]  }
  0xb0   :  { %1955 = vmatpush1.bf16.msra.mxu0 %v3817_v16  ;;  %v3915_v16 = vld [vmem:[#allocation5 + $0x304] ss:$72 sps:$4 sm:$0xff]  }
  0xb1   :  { %1996 = vmatpush1.bf16.msra.mxu1 %v3820_v17  ;;  %1956 = vmatprep.subr.bf16.mxu0 %v3825_v18  ;;  %v3918_v17 = vld [vmem:[#allocation5 + $0x30c] ss:$72 sps:$4 sm:$0xff]   ;;  %v3913_v18 = vld [vmem:[#allocation5 + $0x300] ss:$72 sps:$4 sm:$0xff]  }
  0xb2   :  { %1997 = vmatprep.subr.bf16.mxu1 %v3828_v19  ;;  %v3916_v19 = vld [vmem:[#allocation5 + $0x308] ss:$72 sps:$4 sm:$0xff]  }
  0xb4   :  { %1957 = vmatpush1.bf16.msra.mxu0 %v3823_v20  ;;  %v3921_v20 = vld [vmem:[#allocation5 + $0x274] ss:$72 sps:$4 sm:$0xff]  }
  0xb5   :  { %1998 = vmatpush1.bf16.msra.mxu1 %v3826_v21  ;;  %1958 = vmatprep.subr.bf16.mxu0 %v3831_v22  ;;  %v3924_v21 = vld [vmem:[#allocation5 + $0x27c] ss:$72 sps:$4 sm:$0xff]   ;;  %v3919_v22 = vld [vmem:[#allocation5 + $0x270] ss:$72 sps:$4 sm:$0xff]  }
  0xb6   :  { %1999 = vmatprep.subr.bf16.mxu1 %v3834_v23  ;;  %v3922_v23 = vld [vmem:[#allocation5 + $0x278] ss:$72 sps:$4 sm:$0xff]  }
  0xb8   :  { %1959 = vmatpush1.bf16.msra.mxu0 %v3829_v24  ;;  %v3927_v24 = vld [vmem:[#allocation5 + $0x1e4] ss:$72 sps:$4 sm:$0xff]  }
  0xb9   :  { %2000 = vmatpush1.bf16.msra.mxu1 %v3832_v25  ;;  %1960 = vmatprep.subr.bf16.mxu0 %v3837_v26  ;;  %v3930_v25 = vld [vmem:[#allocation5 + $0x1ec] ss:$72 sps:$4 sm:$0xff]   ;;  %v3925_v26 = vld [vmem:[#allocation5 + $0x1e0] ss:$72 sps:$4 sm:$0xff]  }
  0xba   :  { %2001 = vmatprep.subr.bf16.mxu1 %v3840_v27  ;;  %v3928_v27 = vld [vmem:[#allocation5 + $0x1e8] ss:$72 sps:$4 sm:$0xff]  }
  0xbc   :  { %1961 = vmatpush1.bf16.msra.mxu0 %v3835_v28  ;;  %v3933_v28 = vld [vmem:[#allocation5 + $0x154] ss:$72 sps:$4 sm:$0xff]  }
  0xbd   :  { %2002 = vmatpush1.bf16.msra.mxu1 %v3838_v29  ;;  %1962 = vmatprep.subr.bf16.mxu0 %v3843_v30  ;;  %v3936_v29 = vld [vmem:[#allocation5 + $0x15c] ss:$72 sps:$4 sm:$0xff]   ;;  %v3931_v30 = vld [vmem:[#allocation5 + $0x150] ss:$72 sps:$4 sm:$0xff]  }
  0xbe   :  { %2003 = vmatprep.subr.bf16.mxu1 %v3846_v31  ;;  %v3934_v31 = vld [vmem:[#allocation5 + $0x158] ss:$72 sps:$4 sm:$0xff]  }
  0xc0   :  { %1963 = vmatpush1.bf16.msra.mxu0 %v3841_v32  ;;  %v3939_v32 = vld [vmem:[#allocation5 + $0xc4] ss:$72 sps:$4 sm:$0xff]  }
  0xc1   :  { %2004 = vmatpush1.bf16.msra.mxu1 %v3844_v33  ;;  %1964 = vmatprep.subr.bf16.mxu0 %v3849_v34  ;;  %v3942_v33 = vld [vmem:[#allocation5 + $0xcc] ss:$72 sps:$4 sm:$0xff]   ;;  %v3937_v34 = vld [vmem:[#allocation5 + $0xc0] ss:$72 sps:$4 sm:$0xff]  }
  0xc2   :  { %2005 = vmatprep.subr.bf16.mxu1 %v3852_v35  ;;  %v3940_v35 = vld [vmem:[#allocation5 + $0xc8] ss:$72 sps:$4 sm:$0xff]  }
  0xc4   :  { %1965 = vmatpush1.bf16.msra.mxu0 %v3847_v36  ;;  %v3945_v36 = vld [vmem:[#allocation5 + $0x34] ss:$72 sps:$4 sm:$0xff]  }
  0xc5   :  { %2006 = vmatpush1.bf16.msra.mxu1 %v3850_v37  ;;  %1966 = vmatprep.subr.bf16.mxu0 %v3855_v38  ;;  %v3948_v37 = vld [vmem:[#allocation5 + $0x3c] ss:$72 sps:$4 sm:$0xff]   ;;  %v3943_v38 = vld [vmem:[#allocation5 + $0x30] ss:$72 sps:$4 sm:$0xff]  }
  0xc6   :  { %2007 = vmatprep.subr.bf16.mxu1 %v3858_v39  ;;  %v3946_v39 = vld [vmem:[#allocation5 + $0x38] ss:$72 sps:$4 sm:$0xff]  }
  0xc8   :  { %1967 = vmatpush2.bf16.msra.mxu0 %v3853_v40  ;;  %v3951_v40 = vld [vmem:[#allocation5 + $0x8a4] ss:$72 sps:$4 sm:$0xff]  }
  0xc9   :  { %2008 = vmatpush2.bf16.msra.mxu1 %v3856_v41  ;;  %1968 = vmatprep.subr.bf16.mxu0 %v3861_v42  ;;  %v3954_v41 = vld [vmem:[#allocation5 + $0x8ac] ss:$72 sps:$4 sm:$0xff]   ;;  %v3949_v42 = vld [vmem:[#allocation5 + $0x8a0] ss:$72 sps:$4 sm:$0xff]  }
  0xca   :  { %2009 = vmatprep.subr.bf16.mxu1 %v3864_v43  ;;  %v3952_v43 = vld [vmem:[#allocation5 + $0x8a8] ss:$72 sps:$4 sm:$0xff]  }
  0xcc   :  { %1969 = vmatpush2.bf16.msra.mxu0 %v3859_v44  ;;  %v3957_v44 = vld [vmem:[#allocation5 + $0x814] ss:$72 sps:$4 sm:$0xff]  }
  0xcd   :  { %2010 = vmatpush2.bf16.msra.mxu1 %v3862_v45  ;;  %1970 = vmatprep.subr.bf16.mxu0 %v3867_v46  ;;  %v3960_v45 = vld [vmem:[#allocation5 + $0x81c] ss:$72 sps:$4 sm:$0xff]   ;;  %v3955_v46 = vld [vmem:[#allocation5 + $0x810] ss:$72 sps:$4 sm:$0xff]  }
  0xce   :  { %2011 = vmatprep.subr.bf16.mxu1 %v3870_v48  ;;  %v3958_v48 = vld [vmem:[#allocation5 + $0x818] ss:$72 sps:$4 sm:$0xff]  }
  0xd0   :  { %1971 = vmatpush2.bf16.msra.mxu0 %v3865_v49  ;;  %v3963_v49 = vld [vmem:[#allocation5 + $0x784] ss:$72 sps:$4 sm:$0xff]  }
  0xd1   :  { %2012 = vmatpush2.bf16.msra.mxu1 %v3868_v50  ;;  %1972 = vmatprep.subr.bf16.mxu0 %v3873_v51  ;;  %v3966_v50 = vld [vmem:[#allocation5 + $0x78c] ss:$72 sps:$4 sm:$0xff]   ;;  %v3961_v51 = vld [vmem:[#allocation5 + $0x780] ss:$72 sps:$4 sm:$0xff]  }
  0xd2   :  { %2013 = vmatprep.subr.bf16.mxu1 %v3876_v52  ;;  %v3964_v52 = vld [vmem:[#allocation5 + $0x788] ss:$72 sps:$4 sm:$0xff]  }
  0xd4   :  { %1973 = vmatpush2.bf16.msra.mxu0 %v3871_v53  ;;  %v3969_v53 = vld [vmem:[#allocation5 + $0x6f4] ss:$72 sps:$4 sm:$0xff]  }
  0xd5   :  { %2014 = vmatpush2.bf16.msra.mxu1 %v3874_v54  ;;  %1974 = vmatprep.subr.bf16.mxu0 %v3879_v55  ;;  %v3972_v54 = vld [vmem:[#allocation5 + $0x6fc] ss:$72 sps:$4 sm:$0xff]   ;;  %v3967_v55 = vld [vmem:[#allocation5 + $0x6f0] ss:$72 sps:$4 sm:$0xff]  }
  0xd6   :  { %2015 = vmatprep.subr.bf16.mxu1 %v3882_v56  ;;  %v3970_v56 = vld [vmem:[#allocation5 + $0x6f8] ss:$72 sps:$4 sm:$0xff]  }
  0xd8   :  { %1975 = vmatpush2.bf16.msra.mxu0 %v3877_v57  ;;  %v3975_v57 = vld [vmem:[#allocation5 + $0x664] ss:$72 sps:$4 sm:$0xff]  }
  0xd9   :  { %2016 = vmatpush2.bf16.msra.mxu1 %v3880_v58  ;;  %1976 = vmatprep.subr.bf16.mxu0 %v3885_v59  ;;  %v3978_v58 = vld [vmem:[#allocation5 + $0x66c] ss:$72 sps:$4 sm:$0xff]   ;;  %v3973_v59 = vld [vmem:[#allocation5 + $0x660] ss:$72 sps:$4 sm:$0xff]  }
  0xda   :  { %2017 = vmatprep.subr.bf16.mxu1 %v3888_v60  ;;  %v3976_v60 = vld [vmem:[#allocation5 + $0x668] ss:$72 sps:$4 sm:$0xff]  }
  0xdc   :  { %1977 = vmatpush2.bf16.msra.mxu0 %v3883_v61  ;;  %v3981_v61 = vld [vmem:[#allocation5 + $0x5d4] ss:$72 sps:$4 sm:$0xff]  }
  0xdd   :  { %2018 = vmatpush2.bf16.msra.mxu1 %v3886_v62  ;;  %1978 = vmatprep.subr.bf16.mxu0 %v3891_v63  ;;  %v3984_v62 = vld [vmem:[#allocation5 + $0x5dc] ss:$72 sps:$4 sm:$0xff]   ;;  %v3979_v63 = vld [vmem:[#allocation5 + $0x5d0] ss:$72 sps:$4 sm:$0xff]  }
  0xde   :  { %2019 = vmatprep.subr.bf16.mxu1 %v3894_v0  ;;  %v3982_v0 = vld [vmem:[#allocation5 + $0x5d8] ss:$72 sps:$4 sm:$0xff]  }
  0xe0   :  { %1979 = vmatpush2.bf16.msra.mxu0 %v3889_v1  ;;  %v3987_v1 = vld [vmem:[#allocation5 + $0x544] ss:$72 sps:$4 sm:$0xff]  }
  0xe1   :  { %2020 = vmatpush2.bf16.msra.mxu1 %v3892_v2  ;;  %1980 = vmatprep.subr.bf16.mxu0 %v3897_v3  ;;  %v3990_v2 = vld [vmem:[#allocation5 + $0x54c] ss:$72 sps:$4 sm:$0xff]   ;;  %v3985_v3 = vld [vmem:[#allocation5 + $0x540] ss:$72 sps:$4 sm:$0xff]  }
  0xe2   :  { %2021 = vmatprep.subr.bf16.mxu1 %v3900_v4  ;;  %v3988_v4 = vld [vmem:[#allocation5 + $0x548] ss:$72 sps:$4 sm:$0xff]  }
  0xe4   :  { %1981 = vmatpush2.bf16.msra.mxu0 %v3895_v6  ;;  %v3993_v6 = vld [vmem:[#allocation5 + $0x4b4] ss:$72 sps:$4 sm:$0xff]  }
  0xe5   :  { %2022 = vmatpush2.bf16.msra.mxu1 %v3898_v7  ;;  %2032 = vmatprep.subr.bf16.mxu0 %v3903_v8  ;;  %v3996_v7 = vld [vmem:[#allocation5 + $0x4bc] ss:$72 sps:$4 sm:$0xff]   ;;  %v3991_v8 = vld [vmem:[#allocation5 + $0x4b0] ss:$72 sps:$4 sm:$0xff]  }
  0xe6   :  { %2073 = vmatprep.subr.bf16.mxu1 %v3906_v9  ;;  %v3994_v9 = vld [vmem:[#allocation5 + $0x4b8] ss:$72 sps:$4 sm:$0xff]  }
  0xe7   :  { %1983 = vmatmul.mubr.bf16.vlgmr.msra.gmra.mxu0 %v4398_v5 }
  0xe8   :  { %2024 = vmatmul.mubr.bf16.vlgmr.msra.gmra.mxu1 %v4398_v5  ;;  %2033 = vmatpush1.bf16.msra.mxu0 %v3901_v10  ;;  %v3999_v10 = vld [vmem:[#allocation5 + $0x434] ss:$72 sps:$4 sm:$0xff]  }
  0xe9   :  { %2074 = vmatpush1.bf16.msra.mxu1 %v3904_v11  ;;  %2034 = vmatprep.subr.bf16.mxu0 %v3909_v12  ;;  %v4047_v11 = vld [vmem:[#allocation7 + $0x74] ss:$8 sps:$4 sm:$0xff]   ;;  %v3997_v12 = vld [vmem:[#allocation5 + $0x430] ss:$72 sps:$4 sm:$0xff]  }
  0xea   :  { %2075 = vmatprep.subr.bf16.mxu1 %v3912_v13  ;;  %2064 = vmatprep.mubr.bf16.mxu0 %v4394_v47  ;;  %v4002_v13 = vld [vmem:[#allocation5 + $0x3a4] ss:$72 sps:$4 sm:$0xff]  }
  0xeb   :  { %2105 = vmatprep.mubr.bf16.mxu1 %v4394_v47 }
  0xec   :  { %2035 = vmatpush1.bf16.msra.mxu0 %v3907_v14  ;;  %v4045_v14 = vld [vmem:[#allocation7 + $0x70] ss:$8 sps:$4 sm:$0xff]  }
  0xed   :  { %2076 = vmatpush1.bf16.msra.mxu1 %v3910_v15  ;;  %2036 = vmatprep.subr.bf16.mxu0 %v3915_v16  ;;  %v4050_v15 = vld [vmem:[#allocation7 + $0x64] ss:$8 sps:$4 sm:$0xff]  }
  0xee   :  { %2077 = vmatprep.subr.bf16.mxu1 %v3918_v17 }
  0xf0   :  { %2037 = vmatpush1.bf16.msra.mxu0 %v3913_v18  ;;  %v4000_v18 = vld [vmem:[#allocation5 + $0x3a0] ss:$72 sps:$4 sm:$0xff]  }
  0xf1   :  { %2078 = vmatpush1.bf16.msra.mxu1 %v3916_v19  ;;  %2038 = vmatprep.subr.bf16.mxu0 %v3921_v20  ;;  %v4005_v20 = vld [vmem:[#allocation5 + $0x314] ss:$72 sps:$4 sm:$0xff]  }
  0xf2   :  { %2079 = vmatprep.subr.bf16.mxu1 %v3924_v21 }
  0xf4   :  { %2039 = vmatpush1.bf16.msra.mxu0 %v3919_v22  ;;  %v4048_v22 = vld [vmem:[#allocation7 + $0x60] ss:$8 sps:$4 sm:$0xff]  }
  0xf5   :  { %2080 = vmatpush1.bf16.msra.mxu1 %v3922_v23  ;;  %2040 = vmatprep.subr.bf16.mxu0 %v3927_v24  ;;  %v4053_v23 = vld [vmem:[#allocation7 + $0x54] ss:$8 sps:$4 sm:$0xff]  }
  0xf6   :  { %2081 = vmatprep.subr.bf16.mxu1 %v3930_v25 }
  0xf8   :  { %2041 = vmatpush1.bf16.msra.mxu0 %v3925_v26  ;;  %v4003_v26 = vld [vmem:[#allocation5 + $0x310] ss:$72 sps:$4 sm:$0xff]  }
  0xf9   :  { %2082 = vmatpush1.bf16.msra.mxu1 %v3928_v27  ;;  %2042 = vmatprep.subr.bf16.mxu0 %v3933_v28  ;;  %v4008_v28 = vld [vmem:[#allocation5 + $0x284] ss:$72 sps:$4 sm:$0xff]  }
  0xfa   :  { %2083 = vmatprep.subr.bf16.mxu1 %v3936_v29 }
  0xfc   :  { %2043 = vmatpush1.bf16.msra.mxu0 %v3931_v30  ;;  %v4056_v30 = vld [vmem:[#allocation7 + $0x44] ss:$8 sps:$4 sm:$0xff]  }
  0xfd   :  { %2084 = vmatpush1.bf16.msra.mxu1 %v3934_v31  ;;  %2044 = vmatprep.subr.bf16.mxu0 %v3939_v32  ;;  %v4006_v31 = vld [vmem:[#allocation5 + $0x280] ss:$72 sps:$4 sm:$0xff]   ;;  %v4011_v32 = vld [vmem:[#allocation5 + $0x1f4] ss:$72 sps:$4 sm:$0xff]  }
  0xfe   :  { %2085 = vmatprep.subr.bf16.mxu1 %v3942_v33  ;;  %v4054_v33 = vld [vmem:[#allocation7 + $0x40] ss:$8 sps:$4 sm:$0xff]  }
 0x100   :  { %2045 = vmatpush1.bf16.msra.mxu0 %v3937_v34  ;;  %v4059_v34 = vld [vmem:[#allocation7 + $0x34] ss:$8 sps:$4 sm:$0xff]  }
 0x101   :  { %2086 = vmatpush1.bf16.msra.mxu1 %v3940_v35  ;;  %2046 = vmatprep.subr.bf16.mxu0 %v3945_v36  ;;  %v4009_v35 = vld [vmem:[#allocation5 + $0x1f0] ss:$72 sps:$4 sm:$0xff]   ;;  %v4014_v36 = vld [vmem:[#allocation5 + $0x164] ss:$72 sps:$4 sm:$0xff]  }
 0x102   :  { %2087 = vmatprep.subr.bf16.mxu1 %v3948_v37  ;;  %v4057_v37 = vld [vmem:[#allocation7 + $0x30] ss:$8 sps:$4 sm:$0xff]  }
 0x104   :  { %2047 = vmatpush1.bf16.msra.mxu0 %v3943_v38  ;;  %v4062_v38 = vld [vmem:[#allocation7 + $0x24] ss:$8 sps:$4 sm:$0xff]  }
 0x105   :  { %2088 = vmatpush1.bf16.msra.mxu1 %v3946_v39  ;;  %2048 = vmatprep.subr.bf16.mxu0 %v3951_v40  ;;  %v4012_v39 = vld [vmem:[#allocation5 + $0x160] ss:$72 sps:$4 sm:$0xff]   ;;  %v4017_v40 = vld [vmem:[#allocation5 + $0xd4] ss:$72 sps:$4 sm:$0xff]  }
 0x106   :  { %2089 = vmatprep.subr.bf16.mxu1 %v3954_v41  ;;  %v4060_v41 = vld [vmem:[#allocation7 + $0x20] ss:$8 sps:$4 sm:$0xff]  }
 0x108   :  { %2049 = vmatpush2.bf16.msra.mxu0 %v3949_v42  ;;  %v4065_v42 = vld [vmem:[#allocation7 + $0x14] ss:$8 sps:$4 sm:$0xff]  }
 0x109   :  { %2090 = vmatpush2.bf16.msra.mxu1 %v3952_v43  ;;  %2050 = vmatprep.subr.bf16.mxu0 %v3957_v44  ;;  %v4015_v43 = vld [vmem:[#allocation5 + $0xd0] ss:$72 sps:$4 sm:$0xff]   ;;  %v4020_v44 = vld [vmem:[#allocation5 + $0x44] ss:$72 sps:$4 sm:$0xff]  }
 0x10a   :  { %2091 = vmatprep.subr.bf16.mxu1 %v3960_v45  ;;  %v4063_v45 = vld [vmem:[#allocation7 + $0x10] ss:$8 sps:$4 sm:$0xff]  }
 0x10c   :  { %2051 = vmatpush2.bf16.msra.mxu0 %v3955_v46  ;;  %v4068_v46 = vld [vmem:[#allocation7 + $0x4] ss:$8 sps:$4 sm:$0xff]  }
 0x10d   :  { %2092 = vmatpush2.bf16.msra.mxu1 %v3958_v48  ;;  %2052 = vmatprep.subr.bf16.mxu0 %v3963_v49  ;;  %v4018_v48 = vld [vmem:[#allocation5 + $0x40] ss:$72 sps:$4 sm:$0xff]   ;;  %v4023_v49 = vld [vmem:[#allocation5 + $0x8b4] ss:$72 sps:$4 sm:$0xff]  }
 0x10e   :  { %2093 = vmatprep.subr.bf16.mxu1 %v3966_v50  ;;  %v4066_v50 = vld [vmem:[#allocation7] ss:$8 sps:$4 sm:$0xff]  }
 0x110   :  { %2053 = vmatpush2.bf16.msra.mxu0 %v3961_v51  ;;  %v4071_v51 = vld [vmem:[#allocation7 + $0xf4] ss:$8 sps:$4 sm:$0xff]  }
 0x111   :  { %2094 = vmatpush2.bf16.msra.mxu1 %v3964_v52  ;;  %2054 = vmatprep.subr.bf16.mxu0 %v3969_v53  ;;  %v4021_v52 = vld [vmem:[#allocation5 + $0x8b0] ss:$72 sps:$4 sm:$0xff]   ;;  %v4026_v53 = vld [vmem:[#allocation5 + $0x824] ss:$72 sps:$4 sm:$0xff]  }
 0x112   :  { %2095 = vmatprep.subr.bf16.mxu1 %v3972_v54  ;;  %v4069_v54 = vld [vmem:[#allocation7 + $0xf0] ss:$8 sps:$4 sm:$0xff]  }
 0x114   :  { %2055 = vmatpush2.bf16.msra.mxu0 %v3967_v55  ;;  %v4074_v55 = vld [vmem:[#allocation7 + $0xe4] ss:$8 sps:$4 sm:$0xff]  }
 0x115   :  { %2096 = vmatpush2.bf16.msra.mxu1 %v3970_v56  ;;  %2056 = vmatprep.subr.bf16.mxu0 %v3975_v57  ;;  %v4024_v56 = vld [vmem:[#allocation5 + $0x820] ss:$72 sps:$4 sm:$0xff]   ;;  %v4029_v57 = vld [vmem:[#allocation5 + $0x794] ss:$72 sps:$4 sm:$0xff]  }
 0x116   :  { %2097 = vmatprep.subr.bf16.mxu1 %v3978_v58  ;;  %v4072_v58 = vld [vmem:[#allocation7 + $0xe0] ss:$8 sps:$4 sm:$0xff]  }
 0x118   :  { %2057 = vmatpush2.bf16.msra.mxu0 %v3973_v59  ;;  %v4077_v59 = vld [vmem:[#allocation7 + $0xd4] ss:$8 sps:$4 sm:$0xff]  }
 0x119   :  { %2098 = vmatpush2.bf16.msra.mxu1 %v3976_v60  ;;  %2058 = vmatprep.subr.bf16.mxu0 %v3981_v61  ;;  %v4027_v60 = vld [vmem:[#allocation5 + $0x790] ss:$72 sps:$4 sm:$0xff]   ;;  %v4032_v61 = vld [vmem:[#allocation5 + $0x704] ss:$72 sps:$4 sm:$0xff]  }
 0x11a   :  { %2099 = vmatprep.subr.bf16.mxu1 %v3984_v62  ;;  %v4075_v62 = vld [vmem:[#allocation7 + $0xd0] ss:$8 sps:$4 sm:$0xff]  }
 0x11c   :  { %2059 = vmatpush2.bf16.msra.mxu0 %v3979_v63  ;;  %v4080_v63 = vld [vmem:[#allocation7 + $0xc4] ss:$8 sps:$4 sm:$0xff]  }
 0x11d   :  { %2100 = vmatpush2.bf16.msra.mxu1 %v3982_v0  ;;  %2060 = vmatprep.subr.bf16.mxu0 %v3987_v1  ;;  %v4030_v0 = vld [vmem:[#allocation5 + $0x700] ss:$72 sps:$4 sm:$0xff]   ;;  %v4035_v1 = vld [vmem:[#allocation5 + $0x674] ss:$72 sps:$4 sm:$0xff]  }
 0x11e   :  { %2101 = vmatprep.subr.bf16.mxu1 %v3990_v2  ;;  %v4078_v2 = vld [vmem:[#allocation7 + $0xc0] ss:$8 sps:$4 sm:$0xff]  }
 0x120   :  { %2061 = vmatpush2.bf16.msra.mxu0 %v3985_v3  ;;  %v4083_v3 = vld [vmem:[#allocation7 + $0xb4] ss:$8 sps:$4 sm:$0xff]  }
 0x121   :  { %2102 = vmatpush2.bf16.msra.mxu1 %v3988_v4  ;;  %2062 = vmatprep.subr.bf16.mxu0 %v3993_v6  ;;  %v4033_v4 = vld [vmem:[#allocation5 + $0x670] ss:$72 sps:$4 sm:$0xff]   ;;  %v4038_v6 = vld [vmem:[#allocation5 + $0x5e4] ss:$72 sps:$4 sm:$0xff]  }
 0x122   :  { %2103 = vmatprep.subr.bf16.mxu1 %v3996_v7  ;;  %v4081_v7 = vld [vmem:[#allocation7 + $0xb0] ss:$8 sps:$4 sm:$0xff]  }
 0x124   :  { %2063 = vmatpush2.bf16.msra.mxu0 %v3991_v8  ;;  %v4086_v8 = vld [vmem:[#allocation7 + $0xa4] ss:$8 sps:$4 sm:$0xff]  }
 0x125   :  { %2104 = vmatpush2.bf16.msra.mxu1 %v3994_v9  ;;  %2114 = vmatprep.subr.bf16.mxu0 %v3999_v10  ;;  %v4036_v9 = vld [vmem:[#allocation5 + $0x5e0] ss:$72 sps:$4 sm:$0xff]   ;;  %v4041_v10 = vld [vmem:[#allocation5 + $0x554] ss:$72 sps:$4 sm:$0xff]  }
 0x126   :  { %2997 = vmatprep.subr.bf16.mxu1 %v4047_v11  ;;  %v4084_v11 = vld [vmem:[#allocation7 + $0xa0] ss:$8 sps:$4 sm:$0xff]  }
 0x127   :  { %v4412_v16 = vpop.f32.mrf.mxu0  ;;  %2065 = vmatmul.mubr.bf16.vlgmr.msra.gmra.mxu0 %v4398_v5 }
 0x128   :  { %2106 = vmatmul.mubr.bf16.vlgmr.msra.gmra.mxu1 %v4398_v5  ;;  %v4416_v17 = vpop.f32.mrf.mxu1  ;;  %2115 = vmatpush1.bf16.msra.mxu0 %v3997_v12  ;;  %v4089_v12 = vld [vmem:[#allocation7 + $0x94] ss:$8 sps:$4 sm:$0xff]  }
 0x129   :  { %2146 = vmatprep.mubr.bf16.mxu0 %v4394_v47  ;;  %v4419_v19 = vpop.f32.mrf.mxu0  ;;  %2116 = vmatprep.subr.bf16.mxu0 %v4002_v13  ;;  %v4051_v47 = vld [vmem:[#allocation7 + $0x50] ss:$8 sps:$4 sm:$0xff]  }
 0x12a   :  { %v4421_v21 = vpop.f32.mrf.mxu1  ;;  %2998 = vmatpush1.bf16.msra.mxu1 %v4045_v14  ;;  %v4039_v13 = vld [vmem:[#allocation5 + $0x550] ss:$72 sps:$4 sm:$0xff]   ;;  %v4044_v14 = vld [vmem:[#allocation5 + $0x4c4] ss:$72 sps:$4 sm:$0xff]  }
 0x12b   :  { %2999 = vmatprep.subr.bf16.mxu1 %v4050_v15  ;;  %v1824_v24 = vpop.f32.mrf.mxu0  ;;  %v4087_v15 = vld [vmem:[#allocation7 + $0x90] ss:$8 sps:$4 sm:$0xff]  }
 0x12c   :  { %v1865_v25 = vpop.f32.mrf.mxu1  ;;  %2117 = vmatpush1.bf16.msra.mxu0 %v4000_v18  ;;  %v4092_v18 = vld [vmem:[#allocation7 + $0x84] ss:$8 sps:$4 sm:$0xff]   ;;  %v4098_v24 = vld [vmem:[#allocation7 + $0x274] ss:$8 sps:$4 sm:$0xff]  }
 0x12d   :  { %v1825_v27 = vpop.f32.mrf.mxu0  ;;  %2118 = vmatprep.subr.bf16.mxu0 %v4005_v20  ;;  %v4042_v20 = vld [vmem:[#allocation5 + $0x4c0] ss:$72 sps:$4 sm:$0xff]   ;;  %v4093_v25 = vld [vmem:[#allocation7 + $0x170] ss:$8 sps:$4 sm:$0xff]  }
 0x12e   :  { %v1866_v29 = vpop.f32.mrf.mxu1  ;;  %3000 = vmatpush1.bf16.msra.mxu1 %v4048_v22  ;;  %v4090_v22 = vld [vmem:[#allocation7 + $0x80] ss:$8 sps:$4 sm:$0xff]  }
 0x12f   :  { %3001 = vmatprep.subr.bf16.mxu1 %v4053_v23  ;;  %v4095_v23 = vld [vmem:[#allocation7 + $0x174] ss:$8 sps:$4 sm:$0xff]   ;;  %v4099_v29 = vld [vmem:[#allocation7 + $0x160] ss:$8 sps:$4 sm:$0xff]  }
 0x130   :  { %2119 = vmatpush1.bf16.msra.mxu0 %v4003_v26  ;;  %v4101_v26 = vld [vmem:[#allocation7 + $0x164] ss:$8 sps:$4 sm:$0xff]  }
 0x131   :  { %2120 = vmatprep.subr.bf16.mxu0 %v4008_v28 }
 0x132   :  { %3002 = vmatpush1.bf16.msra.mxu1 %v4051_v47 }
 0x133   :  { %3003 = vmatprep.subr.bf16.mxu1 %v4056_v30 }
 0x134   :  { %2121 = vmatpush1.bf16.msra.mxu0 %v4006_v31  ;;  %v4107_v31 = vld [vmem:[#allocation7 + $0x154] ss:$8 sps:$4 sm:$0xff]  }
 0x135   :  { %2122 = vmatprep.subr.bf16.mxu0 %v4011_v32 }
 0x136   :  { %3004 = vmatpush1.bf16.msra.mxu1 %v4054_v33 }
 0x137   :  { %3005 = vmatprep.subr.bf16.mxu1 %v4059_v34  ;;  %v4105_v34 = vld [vmem:[#allocation7 + $0x150] ss:$8 sps:$4 sm:$0xff]  }
 0x138   :  { %2123 = vmatpush1.bf16.msra.mxu0 %v4009_v35 }
 0x139   :  { %2124 = vmatprep.subr.bf16.mxu0 %v4014_v36 }
 0x13a   :  { %3006 = vmatpush1.bf16.msra.mxu1 %v4057_v37  ;;  %v4113_v37 = vld [vmem:[#allocation7 + $0x144] ss:$8 sps:$4 sm:$0xff]  }
 0x13b   :  { %3007 = vmatprep.subr.bf16.mxu1 %v4062_v38  ;;  %v4119_v38 = vld [vmem:[#allocation7 + $0x134] ss:$8 sps:$4 sm:$0xff]  }
 0x13c   :  { %2125 = vmatpush1.bf16.msra.mxu0 %v4012_v39  ;;  %v4117_v39 = vld [vmem:[#allocation7 + $0x130] ss:$8 sps:$4 sm:$0xff]  }
 0x13d   :  { %2126 = vmatprep.subr.bf16.mxu0 %v4017_v40  ;;  %v4125_v40 = vld [vmem:[#allocation7 + $0x124] ss:$8 sps:$4 sm:$0xff]  }
 0x13e   :  { %3008 = vmatpush1.bf16.msra.mxu1 %v4060_v41  ;;  %v4123_v41 = vld [vmem:[#allocation7 + $0x120] ss:$8 sps:$4 sm:$0xff]  }
 0x13f   :  { %3009 = vmatprep.subr.bf16.mxu1 %v4065_v42  ;;  %v4131_v42 = vld [vmem:[#allocation7 + $0x114] ss:$8 sps:$4 sm:$0xff]  }
 0x140   :  { %2127 = vmatpush1.bf16.msra.mxu0 %v4015_v43  ;;  %v4129_v43 = vld [vmem:[#allocation7 + $0x110] ss:$8 sps:$4 sm:$0xff]  }
 0x141   :  { %2128 = vmatprep.subr.bf16.mxu0 %v4020_v44  ;;  %v4137_v44 = vld [vmem:[#allocation7 + $0x104] ss:$8 sps:$4 sm:$0xff]  }
 0x142   :  { %3010 = vmatpush1.bf16.msra.mxu1 %v4063_v45  ;;  %v3469_v45 = vmul.f32 -1.442695, %v4416_v17 }
 0x143   :  { %3011 = vmatprep.subr.bf16.mxu1 %v4068_v46  ;;  %v3470_v46 = vmul.f32 -1.442695, %v4421_v21 }
 0x144   :  { %2129 = vmatpush1.bf16.msra.mxu0 %v4018_v48  ;;  %v4135_v48 = vld [vmem:[#allocation7 + $0x100] ss:$8 sps:$4 sm:$0xff]   ;;  %4237 = vpow2.f32 %v3469_v45 }
 0x145   :  { %2130 = vmatprep.subr.bf16.mxu0 %v4023_v49  ;;  %v4143_v49 = vld [vmem:[#allocation7 + $0x1f4] ss:$8 sps:$4 sm:$0xff]   ;;  %4239 = vpow2.f32 %v3470_v46  ;;  %v4138_v45 = vld [vmem:[#allocation7 + $0x200] ss:$8 sps:$4 sm:$0xff]  }
 0x146   :  { %3012 = vmatpush1.bf16.msra.mxu1 %v4066_v50  ;;  %v4141_v50 = vld [vmem:[#allocation7 + $0x1f0] ss:$8 sps:$4 sm:$0xff]   ;;  %v4146_v46 = vld [vmem:[#allocation7 + $0x2f4] ss:$8 sps:$4 sm:$0xff]  }
 0x147   :  { %3013 = vmatprep.subr.bf16.mxu1 %v4071_v51  ;;  %v4149_v51 = vld [vmem:[#allocation7 + $0x1e4] ss:$8 sps:$4 sm:$0xff]  }
 0x148   :  { %2131 = vmatpush2.bf16.msra.mxu0 %v4021_v52  ;;  %v4147_v52 = vld [vmem:[#allocation7 + $0x1e0] ss:$8 sps:$4 sm:$0xff]  }
 0x149   :  { %2132 = vmatprep.subr.bf16.mxu0 %v4026_v53  ;;  %v4155_v53 = vld [vmem:[#allocation7 + $0x1d4] ss:$8 sps:$4 sm:$0xff]  }
 0x14a   :  { %3014 = vmatpush2.bf16.msra.mxu1 %v4069_v54  ;;  %v4153_v54 = vld [vmem:[#allocation7 + $0x1d0] ss:$8 sps:$4 sm:$0xff]  }
 0x14b   :  { %3015 = vmatprep.subr.bf16.mxu1 %v4074_v55  ;;  %v4161_v55 = vld [vmem:[#allocation7 + $0x1c4] ss:$8 sps:$4 sm:$0xff]  }
 0x14c   :  { %2133 = vmatpush2.bf16.msra.mxu0 %v4024_v56 }
 0x14d   :  { %2134 = vmatprep.subr.bf16.mxu0 %v4029_v57  ;;  %v4159_v57 = vld [vmem:[#allocation7 + $0x1c0] ss:$8 sps:$4 sm:$0xff]  }
 0x14e   :  { %3016 = vmatpush2.bf16.msra.mxu1 %v4072_v58 }
 0x14f   :  { %3017 = vmatprep.subr.bf16.mxu1 %v4077_v59  ;;  %v4167_v59 = vld [vmem:[#allocation7 + $0x1b4] ss:$8 sps:$4 sm:$0xff]  }
 0x150   :  { %2135 = vmatpush2.bf16.msra.mxu0 %v4027_v60 }
 0x151   :  { %2136 = vmatprep.subr.bf16.mxu0 %v4032_v61  ;;  %v4238_v56 = vpop.eup %4237 }
 0x152   :  { %3018 = vmatpush2.bf16.msra.mxu1 %v4075_v62  ;;  %v4240_v58 = vpop.eup %4239  ;;  %v2181_v60 = vadd.f32 1.0, %v4238_v56  ;;  %v4165_v62 = vld [vmem:[#allocation7 + $0x1b0] ss:$8 sps:$4 sm:$0xff]   ;;  %v4158_v56 = vld [vmem:[#allocation7 + $0x2d4] ss:$8 sps:$4 sm:$0xff]  }
 0x153   :  { %3019 = vmatprep.subr.bf16.mxu1 %v4080_v63  ;;  %v2182_v61 = vadd.f32 1.0, %v4240_v58  ;;  %v4173_v63 = vld [vmem:[#allocation7 + $0x1a4] ss:$8 sps:$4 sm:$0xff]  }
 0x154   :  { %2137 = vmatpush2.bf16.msra.mxu0 %v4030_v0  ;;  %4241 = vrcp.f32 %v2181_v60  ;;  %v4171_v0 = vld [vmem:[#allocation7 + $0x1a0] ss:$8 sps:$4 sm:$0xff]   ;;  %v4156_v60 = vld [vmem:[#allocation7 + $0x2d0] ss:$8 sps:$4 sm:$0xff]  }
 0x155   :  { %2138 = vmatprep.subr.bf16.mxu0 %v4035_v1  ;;  %4243 = vrcp.f32 %v2182_v61  ;;  %v4179_v1 = vld [vmem:[#allocation7 + $0x194] ss:$8 sps:$4 sm:$0xff]   ;;  %v4164_v61 = vld [vmem:[#allocation7 + $0x2c4] ss:$8 sps:$4 sm:$0xff]  }
 0x156   :  { %3020 = vmatpush2.bf16.msra.mxu1 %v4078_v2  ;;  %v4177_v2 = vld [vmem:[#allocation7 + $0x190] ss:$8 sps:$4 sm:$0xff]  }
 0x157   :  { %3021 = vmatprep.subr.bf16.mxu1 %v4083_v3  ;;  %v4185_v3 = vld [vmem:[#allocation7 + $0x184] ss:$8 sps:$4 sm:$0xff]  }
 0x158   :  { %2139 = vmatpush2.bf16.msra.mxu0 %v4033_v4  ;;  %v4183_v4 = vld [vmem:[#allocation7 + $0x180] ss:$8 sps:$4 sm:$0xff]  }
 0x159   :  { %2140 = vmatprep.subr.bf16.mxu0 %v4038_v6  ;;  %v4191_v6 = vld [vmem:[#allocation7 + $0x374] ss:$8 sps:$4 sm:$0xff]  }
 0x15a   :  { %3022 = vmatpush2.bf16.msra.mxu1 %v4081_v7 }
 0x15b   :  { %3023 = vmatprep.subr.bf16.mxu1 %v4086_v8 }
 0x15c   :  { %2141 = vmatpush2.bf16.msra.mxu0 %v4036_v9 }
 0x15d   :  { %2142 = vmatprep.subr.bf16.mxu0 %v4041_v10 }
 0x15e   :  { %3024 = vmatpush2.bf16.msra.mxu1 %v4084_v11 }
 0x15f   :  { %3025 = vmatprep.subr.bf16.mxu1 %v4089_v12 }
 0x160   :  { %2143 = vmatpush2.bf16.msra.mxu0 %v4039_v13 }
 0x161   :  { %2144 = vmatprep.subr.bf16.mxu0 %v4044_v14  ;;  %v4242_v7 = vpop.eup %4241 }
 0x162   :  { %3026 = vmatpush2.bf16.msra.mxu1 %v4087_v15  ;;  %v4244_v8 = vpop.eup %4243  ;;  %v2205_v9 = vmul.f32 %v4242_v7, %v4416_v17  ;;  %v4102_v17 = vld [vmem:[#allocation7 + $0x260] ss:$8 sps:$4 sm:$0xff]  }
 0x163   :  { %3027 = vmatprep.subr.bf16.mxu1 %v4092_v18  ;;  %v2206_v12 = vmul.f32 %v4244_v8, %v4421_v21  ;;  %v4108_v21 = vld [vmem:[#allocation7 + $0x250] ss:$8 sps:$4 sm:$0xff]  }
 0x164   :  { %2145 = vmatpush2.bf16.msra.mxu0 %v4042_v20  ;;  %v4180_v8 = vld [vmem:[#allocation7 + $0x290] ss:$8 sps:$4 sm:$0xff]  }
 0x165   :  { %3038 = vmatprep.subr.bf16.mxu0 %v4095_v23 }
 0x166   :  { %3028 = vmatpush2.bf16.msra.mxu1 %v4090_v22 }
 0x167   :  { %3079 = vmatprep.subr.bf16.mxu1 %v4098_v24  ;;  %v4423_v27 = vpop.f32.mrf.mxu0  ;;  %2147 = vmatmul.mubr.bf16.vlgmr.msra.gmra.mxu0 %v4398_v5  ;;  %v4111_v5 = vld [vmem:[#allocation7 + $0x140] ss:$8 sps:$4 sm:$0xff]   ;;  %v4096_v24 = vld [vmem:[#allocation7 + $0x270] ss:$8 sps:$4 sm:$0xff]  }
 0x168   :  { %v4426_v28 = vpop.f32.mrf.mxu1  ;;  %3039 = vmatpush1.bf16.msra.mxu0 %v4093_v25 }
 0x169   :  { %v4428_v47 = vpop.f32.mrf.mxu0  ;;  %3040 = vmatprep.subr.bf16.mxu0 %v4101_v26 }
 0x16a   :  { %v4430_v30 = vpop.f32.mrf.mxu1 }
 0x16b   :  { %v1906_v32 = vpop.f32.mrf.mxu0 }
 0x16c   :  { %v1947_v33 = vpop.f32.mrf.mxu1  ;;  %3041 = vmatpush1.bf16.msra.mxu0 %v4099_v29  ;;  %v4104_v29 = vld [vmem:[#allocation7 + $0x264] ss:$8 sps:$4 sm:$0xff]   ;;  %v4110_v32 = vld [vmem:[#allocation7 + $0x254] ss:$8 sps:$4 sm:$0xff]  }
 0x16d   :  { %v1907_v35 = vpop.f32.mrf.mxu0  ;;  %3042 = vmatprep.subr.bf16.mxu0 %v4107_v31  ;;  %v4116_v33 = vld [vmem:[#allocation7 + $0x244] ss:$8 sps:$4 sm:$0xff]  }
 0x16e   :  { %v1948_v36 = vpop.f32.mrf.mxu1  ;;  %v4122_v35 = vld [vmem:[#allocation7 + $0x234] ss:$8 sps:$4 sm:$0xff]  }
 0x16f   :  { %v4120_v36 = vld [vmem:[#allocation7 + $0x230] ss:$8 sps:$4 sm:$0xff]  }
 0x170   :  { %3043 = vmatpush1.bf16.msra.mxu0 %v4105_v34  ;;  %v4114_v34 = vld [vmem:[#allocation7 + $0x240] ss:$8 sps:$4 sm:$0xff]  }
 0x171   :  { %3044 = vmatprep.subr.bf16.mxu0 %v4113_v37  ;;  %v3471_v37 = vmul.f32 -1.442695, %v4423_v27 }
 0x173   :  { %4245 = vpow2.f32 %v3471_v37  ;;  %v4192_v37 = vld [vmem:[#allocation7 + $0x360] ss:$8 sps:$4 sm:$0xff]  }
 0x174   :  { %3045 = vmatpush1.bf16.msra.mxu0 %v4111_v5  ;;  %v4128_v5 = vld [vmem:[#allocation7 + $0x224] ss:$8 sps:$4 sm:$0xff]  }
 0x175   :  { %3046 = vmatprep.subr.bf16.mxu0 %v4119_v38  ;;  %v3473_v38 = vmul.f32 -1.442695, %v4426_v28 }
 0x177   :  { %4247 = vpow2.f32 %v3473_v38  ;;  %v4195_v38 = vld [vmem:[#allocation7 + $0x350] ss:$8 sps:$4 sm:$0xff]  }
 0x178   :  { %3047 = vmatpush1.bf16.msra.mxu0 %v4117_v39  ;;  %v3472_v39 = vmul.f32 -1.442695, %v4428_v47 }
 0x179   :  { %3048 = vmatprep.subr.bf16.mxu0 %v4125_v40  ;;  %v3474_v40 = vmul.f32 -1.442695, %v4430_v30 }
 0x17a   :  { %4249 = vpow2.f32 %v3472_v39  ;;  %v4200_v39 = vld [vmem:[#allocation7 + $0x344] ss:$8 sps:$4 sm:$0xff]  }
 0x17b   :  { %4251 = vpow2.f32 %v3474_v40  ;;  %v4198_v40 = vld [vmem:[#allocation7 + $0x340] ss:$8 sps:$4 sm:$0xff]  }
 0x17c   :  { %3049 = vmatpush1.bf16.msra.mxu0 %v4123_v41  ;;  %v4126_v41 = vld [vmem:[#allocation7 + $0x220] ss:$8 sps:$4 sm:$0xff]  }
 0x17d   :  { %3050 = vmatprep.subr.bf16.mxu0 %v4131_v42  ;;  %v4134_v42 = vld [vmem:[#allocation7 + $0x214] ss:$8 sps:$4 sm:$0xff]  }
 0x180   :  { %3051 = vmatpush1.bf16.msra.mxu0 %v4129_v43  ;;  %v4132_v43 = vld [vmem:[#allocation7 + $0x210] ss:$8 sps:$4 sm:$0xff]  }
 0x181   :  { %3052 = vmatprep.subr.bf16.mxu0 %v4137_v44  ;;  %v4140_v44 = vld [vmem:[#allocation7 + $0x204] ss:$8 sps:$4 sm:$0xff]  }
 0x184   :  { %3053 = vmatpush1.bf16.msra.mxu0 %v4135_v48  ;;  %v4144_v48 = vld [vmem:[#allocation7 + $0x2f0] ss:$8 sps:$4 sm:$0xff]  }
 0x185   :  { %3054 = vmatprep.subr.bf16.mxu0 %v4143_v49  ;;  %v4152_v49 = vld [vmem:[#allocation7 + $0x2e4] ss:$8 sps:$4 sm:$0xff]  }
 0x188   :  { %3055 = vmatpush2.bf16.msra.mxu0 %v4141_v50  ;;  %v4246_v50 = vpop.eup %4245 }
 0x189   :  { %3056 = vmatprep.subr.bf16.mxu0 %v4149_v51  ;;  %v4248_v51 = vpop.eup %4247 }
 0x18c   :  { %3057 = vmatpush2.bf16.msra.mxu0 %v4147_v52  ;;  %v4250_v52 = vpop.eup %4249 }
 0x18d   :  { %3058 = vmatprep.subr.bf16.mxu0 %v4155_v53  ;;  %v4150_v53 = vld [vmem:[#allocation7 + $0x2e0] ss:$8 sps:$4 sm:$0xff]   ;;  %v2184_v58 = vadd.f32 1.0, %v4250_v52  ;;  %v4215_v52 = vld [vmem:[#allocation7 + $0x3f4] ss:$8 sps:$4 sm:$0xff]  }
 0x190   :  { %3059 = vmatpush2.bf16.msra.mxu0 %v4153_v54  ;;  %v4252_v54 = vpop.eup %4251 }
 0x191   :  { %3060 = vmatprep.subr.bf16.mxu0 %v4161_v55  ;;  %v2183_v55 = vadd.f32 1.0, %v4246_v50  ;;  %v4212_v50 = vld [vmem:[#allocation7 + $0x304] ss:$8 sps:$4 sm:$0xff]  }
 0x193   :  { %4253 = vrcp.f32 %v2183_v55 }
 0x194   :  { %3061 = vmatpush2.bf16.msra.mxu0 %v4159_v57  ;;  %v2185_v57 = vadd.f32 1.0, %v4248_v51  ;;  %v4210_v51 = vld [vmem:[#allocation7 + $0x300] ss:$8 sps:$4 sm:$0xff]  }
 0x195   :  { %3062 = vmatprep.subr.bf16.mxu0 %v4167_v59  ;;  %v2186_v59 = vadd.f32 1.0, %v4252_v54  ;;  %v4218_v54 = vld [vmem:[#allocation7 + $0x3e4] ss:$8 sps:$4 sm:$0xff]  }
 0x196   :  { %4255 = vrcp.f32 %v2185_v57 }
 0x197   :  { %4257 = vrcp.f32 %v2184_v58  ;;  %v4221_v58 = vld [vmem:[#allocation7 + $0x3d4] ss:$8 sps:$4 sm:$0xff]  }
 0x198   :  { %3063 = vmatpush2.bf16.msra.mxu0 %v4165_v62  ;;  %4259 = vrcp.f32 %v2186_v59  ;;  %v4162_v62 = vld [vmem:[#allocation7 + $0x2c0] ss:$8 sps:$4 sm:$0xff]  }
 0x199   :  { %3064 = vmatprep.subr.bf16.mxu0 %v4173_v63  ;;  %v4170_v63 = vld [vmem:[#allocation7 + $0x2b4] ss:$8 sps:$4 sm:$0xff]  }
 0x19c   :  { %3065 = vmatpush2.bf16.msra.mxu0 %v4171_v0  ;;  %v4168_v0 = vld [vmem:[#allocation7 + $0x2b0] ss:$8 sps:$4 sm:$0xff]  }
 0x19d   :  { %3066 = vmatprep.subr.bf16.mxu0 %v4179_v1  ;;  %v4176_v1 = vld [vmem:[#allocation7 + $0x2a4] ss:$8 sps:$4 sm:$0xff]  }
 0x1a0   :  { %3067 = vmatpush2.bf16.msra.mxu0 %v4177_v2  ;;  %v4174_v2 = vld [vmem:[#allocation7 + $0x2a0] ss:$8 sps:$4 sm:$0xff]  }
 0x1a1   :  { %3068 = vmatprep.subr.bf16.mxu0 %v4185_v3  ;;  %v4182_v3 = vld [vmem:[#allocation7 + $0x294] ss:$8 sps:$4 sm:$0xff]  }
 0x1a4   :  { %3069 = vmatpush2.bf16.msra.mxu0 %v4183_v4  ;;  %v4254_v4 = vpop.eup %4253 }
 0x1a5   :  { %3120 = vmatprep.subr.bf16.mxu0 %v4191_v6  ;;  %v4256_v6 = vpop.eup %4255 }
 0x1a6   :  { %v4258_v7 = vpop.eup %4257 }
 0x1a7   :  { %v4435_v10 = vpop.f32.mrf.mxu0 }
 0x1a8   :  { %v2025_v11 = vpop.f32.mrf.mxu1 }
 0x1a9   :  { %v2213_v13 = vmul.f32 %v2205_v9, %v2025_v11  ;;  %v4438_v14 = vpop.f32.mrf.mxu0  ;;  %v4260_v9 = vpop.eup %4259  ;;  %v4188_v11 = vld [vmem:[#allocation7 + $0x284] ss:$8 sps:$4 sm:$0xff]  }
 0x1aa   :  { %v2027_v15 = vpop.f32.mrf.mxu1 }
 0x1ab   :  { %v2214_v18 = vmul.f32 %v2206_v12, %v2027_v15  ;;  %v1988_v20 = vpop.f32.mrf.mxu0  ;;  %v2221_v25 = vpack.c.bf16 %v2213_v13, %v2213_v13  ;;  %v2207_v12 = vmul.f32 %v4254_v4, %v4423_v27  ;;  %v2209_v13 = vmul.f32 %v4256_v6, %v4426_v28  ;;  %v4189_v28 = vld [vmem:[#allocation7 + $0x370] ss:$8 sps:$4 sm:$0xff]   ;;  %v4233_v4 = vld [vmem:[#allocation7 + $0x394] ss:$8 sps:$4 sm:$0xff]  }
 0x1ac   :  { %v2029_v22 = vpop.f32.mrf.mxu1  ;;  %v2208_v20 = vmul.f32 %v4258_v7, %v4428_v47  ;;  %v4231_v7 = vld [vmem:[#allocation7 + $0x390] ss:$8 sps:$4 sm:$0xff]  }
 0x1ad   :  { %v2222_v23 = vpack.c.bf16 %v2214_v18, %v2214_v18  ;;  %v1989_v26 = vpop.f32.mrf.mxu0  ;;  %v2210_v22 = vmul.f32 %v4260_v9, %v4430_v30  ;;  %v4236_v9 = vld [vmem:[#allocation7 + $0x384] ss:$8 sps:$4 sm:$0xff]  }
 0x1ae   :  { %v2030_v31 = vpop.f32.mrf.mxu1 }
 0x1af   :  { %3029 = vmatprep.mubr.bf16.mxu1 %v2222_v23  ;;  %v4186_v23 = vld [vmem:[#allocation7 + $0x280] ss:$8 sps:$4 sm:$0xff]  }
 0x1b0   :  { %3030 = vmatmul.mubr.bf16.vlgmr.msra.gmra.mxu1 %v2221_v25 }
 0x1b1   :  { %3080 = vmatpush1.bf16.msra.mxu1 %v4096_v24 }
 0x1b2   :  { %3081 = vmatprep.subr.bf16.mxu1 %v4104_v29 }
 0x1b5   :  { %3082 = vmatpush1.bf16.msra.mxu1 %v4102_v17 }
 0x1b6   :  { %3083 = vmatprep.subr.bf16.mxu1 %v4110_v32 }
 0x1b9   :  { %3084 = vmatpush1.bf16.msra.mxu1 %v4108_v21 }
 0x1ba   :  { %3085 = vmatprep.subr.bf16.mxu1 %v4116_v33 }
 0x1bd   :  { %3086 = vmatpush1.bf16.msra.mxu1 %v4114_v34 }
 0x1be   :  { %3087 = vmatprep.subr.bf16.mxu1 %v4122_v35 }
 0x1c1   :  { %3088 = vmatpush1.bf16.msra.mxu1 %v4120_v36  ;;  %v4194_v36 = vld [vmem:[#allocation7 + $0x364] ss:$8 sps:$4 sm:$0xff]  }
 0x1c2   :  { %3089 = vmatprep.subr.bf16.mxu1 %v4128_v5  ;;  %v4197_v5 = vld [vmem:[#allocation7 + $0x354] ss:$8 sps:$4 sm:$0xff]  }
 0x1c5   :  { %3090 = vmatpush1.bf16.msra.mxu1 %v4126_v41  ;;  %v4203_v41 = vld [vmem:[#allocation7 + $0x334] ss:$8 sps:$4 sm:$0xff]  }
 0x1c6   :  { %3091 = vmatprep.subr.bf16.mxu1 %v4134_v42  ;;  %v4201_v42 = vld [vmem:[#allocation7 + $0x330] ss:$8 sps:$4 sm:$0xff]  }
 0x1c9   :  { %3092 = vmatpush1.bf16.msra.mxu1 %v4132_v43  ;;  %v4206_v43 = vld [vmem:[#allocation7 + $0x324] ss:$8 sps:$4 sm:$0xff]  }
 0x1ca   :  { %3093 = vmatprep.subr.bf16.mxu1 %v4140_v44  ;;  %v3475_v44 = vmul.f32 -1.442695, %v4435_v10 }
 0x1cc   :  { %4261 = vpow2.f32 %v3475_v44 }
 0x1cd   :  { %3094 = vmatpush1.bf16.msra.mxu1 %v4138_v45  ;;  %v3476_v45 = vmul.f32 -1.442695, %v4438_v14 }
 0x1ce   :  { %3095 = vmatprep.subr.bf16.mxu1 %v4146_v46  ;;  %v4204_v46 = vld [vmem:[#allocation7 + $0x320] ss:$8 sps:$4 sm:$0xff]  }
 0x1cf   :  { %4263 = vpow2.f32 %v3476_v45 }
 0x1d1   :  { %3096 = vmatpush2.bf16.msra.mxu1 %v4144_v48  ;;  %v4209_v48 = vld [vmem:[#allocation7 + $0x314] ss:$8 sps:$4 sm:$0xff]  }
 0x1d2   :  { %3097 = vmatprep.subr.bf16.mxu1 %v4152_v49  ;;  %v4207_v49 = vld [vmem:[#allocation7 + $0x310] ss:$8 sps:$4 sm:$0xff]  }
 0x1d5   :  { %3098 = vmatpush2.bf16.msra.mxu1 %v4150_v53  ;;  %v4213_v53 = vld [vmem:[#allocation7 + $0x3f0] ss:$8 sps:$4 sm:$0xff]  }
 0x1d6   :  { %3099 = vmatprep.subr.bf16.mxu1 %v4158_v56  ;;  %v4216_v56 = vld [vmem:[#allocation7 + $0x3e0] ss:$8 sps:$4 sm:$0xff]  }
 0x1d9   :  { %3100 = vmatpush2.bf16.msra.mxu1 %v4156_v60  ;;  %v4262_v55 = vpop.eup %4261 }
 0x1da   :  { %3101 = vmatprep.subr.bf16.mxu1 %v4164_v61  ;;  %v2187_v59 = vadd.f32 1.0, %v4262_v55  ;;  %v4219_v61 = vld [vmem:[#allocation7 + $0x3d0] ss:$8 sps:$4 sm:$0xff]  }
 0x1dc   :  { %v4264_v57 = vpop.eup %4263  ;;  %4265 = vrcp.f32 %v2187_v59 }
 0x1dd   :  { %3102 = vmatpush2.bf16.msra.mxu1 %v4162_v62  ;;  %v2188_v60 = vadd.f32 1.0, %v4264_v57  ;;  %v4224_v62 = vld [vmem:[#allocation7 + $0x3c4] ss:$8 sps:$4 sm:$0xff]  }
 0x1de   :  { %3103 = vmatprep.subr.bf16.mxu1 %v4170_v63  ;;  %v4222_v63 = vld [vmem:[#allocation7 + $0x3c0] ss:$8 sps:$4 sm:$0xff]  }
 0x1df   :  { %4267 = vrcp.f32 %v2188_v60 }
 0x1e1   :  { %3104 = vmatpush2.bf16.msra.mxu1 %v4168_v0  ;;  %v4227_v0 = vld [vmem:[#allocation7 + $0x3b4] ss:$8 sps:$4 sm:$0xff]  }
 0x1e2   :  { %3105 = vmatprep.subr.bf16.mxu1 %v4176_v1  ;;  %v4225_v1 = vld [vmem:[#allocation7 + $0x3b0] ss:$8 sps:$4 sm:$0xff]  }
 0x1e5   :  { %3106 = vmatpush2.bf16.msra.mxu1 %v4174_v2  ;;  %v4230_v2 = vld [vmem:[#allocation7 + $0x3a4] ss:$8 sps:$4 sm:$0xff]  }
 0x1e6   :  { %3107 = vmatprep.subr.bf16.mxu1 %v4182_v3  ;;  %v4228_v3 = vld [vmem:[#allocation7 + $0x3a0] ss:$8 sps:$4 sm:$0xff]  }
 0x1e7   :  { %v2066_v15 = vpop.f32.mrf.mxu0 }
 0x1e8   :  { %v2107_v18 = vpop.f32.mrf.mxu1  ;;  %v2215_v24 = vmul.f32 %v2207_v12, %v2066_v15  ;;  %v4234_v15 = vld [vmem:[#allocation7 + $0x380] ss:$8 sps:$4 sm:$0xff]  }
 0x1e9   :  { %3108 = vmatpush2.bf16.msra.mxu1 %v4180_v8  ;;  %v2217_v25 = vmul.f32 %v2209_v13, %v2107_v18  ;;  %v2068_v26 = vpop.f32.mrf.mxu0  ;;  %v4266_v6 = vpop.eup %4265 }
 0x1ea   :  { %v2109_v29 = vpop.f32.mrf.mxu1  ;;  %3109 = vmatprep.subr.bf16.mxu1 %v4188_v11  ;;  %v2216_v31 = vmul.f32 %v2208_v20, %v2068_v26  ;;  %v2223_v34 = vpack.c.bf16 %v2215_v24, %v2215_v24  ;;  %v2211_v11 = vmul.f32 %v4266_v6, %v4435_v10 }
 0x1eb   :  { %v2218_v17 = vmul.f32 %v2210_v22, %v2109_v29  ;;  %v2070_v32 = vpop.f32.mrf.mxu0  ;;  %v2225_v35 = vpack.c.bf16 %v2217_v25, %v2217_v25 }
 0x1ec   :  { %v2111_v21 = vpop.f32.mrf.mxu1  ;;  %v2224_v27 = vpack.c.bf16 %v2216_v31, %v2216_v31  ;;  %v4268_v8 = vpop.eup %4267 }
 0x1ed   :  { %v2226_v33 = vpack.c.bf16 %v2218_v17, %v2218_v17  ;;  %3110 = vmatpush2.bf16.msra.mxu1 %v4186_v23  ;;  %v2071_v47 = vpop.f32.mrf.mxu0  ;;  %v2212_v13 = vmul.f32 %v4268_v8, %v4438_v14 }
 0x1ee   :  { %v2112_v30 = vpop.f32.mrf.mxu1  ;;  %3070 = vmatprep.mubr.bf16.mxu0 %v2224_v27 }
 0x1ef   :  { %3111 = vmatprep.mubr.bf16.mxu1 %v2226_v33  ;;  %3071 = vmatmul.mubr.bf16.vlgmr.msra.gmra.mxu0 %v2223_v34 }
 0x1f0   :  { %3112 = vmatmul.mubr.bf16.vlgmr.msra.gmra.mxu1 %v2225_v35  ;;  %3121 = vmatpush1.bf16.msra.mxu0 %v4189_v28 }
 0x1f1   :  { %3122 = vmatprep.subr.bf16.mxu0 %v4194_v36 }
 0x1f4   :  { %3123 = vmatpush1.bf16.msra.mxu0 %v4192_v37 }
 0x1f5   :  { %3124 = vmatprep.subr.bf16.mxu0 %v4197_v5  ;;  %v4269_v5 = vld [vmem:[#allocation2] sm:$0xff] }
 0x1f8   :  { %3125 = vmatpush1.bf16.msra.mxu0 %v4195_v38  ;;  %v2155_v38 = vadd.f32 %v4269_v5, %v4412_v16 }
 0x1f9   :  { %3126 = vmatprep.subr.bf16.mxu0 %v4200_v39 }
 0x1fc   :  { %3127 = vmatpush1.bf16.msra.mxu0 %v4198_v40 }
 0x1fd   :  { %3128 = vmatprep.subr.bf16.mxu0 %v4203_v41 }
 0x200   :  { %3129 = vmatpush1.bf16.msra.mxu0 %v4201_v42  ;;  %v4270_v42 = vld [vmem:[#allocation2 + $0x8] sm:$0xff] }
 0x201   :  { %3130 = vmatprep.subr.bf16.mxu0 %v4206_v43  ;;  %v2156_v43 = vadd.f32 %v4270_v42, %v4419_v19 }
 0x204   :  { %3131 = vmatpush1.bf16.msra.mxu0 %v4204_v46 }
 0x205   :  { %3132 = vmatprep.subr.bf16.mxu0 %v4209_v48 }
 0x208   :  { %3133 = vmatpush1.bf16.msra.mxu0 %v4207_v49 }
 0x209   :  { %3134 = vmatprep.subr.bf16.mxu0 %v4212_v50 }
 0x20c   :  { %3135 = vmatpush1.bf16.msra.mxu0 %v4210_v51 }
 0x20d   :  { %3136 = vmatprep.subr.bf16.mxu0 %v4215_v52 }
 0x210   :  { %3137 = vmatpush2.bf16.msra.mxu0 %v4213_v53 }
 0x211   :  { %3138 = vmatprep.subr.bf16.mxu0 %v4218_v54 }
 0x214   :  { %3139 = vmatpush2.bf16.msra.mxu0 %v4216_v56 }
 0x215   :  { %3140 = vmatprep.subr.bf16.mxu0 %v4221_v58 }
 0x218   :  { %3141 = vmatpush2.bf16.msra.mxu0 %v4219_v61 }
 0x219   :  { %3142 = vmatprep.subr.bf16.mxu0 %v4224_v62 }
 0x21c   :  { %3143 = vmatpush2.bf16.msra.mxu0 %v4222_v63 }
 0x21d   :  { %3144 = vmatprep.subr.bf16.mxu0 %v4227_v0 }
 0x220   :  { %3145 = vmatpush2.bf16.msra.mxu0 %v4225_v1 }
 0x221   :  { %3146 = vmatprep.subr.bf16.mxu0 %v4230_v2 }
 0x224   :  { %3147 = vmatpush2.bf16.msra.mxu0 %v4228_v3 }
 0x225   :  { %3148 = vmatprep.subr.bf16.mxu0 %v4233_v4 }
 0x227   :  { %v2148_v12 = vpop.f32.mrf.mxu0 }
 0x228   :  { %3149 = vmatpush2.bf16.msra.mxu0 %v4231_v7  ;;  %v2219_v18 = vmul.f32 %v2211_v11, %v2148_v12 }
 0x229   :  { %v2150_v20 = vpop.f32.mrf.mxu0  ;;  %3150 = vmatprep.subr.bf16.mxu0 %v4236_v9 }
 0x22a   :  { %v2220_v22 = vmul.f32 %v2212_v13, %v2150_v20  ;;  %v2227_v25 = vpack.c.bf16 %v2219_v18, %v2219_v18 }
 0x22b   :  { %v2152_v23 = vpop.f32.mrf.mxu0 }
 0x22c   :  { %v2228_v24 = vpack.c.bf16 %v2220_v22, %v2220_v22  ;;  %3151 = vmatpush2.bf16.msra.mxu0 %v4234_v15 }
 0x22d   :  { %v2153_v26 = vpop.f32.mrf.mxu0 }
 0x22e   :  { %3152 = vmatprep.mubr.bf16.mxu0 %v2228_v24 }
 0x22f   :  { %3153 = vmatmul.mubr.bf16.vlgmr.msra.gmra.mxu0 %v2227_v25 }
 0x270   :  { %v3031_v29 = vpop.f32.mrf.mxu1 }
 0x272   :  { %v3033_v31 = vpop.f32.mrf.mxu1 }
 0x274   :  { %v3035_v17 = vpop.f32.mrf.mxu1 }
 0x276   :  { %v3036_v10 = vpop.f32.mrf.mxu1 }
 0x2af   :  { %v3072_v32 = vpop.f32.mrf.mxu0 }
 0x2b0   :  { %v3113_v21 = vpop.f32.mrf.mxu1  ;;  %v3073_v47 = vadd.f32 %v3072_v32, %v3031_v29 }
 0x2b1   :  { %v3074_v14 = vpop.f32.mrf.mxu0 }
 0x2b2   :  { %v3115_v27 = vpop.f32.mrf.mxu1  ;;  %v3075_v36 = vadd.f32 %v3074_v14, %v3033_v31  ;;  %v3114_v30 = vadd.f32 %v3113_v21, %v3073_v47 }
 0x2b3   :  { %v3076_v33 = vpop.f32.mrf.mxu0 }
 0x2b4   :  { %v3117_v28 = vpop.f32.mrf.mxu1  ;;  %v3116_v39 = vadd.f32 %v3115_v27, %v3075_v36 }
 0x2b5   :  { %v3077_v34 = vpop.f32.mrf.mxu0 }
 0x2b6   :  { %v3118_v35 = vpop.f32.mrf.mxu1 }
 0x2ef   :  { %v3154_v37 = vpop.f32.mrf.mxu0 }
 0x2f0   :  { %v3155_v40 = vadd.f32 %v3154_v37, %v3114_v30 }
 0x2f1   :  { %v3156_v41 = vpop.f32.mrf.mxu0 }
 0x2f2   :  { %v3161_v44 = vadd.f32 %v3155_v40, %v2155_v38  ;;  %v3157_v45 = vadd.f32 %v3156_v41, %v3116_v39 }
 0x2f3   :  { %v3158_v46 = vpop.f32.mrf.mxu0 }
 0x2f4   :  { %3163 = vst [vmem:[#allocation8] sm:$0xff] %v3161_v44  ;;  %v3162_v48 = vadd.f32 %v3157_v45, %v2156_v43 }
 0x2f5   :  { %v3159_v49 = vpop.f32.mrf.mxu0 }
 0x2f6   :  { %3164 = vst [vmem:[#allocation8 + $0x8] sm:$0xff] %v3162_v48 }
 0x2f7   :  { %4342 = shalt.err (!%p4339_p5)
}
 0x2f8   :  { %3174 = dma.vmem_to_hbm [thread:$0]  %s3172_s2, 256, %s4460_s3, [#allocation4]  }
 0x2f9   :  { %4355 = dma.done.wait [#allocation4], 256  }
 0x2fa   :  { %4356 = vsyncadd [#allocation4], 4294967040 }
 0x2fb   :  { %3178 = vsyncpa [#allocation3], 1 }
 0x2fc   :  { %3179 = vsyncpa [#allocation6], 1 }
 0x2fd   :  { %3180 = vsyncpa [#allocation4], 1 }

</bundles_post_ra>
